<compile_context>
chip_gen: v6e
topology: v6e:2x2x1
jax: 0.10.0
libtpu: 0.0.40
codegen_flags: <defaults>
</compile_context>

<pallas_src>
import functools
import math

import numpy as np
import jax
import jax.numpy as jnp
from jax.experimental import pallas as pl
from jax.experimental.pallas import tpu as pltpu

# ---- configuration (V_network.__init__ arguments) ----
ALLY_OBS_DIM = 16
NUM_ACTIONS = 5
NUM_AGENTS = 3
NUM_HEADS = 4
TEMPERATURE = 1.0
ENABLE_HARD_ATTENTION = False
ATTENTION_DROPOUT_PROB = 0.0
EMB = 64
FF = 2048
COMMON = 128
DH = EMB // NUM_HEADS
NPAIR = NUM_AGENTS * (NUM_AGENTS - 1)            # off-diagonal (i, j) pairs, i-major
OUT_W = 64                                       # packed output lanes: [V(3) | score(24) | weights(36) | pad(1)]


def _round_up(x, m):
    return ((x + m - 1) // m) * m


def _chip_config():
    """Generation-specific tiling / precision knobs (review-driven)."""
    kind = ""
    try:
        kind = jax.devices()[0].device_kind.lower()
    except Exception:
        pass
    if "v5" in kind:       # v5e: 128 MiB VMEM, no bf16 VPU/EUP
        cfg = dict(batch_tile=512, vmem_limit=96 * 2**20, ff_hidden_bf16=False, n_cores=1)
    elif "v6" in kind:     # v6e: 128 MiB VMEM, bf16 VPU/EUP
        cfg = dict(batch_tile=512, vmem_limit=96 * 2**20, ff_hidden_bf16=True, n_cores=1)
    elif "7" in kind:      # v7x: 64 MiB VMEM/TC, 2 TensorCores, bf16 VPU/EUP
        cfg = dict(batch_tile=256, vmem_limit=56 * 2**20, ff_hidden_bf16=True, n_cores=2)
    else:                  # unknown: conservative defaults known to compile
        cfg = dict(batch_tile=256, vmem_limit=48 * 2**20, ff_hidden_bf16=True, n_cores=1)
    try:  # never ask for more scoped VMEM than the chip physically has
        phys = pltpu.get_tpu_info().vmem_capacity_bytes
        cfg["vmem_limit"] = min(cfg["vmem_limit"], int(phys * 0.9))
    except Exception:
        pass
    return cfg


def _build_pool_expand():
    """Host-side block-diagonal pooling / expansion constants (built once)."""
    inv_scale = 1.0 / math.sqrt(DH)
    pool = np.zeros((NPAIR * EMB, NPAIR * NUM_HEADS), np.float32)
    expand = np.zeros((NPAIR * NUM_HEADS, NPAIR * EMB), np.float32)
    for p in range(NPAIR):
        for h in range(NUM_HEADS):
            pool[p * EMB + h * DH:p * EMB + (h + 1) * DH, p * NUM_HEADS + h] = inv_scale
            expand[p * NUM_HEADS + h, p * EMB + h * DH:p * EMB + (h + 1) * DH] = 1.0
    return pool, expand


_POOL_NP, _EXPAND_NP = _build_pool_expand()


# ---------------- in-kernel math helpers ----------------
def _layernorm(x, g, b, eps=1e-5):
    # single-pass variance: E[x^2] - E[x]^2 (clamped), stats in f32
    mu = jnp.mean(x, axis=-1, keepdims=True)
    var = jnp.maximum(jnp.mean(x * x, axis=-1, keepdims=True) - mu * mu, 0.0)
    return (x - mu) * jax.lax.rsqrt(var + eps) * g + b


def _erf(x):
    # Abramowitz & Stegun 7.1.26 polynomial erf (|err| < 1.5e-7): matches PyTorch's
    # exact (erf-based) nn.GELU closely on the small (64/128-wide) activations.
    a1, a2, a3, a4, a5 = 0.254829592, -0.284496736, 1.421413741, -1.453152027, 1.061405429
    p = 0.3275911
    ax = jnp.abs(x)
    t = 1.0 / (1.0 + p * ax)
    poly = ((((a5 * t + a4) * t + a3) * t + a2) * t + a1) * t
    y = 1.0 - poly * jnp.exp(-ax * ax)
    return jnp.where(x >= 0.0, y, -y)


def _gelu(x):
    return 0.5 * x * (1.0 + _erf(x * 0.7071067811865476))


def _gelu_tanh(x):
    # tanh-approximate GELU (EUP tanh); used only on the 2048-wide FF activation.
    c = 0.7978845608028654  # sqrt(2/pi)
    return 0.5 * x * (1.0 + jnp.tanh(c * (x + 0.044715 * x * x * x)))


# ---------------- the Pallas kernel ----------------
def _v_network_kernel(s_ref, a_ref,
                      p16, p64, p128, p2048,
                      emb_W, sae_Wa, qk_W, av_W,
                      ff_W1, ff_W2,
                      cm_W1a, cm_W1b, cm_W2, v_W,
                      pool_M, expand_M,
                      out_ref,
                      *, num_agents, num_heads, temperature, ff_hidden_bf16):
    N = num_agents
    H = num_heads
    BT = s_ref.shape[1]          # batch tile (multiple of 8)
    M = N * BT

    # ---- packed small parameters (one VMEM buffer per width group) ----
    P16, P64, P128, P2048 = p16[...], p64[...], p128[...], p2048[...]
    fn_g, fn_b = P16[0:1], P16[1:2]
    se_b, se_lg, se_lb = P64[0:1], P64[1:2], P64[2:3]
    sae_b, sae_lg, sae_lb = P64[3:4], P64[4:5], P64[5:6]
    av_b = P64[6:7]
    avln_g, avln_b = P64[7:8], P64[8:9]
    ff_b2 = P64[9:10]
    ffln_g, ffln_b = P64[10:11], P64[11:12]
    cm_b2, cm_lg2, cm_lb2 = P64[12:13], P64[13:14], P64[14:15]
    v_lg, v_lb = P64[15:16], P64[16:17]
    qk_b = P128[0:1]
    cm_b1, cm_lg1, cm_lb1 = P128[1:2], P128[2:3], P128[3:4]
    ff_b1, ff_lg, ff_lb = P2048[0:1], P2048[1:2], P2048[2:3]

    # ---- flatten to 2-D (N*BT, feat); agent-major so the reshape is layout-free ----
    states = s_ref[...].reshape(M, -1)
    actions = a_ref[...].reshape(M, -1)
    states = _layernorm(states, fn_g, fn_b)                       # allies_feature_norm

    # fused ally_state_embed / state-half of ally_state_act_embed: one (16,128) matmul
    emb = jnp.dot(states, emb_W[...], preferred_element_type=jnp.float32)        # (M, 128)
    states_embed = _gelu(_layernorm(emb[:, :EMB] + se_b, se_lg, se_lb))           # (M, 64)
    oa_pre = (emb[:, EMB:]
              + jnp.dot(actions, sae_Wa[...], preferred_element_type=jnp.float32)
              + sae_b)
    oa_embed = _gelu(_layernorm(oa_pre, sae_lg, sae_lb))                          # (M, 64)

    # fused query|key projection (one 128-wide matmul) + attention_value projection
    qk = jnp.dot(states_embed, qk_W[...], preferred_element_type=jnp.float32) + qk_b  # (M, 128)
    v_all = jnp.dot(oa_embed, av_W[...], preferred_element_type=jnp.float32) + av_b   # (M, 64)

    q3 = qk[:, :EMB].reshape(N, BT, EMB)
    k3 = qk[:, EMB:].reshape(N, BT, EMB)
    v3 = v_all.reshape(N, BT, EMB)

    # lane-concatenate q/k/v per off-diagonal pair (i-major, j != i ascending)
    pairs = [(i, j) for i in range(N) for j in range(N) if j != i]
    q_cat = jnp.concatenate([q3[i] for i, _ in pairs], axis=-1)                   # (BT, 6*64)
    k_cat = jnp.concatenate([k3[j] for _, j in pairs], axis=-1)
    v_cat = jnp.concatenate([v3[j] for _, j in pairs], axis=-1)

    # all per-pair per-head scores with ONE MXU call (1/sqrt(dh) folded into pool_M);
    # this is the PyTorch "score" (pre-temperature), already lane-packed for the store.
    score_pk = jnp.dot(q_cat * k_cat, pool_M[...],
                       preferred_element_type=jnp.float32)                        # (BT, 6*H)

    # per-agent softmax over its (N-1) neighbours, heads independent
    w_pairs = []
    for i in range(N):
        ls = [score_pk[:, p * H:(p + 1) * H]
              for p in range(i * (N - 1), (i + 1) * (N - 1))]
        if temperature != 1.0:
            inv_t = 1.0 / float(temperature)
            ls = [l * inv_t for l in ls]
        m = ls[0]
        for l in ls[1:]:
            m = jnp.maximum(m, l)
        es = [jnp.exp(l - m) for l in ls]
        den = es[0]
        for e in es[1:]:
            den = den + e
        inv_den = pl.reciprocal(den, approx=True)
        for e in es:
            w_pairs.append(e * inv_den)
    w_cat = jnp.concatenate(w_pairs, axis=-1)                                     # (BT, 6*H)

    # head-expansion (H -> 64 lanes) for all pairs with ONE MXU call, then the
    # weighted sum over each agent's neighbours (lane-block adds).
    w_exp = jnp.dot(w_cat, expand_M[...], preferred_element_type=jnp.float32)     # (BT, 6*64)
    weighted = w_exp * v_cat
    aggs = []
    for i in range(N):
        p0 = i * (N - 1)
        acc = weighted[:, p0 * EMB:(p0 + 1) * EMB]
        for t in range(1, N - 1):
            p = p0 + t
            acc = acc + weighted[:, p * EMB:(p + 1) * EMB]
        aggs.append(acc)
    aggregated = jnp.concatenate(aggs, axis=0)                                    # (M, 64) agent-major

    # residual + attention_value_layer_norm
    agg1 = _layernorm(oa_embed + aggregated, avln_g, avln_b)

    # attention_value_linear: 64 -> 2048 -> 64. bf16 MXU operands, f32 accumulation;
    # LN statistics in f32 (single pass); bf16 normalize + tanh-GELU on bf16-VPU chips.
    h = jnp.dot(agg1.astype(jnp.bfloat16), ff_W1[...],
                preferred_element_type=jnp.float32) + ff_b1                       # (M, 2048) f32
    mu = jnp.mean(h, axis=-1, keepdims=True)
    var = jnp.maximum(jnp.mean(h * h, axis=-1, keepdims=True) - mu * mu, 0.0)
    rstd = jax.lax.rsqrt(var + 1e-5)
    if ff_hidden_bf16:
        xn = ((h.astype(jnp.bfloat16) - mu.astype(jnp.bfloat16))
              * rstd.astype(jnp.bfloat16) * ff_lg.astype(jnp.bfloat16)
              + ff_lb.astype(jnp.bfloat16))
        act = _gelu_tanh(xn)                                                       # bf16 VPU/EUP
    else:
        act = _gelu_tanh((h - mu) * rstd * ff_lg + ff_lb).astype(jnp.bfloat16)     # f32 path (v5e)
    y = jnp.dot(act, ff_W2[...], preferred_element_type=jnp.float32) + ff_b2
    agg2 = _layernorm(agg1 + y, ffln_g, ffln_b)

    # common_layer on cat([states_embed, agg2]) == states_embed @ W1a + agg2 @ W1b
    c1 = _gelu(_layernorm(
        jnp.dot(states_embed, cm_W1a[...], preferred_element_type=jnp.float32)
        + jnp.dot(agg2, cm_W1b[...], preferred_element_type=jnp.float32) + cm_b1,
        cm_lg1, cm_lb1))
    c2 = _gelu(_layernorm(
        jnp.dot(c1, cm_W2[...], preferred_element_type=jnp.float32) + cm_b2,
        cm_lg2, cm_lb2))

    # v_value_layer: LN -> Linear(64, 1); the scalar bias is added outside the kernel.
    vln = _layernorm(c2, v_lg, v_lb).reshape(N, BT, EMB)
    vw = v_W[...]                                                                  # (1, 64)
    v_block = jnp.concatenate(
        [jnp.sum(vln[i] * vw, axis=-1, keepdims=True) for i in range(N)], axis=-1)  # (BT, N)

    # full weights block in (i, j) order with a constant-1 diagonal (weight_assignment)
    ones_h = jnp.ones((BT, H), jnp.float32)
    w_blocks = []
    p = 0
    for i in range(N):
        for j in range(N):
            if j == i:
                w_blocks.append(ones_h)
            else:
                w_blocks.append(w_pairs[p])
                p += 1

    # single lane-packed store per grid step: [V | score | weights | pad]
    used = N + N * (N - 1) * H + N * N * H
    pieces = [v_block, score_pk] + w_blocks
    if OUT_W > used:
        pieces.append(jnp.zeros((BT, OUT_W - used), jnp.float32))
    out_ref[...] = jnp.concatenate(pieces, axis=-1)


# ---------------- parameters (deterministic, orthogonal weights / zero biases) ----------------
def init_params(key):
    ks = jax.random.split(key, 10)
    ortho = jax.nn.initializers.orthogonal()
    D, A, E, F, C = ALLY_OBS_DIM, NUM_ACTIONS, EMB, FF, COMMON
    z = lambda d: jnp.zeros((1, d), jnp.float32)
    o = lambda d: jnp.ones((1, d), jnp.float32)
    w = lambda k, din, dout: ortho(k, (din, dout), jnp.float32)
    params = [
        o(D), z(D),                                     # allies_feature_norm
        w(ks[0], D, E), z(E), o(E), z(E),               # ally_state_embed: Linear + LN
        w(ks[1], D + A, E), z(E), o(E), z(E),           # ally_state_act_embed: Linear + LN
        w(ks[2], E, E), z(E),                           # key
        w(ks[3], E, E), z(E),                           # query
        w(ks[4], E, E), z(E),                           # attention_value
        o(E), z(E),                                     # attention_value_layer_norm
        w(ks[5], E, F), z(F), o(F), z(F),               # attention_value_linear: Linear(64,2048)+LN
        w(ks[6], F, E), z(E),                           #                         Linear(2048,64)
        o(E), z(E),                                     # attention_value_linear_layer_norm
        w(ks[7], 2 * E, C), z(C), o(C), z(C),           # common_layer: Linear(128,128)+LN
        w(ks[8], C, E), z(E), o(E), z(E),               #               Linear(128,64)+LN
        o(E), z(E),                                     # v_value_layer LN
        w(ks[9], E, 1), z(1),                           # v_value_layer Linear(64,1)
    ]
    return params


# ---------------- wrapper ----------------
def v_network_forward(states, actions, params):
    batch, T, N, D = states.shape
    A = actions.shape[-1]
    B = batch * T
    H = NUM_HEADS

    cfg = _chip_config()

    # agent-major layout (N, B, feat): contiguous per-agent rows + free in-kernel flatten
    s = states.reshape(B, N, D).transpose(1, 0, 2).astype(jnp.float32)
    a = actions.reshape(B, N, A).transpose(1, 0, 2).astype(jnp.float32)

    BT = min(cfg["batch_tile"], _round_up(B, 8))
    if cfg["n_cores"] > 1 and B > 8:
        # v7x: make sure the "parallel" grid has >= n_cores steps so both TCs get work
        BT = min(BT, _round_up(-(-B // cfg["n_cores"]), 8))
    Bp = _round_up(B, BT)
    if Bp != B:
        s = jnp.pad(s, ((0, 0), (0, Bp - B), (0, 0)))
        a = jnp.pad(a, ((0, 0), (0, Bp - B), (0, 0)))

    (fn_g, fn_b, se_W, se_b, se_lg, se_lb, sae_W, sae_b, sae_lg, sae_lb,
     key_W, key_b, qry_W, qry_b, av_W, av_b, avln_g, avln_b,
     ff_W1, ff_b1, ff_lg, ff_lb, ff_W2, ff_b2, ffln_g, ffln_b,
     cm_W1, cm_b1, cm_lg1, cm_lb1, cm_W2, cm_b2, cm_lg2, cm_lb2,
     v_lg, v_lb, v_W, v_b) = params

    # collapse the tiny (1,d) LN gains/biases into 4 packed arrays (grouped by width)
    p16 = jnp.concatenate([fn_g, fn_b], axis=0)
    p64 = jnp.concatenate([se_b, se_lg, se_lb, sae_b, sae_lg, sae_lb, av_b,
                           avln_g, avln_b, ff_b2, ffln_g, ffln_b,
                           cm_b2, cm_lg2, cm_lb2, v_lg, v_lb], axis=0)
    p128 = jnp.concatenate([jnp.concatenate([qry_b, key_b], axis=1),
                            cm_b1, cm_lg1, cm_lb1], axis=0)
    p2048 = jnp.concatenate([ff_b1, ff_lg, ff_lb], axis=0)

    kparams = [
        p16, p64, p128, p2048,
        jnp.concatenate([se_W, sae_W[:D]], axis=1),     # emb_W   (D, 128): [se_W | sae_Ws]
        sae_W[D:],                                      # sae_Wa  (A, 64)
        jnp.concatenate([qry_W, key_W], axis=1),        # qk_W    (64, 128)
        av_W,                                           # av_W    (64, 64)
        ff_W1.astype(jnp.bfloat16),                     # big FF matmuls in bf16
        ff_W2.astype(jnp.bfloat16),
        cm_W1[:EMB], cm_W1[EMB:],                       # split the [embed, agg] concat
        cm_W2,
        v_W.reshape(1, EMB),
        jnp.asarray(_POOL_NP),                          # block-diag pooling  (384, 24)
        jnp.asarray(_EXPAND_NP),                        # block-diag expansion (24, 384)
    ]

    kernel = functools.partial(_v_network_kernel, num_agents=N, num_heads=H,
                               temperature=TEMPERATURE,
                               ff_hidden_bf16=cfg["ff_hidden_bf16"])

    in_specs = ([pl.BlockSpec((N, BT, D), lambda i: (0, i, 0)),
                 pl.BlockSpec((N, BT, A), lambda i: (0, i, 0))]
                + [pl.BlockSpec(p.shape, lambda i: (0, 0)) for p in kparams])
    out_specs = pl.BlockSpec((BT, OUT_W), lambda i: (i, 0))
    out_shape = jax.ShapeDtypeStruct((Bp, OUT_W), jnp.float32)

    packed = pl.pallas_call(
        kernel,
        out_shape=out_shape,
        grid=(Bp // BT,),
        in_specs=in_specs,
        out_specs=out_specs,
        compiler_params=pltpu.CompilerParams(
            dimension_semantics=("parallel",),
            vmem_limit_bytes=cfg["vmem_limit"]),
    )(s, a, *kparams)

    packed = packed[:B]
    n_sc = N * (N - 1) * H
    n_w = N * N * H
    v = packed[:, :N] + v_b                          # add v_value_layer's scalar bias here
    s_cat = packed[:, N:N + n_sc]
    w_cat = packed[:, N + n_sc:N + n_sc + n_w]

    # glue: back to the PyTorch layouts (tiny XLA reshapes/transposes)
    score = s_cat.reshape(B, N, N - 1, H).transpose(0, 3, 1, 2)[:, :, :, None, :]
    weights = w_cat.reshape(B, N, N, H).transpose(0, 3, 1, 2)
    return v, weights, score, None


if __name__ == "__main__":
    key = jax.random.PRNGKey(0)
    kp, ksx, kax = jax.random.split(key, 3)
    params = init_params(kp)

    batch, timesteps = 2, 2
    states = jax.random.normal(ksx, (batch, timesteps, NUM_AGENTS, ALLY_OBS_DIM), jnp.float32)
    actions = jax.random.normal(kax, (batch, timesteps, NUM_AGENTS, NUM_ACTIONS), jnp.float32)

    V, weights, score, _ = v_network_forward(states, actions, params)
    jax.block_until_ready((V, weights, score))

    B = batch * timesteps
    assert V.shape == (B, NUM_AGENTS)
    assert weights.shape == (B, NUM_HEADS, NUM_AGENTS, NUM_AGENTS)
    assert score.shape == (B, NUM_HEADS, NUM_AGENTS, 1, NUM_AGENTS - 1)
    assert bool(jnp.all(jnp.isfinite(V)))
    assert bool(jnp.all(jnp.isfinite(weights)))
    assert bool(jnp.all(jnp.isfinite(score)))
    print("KERNEL_OK")
</pallas_src>

<mosaic_0001>
module attributes {stable_mosaic.version = 11 : i64} {
  func.func @_v_network_kernel(%arg0: i32, %arg1: memref<3x8x16xf32, #tpu.memory_space<vmem>>, %arg2: memref<3x8x5xf32, #tpu.memory_space<vmem>>, %arg3: memref<2x16xf32, #tpu.memory_space<vmem>>, %arg4: memref<17x64xf32, #tpu.memory_space<vmem>>, %arg5: memref<4x128xf32, #tpu.memory_space<vmem>>, %arg6: memref<3x2048xf32, #tpu.memory_space<vmem>>, %arg7: memref<16x128xf32, #tpu.memory_space<vmem>>, %arg8: memref<5x64xf32, #tpu.memory_space<vmem>>, %arg9: memref<64x128xf32, #tpu.memory_space<vmem>>, %arg10: memref<64x64xf32, #tpu.memory_space<vmem>>, %arg11: memref<64x2048xbf16, #tpu.memory_space<vmem>>, %arg12: memref<2048x64xbf16, #tpu.memory_space<vmem>>, %arg13: memref<64x128xf32, #tpu.memory_space<vmem>>, %arg14: memref<64x128xf32, #tpu.memory_space<vmem>>, %arg15: memref<128x64xf32, #tpu.memory_space<vmem>>, %arg16: memref<1x64xf32, #tpu.memory_space<vmem>>, %arg17: memref<384x24xf32, #tpu.memory_space<vmem>>, %arg18: memref<24x384xf32, #tpu.memory_space<vmem>>, %arg19: memref<8x64xf32, #tpu.memory_space<vmem>>) attributes {dimension_semantics = [#tpu.dimension_semantics<parallel>], iteration_bounds = array<i64: 1>, scalar_prefetch = 0 : i64, scratch_operands = 0 : i64, tpu.core_type = #tpu.core_type<tc>, window_params = [{transform_indices = @transform_0, window_bounds = array<i64: 3, 8, 16>}, {transform_indices = @transform_1, window_bounds = array<i64: 3, 8, 5>}, {pipeline_mode = #tpu.pipeline_mode<synchronous>, transform_indices = @transform_2, window_bounds = array<i64: 2, 16>}, {pipeline_mode = #tpu.pipeline_mode<synchronous>, transform_indices = @transform_3, window_bounds = array<i64: 17, 64>}, {pipeline_mode = #tpu.pipeline_mode<synchronous>, transform_indices = @transform_4, window_bounds = array<i64: 4, 128>}, {pipeline_mode = #tpu.pipeline_mode<synchronous>, transform_indices = @transform_5, window_bounds = array<i64: 3, 2048>}, {pipeline_mode = #tpu.pipeline_mode<synchronous>, transform_indices = @transform_6, window_bounds = array<i64: 16, 128>}, {pipeline_mode = #tpu.pipeline_mode<synchronous>, transform_indices = @transform_7, window_bounds = array<i64: 5, 64>}, {pipeline_mode = #tpu.pipeline_mode<synchronous>, transform_indices = @transform_8, window_bounds = array<i64: 64, 128>}, {pipeline_mode = #tpu.pipeline_mode<synchronous>, transform_indices = @transform_9, window_bounds = array<i64: 64, 64>}, {pipeline_mode = #tpu.pipeline_mode<synchronous>, transform_indices = @transform_10, window_bounds = array<i64: 64, 2048>}, {pipeline_mode = #tpu.pipeline_mode<synchronous>, transform_indices = @transform_11, window_bounds = array<i64: 2048, 64>}, {pipeline_mode = #tpu.pipeline_mode<synchronous>, transform_indices = @transform_12, window_bounds = array<i64: 64, 128>}, {pipeline_mode = #tpu.pipeline_mode<synchronous>, transform_indices = @transform_13, window_bounds = array<i64: 64, 128>}, {pipeline_mode = #tpu.pipeline_mode<synchronous>, transform_indices = @transform_14, window_bounds = array<i64: 128, 64>}, {pipeline_mode = #tpu.pipeline_mode<synchronous>, transform_indices = @transform_15, window_bounds = array<i64: 1, 64>}, {pipeline_mode = #tpu.pipeline_mode<synchronous>, transform_indices = @transform_16, window_bounds = array<i64: 384, 24>}, {pipeline_mode = #tpu.pipeline_mode<synchronous>, transform_indices = @transform_17, window_bounds = array<i64: 24, 384>}, {transform_indices = @transform_18, window_bounds = array<i64: 8, 64>}]} {
    %c0 = arith.constant 0 : index
    %c0_0 = arith.constant 0 : index
    %0 = vector.load %arg3[%c0, %c0_0] : memref<2x16xf32, #tpu.memory_space<vmem>>, vector<2x16xf32>
    %c0_1 = arith.constant 0 : index
    %c0_2 = arith.constant 0 : index
    %1 = vector.load %arg4[%c0_1, %c0_2] : memref<17x64xf32, #tpu.memory_space<vmem>>, vector<17x64xf32>
    %c0_3 = arith.constant 0 : index
    %c0_4 = arith.constant 0 : index
    %2 = vector.load %arg5[%c0_3, %c0_4] : memref<4x128xf32, #tpu.memory_space<vmem>>, vector<4x128xf32>
    %c0_5 = arith.constant 0 : index
    %c0_6 = arith.constant 0 : index
    %3 = vector.load %arg6[%c0_5, %c0_6] : memref<3x2048xf32, #tpu.memory_space<vmem>>, vector<3x2048xf32>
    %4 = vector.extract_strided_slice %0 {offsets = [0, 0], sizes = [1, 16], strides = [1, 1]} : vector<2x16xf32> to vector<1x16xf32>
    %5 = vector.extract_strided_slice %0 {offsets = [1, 0], sizes = [1, 16], strides = [1, 1]} : vector<2x16xf32> to vector<1x16xf32>
    %6 = vector.extract_strided_slice %1 {offsets = [0, 0], sizes = [1, 64], strides = [1, 1]} : vector<17x64xf32> to vector<1x64xf32>
    %7 = vector.extract_strided_slice %1 {offsets = [1, 0], sizes = [1, 64], strides = [1, 1]} : vector<17x64xf32> to vector<1x64xf32>
    %8 = vector.extract_strided_slice %1 {offsets = [2, 0], sizes = [1, 64], strides = [1, 1]} : vector<17x64xf32> to vector<1x64xf32>
    %9 = vector.extract_strided_slice %1 {offsets = [3, 0], sizes = [1, 64], strides = [1, 1]} : vector<17x64xf32> to vector<1x64xf32>
    %10 = vector.extract_strided_slice %1 {offsets = [4, 0], sizes = [1, 64], strides = [1, 1]} : vector<17x64xf32> to vector<1x64xf32>
    %11 = vector.extract_strided_slice %1 {offsets = [5, 0], sizes = [1, 64], strides = [1, 1]} : vector<17x64xf32> to vector<1x64xf32>
    %12 = vector.extract_strided_slice %1 {offsets = [6, 0], sizes = [1, 64], strides = [1, 1]} : vector<17x64xf32> to vector<1x64xf32>
    %13 = vector.extract_strided_slice %1 {offsets = [7, 0], sizes = [1, 64], strides = [1, 1]} : vector<17x64xf32> to vector<1x64xf32>
    %14 = vector.extract_strided_slice %1 {offsets = [8, 0], sizes = [1, 64], strides = [1, 1]} : vector<17x64xf32> to vector<1x64xf32>
    %15 = vector.extract_strided_slice %1 {offsets = [9, 0], sizes = [1, 64], strides = [1, 1]} : vector<17x64xf32> to vector<1x64xf32>
    %16 = vector.extract_strided_slice %1 {offsets = [10, 0], sizes = [1, 64], strides = [1, 1]} : vector<17x64xf32> to vector<1x64xf32>
    %17 = vector.extract_strided_slice %1 {offsets = [11, 0], sizes = [1, 64], strides = [1, 1]} : vector<17x64xf32> to vector<1x64xf32>
    %18 = vector.extract_strided_slice %1 {offsets = [12, 0], sizes = [1, 64], strides = [1, 1]} : vector<17x64xf32> to vector<1x64xf32>
    %19 = vector.extract_strided_slice %1 {offsets = [13, 0], sizes = [1, 64], strides = [1, 1]} : vector<17x64xf32> to vector<1x64xf32>
    %20 = vector.extract_strided_slice %1 {offsets = [14, 0], sizes = [1, 64], strides = [1, 1]} : vector<17x64xf32> to vector<1x64xf32>
    %21 = vector.extract_strided_slice %1 {offsets = [15, 0], sizes = [1, 64], strides = [1, 1]} : vector<17x64xf32> to vector<1x64xf32>
    %22 = vector.extract_strided_slice %1 {offsets = [16, 0], sizes = [1, 64], strides = [1, 1]} : vector<17x64xf32> to vector<1x64xf32>
    %23 = vector.extract_strided_slice %2 {offsets = [0, 0], sizes = [1, 128], strides = [1, 1]} : vector<4x128xf32> to vector<1x128xf32>
    %24 = vector.extract_strided_slice %2 {offsets = [1, 0], sizes = [1, 128], strides = [1, 1]} : vector<4x128xf32> to vector<1x128xf32>
    %25 = vector.extract_strided_slice %2 {offsets = [2, 0], sizes = [1, 128], strides = [1, 1]} : vector<4x128xf32> to vector<1x128xf32>
    %26 = vector.extract_strided_slice %2 {offsets = [3, 0], sizes = [1, 128], strides = [1, 1]} : vector<4x128xf32> to vector<1x128xf32>
    %27 = vector.extract_strided_slice %3 {offsets = [0, 0], sizes = [1, 2048], strides = [1, 1]} : vector<3x2048xf32> to vector<1x2048xf32>
    %28 = vector.extract_strided_slice %3 {offsets = [1, 0], sizes = [1, 2048], strides = [1, 1]} : vector<3x2048xf32> to vector<1x2048xf32>
    %29 = vector.extract_strided_slice %3 {offsets = [2, 0], sizes = [1, 2048], strides = [1, 1]} : vector<3x2048xf32> to vector<1x2048xf32>
    %c0_7 = arith.constant 0 : index
    %c0_8 = arith.constant 0 : index
    %c0_9 = arith.constant 0 : index
    %30 = vector.load %arg1[%c0_7, %c0_8, %c0_9] : memref<3x8x16xf32, #tpu.memory_space<vmem>>, vector<3x8x16xf32>
    %31 = vector.shape_cast %30 : vector<3x8x16xf32> to vector<24x16xf32>
    %c0_10 = arith.constant 0 : index
    %c0_11 = arith.constant 0 : index
    %c0_12 = arith.constant 0 : index
    %32 = vector.load %arg2[%c0_10, %c0_11, %c0_12] : memref<3x8x5xf32, #tpu.memory_space<vmem>>, vector<3x8x5xf32>
    %33 = vector.shape_cast %32 : vector<3x8x5xf32> to vector<24x5xf32>
    %cst = arith.constant dense<0.000000e+00> : vector<24xf32>
    %34 = vector.multi_reduction <add>, %31, %cst [1] : vector<24x16xf32> to vector<24xf32>
    %35 = vector.shape_cast %34 : vector<24xf32> to vector<24x1xf32>
    %cst_13 = arith.constant 1.600000e+01 : f32
    %36 = vector.broadcast %cst_13 : f32 to vector<24x1xf32>
    %37 = arith.divf %35, %36 : vector<24x1xf32>
    %38 = arith.mulf %31, %31 : vector<24x16xf32>
    %cst_14 = arith.constant dense<0.000000e+00> : vector<24xf32>
    %39 = vector.multi_reduction <add>, %38, %cst_14 [1] : vector<24x16xf32> to vector<24xf32>
    %40 = vector.shape_cast %39 : vector<24xf32> to vector<24x1xf32>
    %cst_15 = arith.constant 1.600000e+01 : f32
    %41 = vector.broadcast %cst_15 : f32 to vector<24x1xf32>
    %42 = arith.divf %40, %41 : vector<24x1xf32>
    %43 = arith.mulf %37, %37 : vector<24x1xf32>
    %44 = arith.subf %42, %43 : vector<24x1xf32>
    %cst_16 = arith.constant 0.000000e+00 : f32
    %45 = vector.broadcast %cst_16 : f32 to vector<24x1xf32>
    %46 = arith.maximumf %44, %45 : vector<24x1xf32>
    %47 = vector.broadcast %37 : vector<24x1xf32> to vector<24x16xf32>
    %48 = arith.subf %31, %47 : vector<24x16xf32>
    %cst_17 = arith.constant 9.99999974E-6 : f32
    %49 = vector.broadcast %cst_17 : f32 to vector<24x1xf32>
    %50 = arith.addf %46, %49 : vector<24x1xf32>
    %51 = math.rsqrt %50 : vector<24x1xf32>
    %52 = vector.broadcast %51 : vector<24x1xf32> to vector<24x16xf32>
    %53 = arith.mulf %48, %52 : vector<24x16xf32>
    %54 = vector.broadcast %4 : vector<1x16xf32> to vector<24x16xf32>
    %55 = arith.mulf %53, %54 : vector<24x16xf32>
    %56 = vector.broadcast %5 : vector<1x16xf32> to vector<24x16xf32>
    %57 = arith.addf %55, %56 : vector<24x16xf32>
    %c0_18 = arith.constant 0 : index
    %c0_19 = arith.constant 0 : index
    %58 = vector.load %arg7[%c0_18, %c0_19] : memref<16x128xf32, #tpu.memory_space<vmem>>, vector<16x128xf32>
    %cst_20 = arith.constant dense<0.000000e+00> : vector<24x128xf32>
    %59 = tpu.matmul %57, %58, %cst_20 {dimension_numbers = #tpu.dot_dimension_numbers<[1], [0], [0], [1], [0, 0, 1, 1], [], []>} : vector<24x16xf32>, vector<16x128xf32>, vector<24x128xf32> -> vector<24x128xf32>
    %60 = vector.extract_strided_slice %59 {offsets = [0, 0], sizes = [24, 64], strides = [1, 1]} : vector<24x128xf32> to vector<24x64xf32>
    %61 = vector.broadcast %6 : vector<1x64xf32> to vector<24x64xf32>
    %62 = arith.addf %60, %61 : vector<24x64xf32>
    %cst_21 = arith.constant dense<0.000000e+00> : vector<24xf32>
    %63 = vector.multi_reduction <add>, %62, %cst_21 [1] : vector<24x64xf32> to vector<24xf32>
    %64 = vector.shape_cast %63 : vector<24xf32> to vector<24x1xf32>
    %cst_22 = arith.constant 6.400000e+01 : f32
    %65 = vector.broadcast %cst_22 : f32 to vector<24x1xf32>
    %66 = arith.divf %64, %65 : vector<24x1xf32>
    %67 = arith.mulf %62, %62 : vector<24x64xf32>
    %cst_23 = arith.constant dense<0.000000e+00> : vector<24xf32>
    %68 = vector.multi_reduction <add>, %67, %cst_23 [1] : vector<24x64xf32> to vector<24xf32>
    %69 = vector.shape_cast %68 : vector<24xf32> to vector<24x1xf32>
    %cst_24 = arith.constant 6.400000e+01 : f32
    %70 = vector.broadcast %cst_24 : f32 to vector<24x1xf32>
    %71 = arith.divf %69, %70 : vector<24x1xf32>
    %72 = arith.mulf %66, %66 : vector<24x1xf32>
    %73 = arith.subf %71, %72 : vector<24x1xf32>
    %cst_25 = arith.constant 0.000000e+00 : f32
    %74 = vector.broadcast %cst_25 : f32 to vector<24x1xf32>
    %75 = arith.maximumf %73, %74 : vector<24x1xf32>
    %76 = vector.broadcast %66 : vector<24x1xf32> to vector<24x64xf32>
    %77 = arith.subf %62, %76 : vector<24x64xf32>
    %cst_26 = arith.constant 9.99999974E-6 : f32
    %78 = vector.broadcast %cst_26 : f32 to vector<24x1xf32>
    %79 = arith.addf %75, %78 : vector<24x1xf32>
    %80 = math.rsqrt %79 : vector<24x1xf32>
    %81 = vector.broadcast %80 : vector<24x1xf32> to vector<24x64xf32>
    %82 = arith.mulf %77, %81 : vector<24x64xf32>
    %83 = vector.broadcast %7 : vector<1x64xf32> to vector<24x64xf32>
    %84 = arith.mulf %82, %83 : vector<24x64xf32>
    %85 = vector.broadcast %8 : vector<1x64xf32> to vector<24x64xf32>
    %86 = arith.addf %84, %85 : vector<24x64xf32>
    %cst_27 = arith.constant 5.000000e-01 : f32
    %87 = vector.broadcast %cst_27 : f32 to vector<24x64xf32>
    %88 = arith.mulf %87, %86 : vector<24x64xf32>
    %cst_28 = arith.constant 0.707106769 : f32
    %89 = vector.broadcast %cst_28 : f32 to vector<24x64xf32>
    %90 = arith.mulf %86, %89 : vector<24x64xf32>
    %91 = math.absf %90 : vector<24x64xf32>
    %cst_29 = arith.constant 0.327591091 : f32
    %92 = vector.broadcast %cst_29 : f32 to vector<24x64xf32>
    %93 = arith.mulf %92, %91 : vector<24x64xf32>
    %cst_30 = arith.constant 1.000000e+00 : f32
    %94 = vector.broadcast %cst_30 : f32 to vector<24x64xf32>
    %95 = arith.addf %94, %93 : vector<24x64xf32>
    %cst_31 = arith.constant 1.000000e+00 : f32
    %96 = vector.broadcast %cst_31 : f32 to vector<24x64xf32>
    %97 = arith.divf %96, %95 : vector<24x64xf32>
    %cst_32 = arith.constant 1.06140542 : f32
    %98 = vector.broadcast %cst_32 : f32 to vector<24x64xf32>
    %99 = arith.mulf %98, %97 : vector<24x64xf32>
    %cst_33 = arith.constant -1.45315206 : f32
    %100 = vector.broadcast %cst_33 : f32 to vector<24x64xf32>
    %101 = arith.addf %99, %100 : vector<24x64xf32>
    %102 = arith.mulf %101, %97 : vector<24x64xf32>
    %cst_34 = arith.constant 1.42141378 : f32
    %103 = vector.broadcast %cst_34 : f32 to vector<24x64xf32>
    %104 = arith.addf %102, %103 : vector<24x64xf32>
    %105 = arith.mulf %104, %97 : vector<24x64xf32>
    %cst_35 = arith.constant -0.284496725 : f32
    %106 = vector.broadcast %cst_35 : f32 to vector<24x64xf32>
    %107 = arith.addf %105, %106 : vector<24x64xf32>
    %108 = arith.mulf %107, %97 : vector<24x64xf32>
    %cst_36 = arith.constant 0.254829586 : f32
    %109 = vector.broadcast %cst_36 : f32 to vector<24x64xf32>
    %110 = arith.addf %108, %109 : vector<24x64xf32>
    %111 = arith.mulf %110, %97 : vector<24x64xf32>
    %cst_37 = arith.constant 0.000000e+00 : f32
    %112 = vector.broadcast %cst_37 : f32 to vector<24x64xf32>
    %113 = arith.subf %112, %91 : vector<24x64xf32>
    %114 = arith.mulf %113, %91 : vector<24x64xf32>
    %115 = math.exp %114 : vector<24x64xf32>
    %116 = arith.mulf %111, %115 : vector<24x64xf32>
    %cst_38 = arith.constant 1.000000e+00 : f32
    %117 = vector.broadcast %cst_38 : f32 to vector<24x64xf32>
    %118 = arith.subf %117, %116 : vector<24x64xf32>
    %cst_39 = arith.constant 0.000000e+00 : f32
    %119 = vector.broadcast %cst_39 : f32 to vector<24x64xf32>
    %120 = arith.cmpf oge, %90, %119 : vector<24x64xf32>
    %cst_40 = arith.constant 0.000000e+00 : f32
    %121 = vector.broadcast %cst_40 : f32 to vector<24x64xf32>
    %122 = arith.subf %121, %118 : vector<24x64xf32>
    %123 = arith.select %120, %118, %122 : vector<24x64xi1>, vector<24x64xf32>
    %cst_41 = arith.constant 1.000000e+00 : f32
    %124 = vector.broadcast %cst_41 : f32 to vector<24x64xf32>
    %125 = arith.addf %124, %123 : vector<24x64xf32>
    %126 = arith.mulf %88, %125 : vector<24x64xf32>
    %127 = vector.extract_strided_slice %59 {offsets = [0, 64], sizes = [24, 64], strides = [1, 1]} : vector<24x128xf32> to vector<24x64xf32>
    %c0_42 = arith.constant 0 : index
    %c0_43 = arith.constant 0 : index
    %128 = vector.load %arg8[%c0_42, %c0_43] : memref<5x64xf32, #tpu.memory_space<vmem>>, vector<5x64xf32>
    %cst_44 = arith.constant dense<0.000000e+00> : vector<24x64xf32>
    %129 = tpu.matmul %33, %128, %cst_44 {dimension_numbers = #tpu.dot_dimension_numbers<[1], [0], [0], [1], [0, 0, 1, 1], [], []>} : vector<24x5xf32>, vector<5x64xf32>, vector<24x64xf32> -> vector<24x64xf32>
    %130 = arith.addf %127, %129 : vector<24x64xf32>
    %131 = vector.broadcast %9 : vector<1x64xf32> to vector<24x64xf32>
    %132 = arith.addf %130, %131 : vector<24x64xf32>
    %cst_45 = arith.constant dense<0.000000e+00> : vector<24xf32>
    %133 = vector.multi_reduction <add>, %132, %cst_45 [1] : vector<24x64xf32> to vector<24xf32>
    %134 = vector.shape_cast %133 : vector<24xf32> to vector<24x1xf32>
    %cst_46 = arith.constant 6.400000e+01 : f32
    %135 = vector.broadcast %cst_46 : f32 to vector<24x1xf32>
    %136 = arith.divf %134, %135 : vector<24x1xf32>
    %137 = arith.mulf %132, %132 : vector<24x64xf32>
    %cst_47 = arith.constant dense<0.000000e+00> : vector<24xf32>
    %138 = vector.multi_reduction <add>, %137, %cst_47 [1] : vector<24x64xf32> to vector<24xf32>
    %139 = vector.shape_cast %138 : vector<24xf32> to vector<24x1xf32>
    %cst_48 = arith.constant 6.400000e+01 : f32
    %140 = vector.broadcast %cst_48 : f32 to vector<24x1xf32>
    %141 = arith.divf %139, %140 : vector<24x1xf32>
    %142 = arith.mulf %136, %136 : vector<24x1xf32>
    %143 = arith.subf %141, %142 : vector<24x1xf32>
    %cst_49 = arith.constant 0.000000e+00 : f32
    %144 = vector.broadcast %cst_49 : f32 to vector<24x1xf32>
    %145 = arith.maximumf %143, %144 : vector<24x1xf32>
    %146 = vector.broadcast %136 : vector<24x1xf32> to vector<24x64xf32>
    %147 = arith.subf %132, %146 : vector<24x64xf32>
    %cst_50 = arith.constant 9.99999974E-6 : f32
    %148 = vector.broadcast %cst_50 : f32 to vector<24x1xf32>
    %149 = arith.addf %145, %148 : vector<24x1xf32>
    %150 = math.rsqrt %149 : vector<24x1xf32>
    %151 = vector.broadcast %150 : vector<24x1xf32> to vector<24x64xf32>
    %152 = arith.mulf %147, %151 : vector<24x64xf32>
    %153 = vector.broadcast %10 : vector<1x64xf32> to vector<24x64xf32>
    %154 = arith.mulf %152, %153 : vector<24x64xf32>
    %155 = vector.broadcast %11 : vector<1x64xf32> to vector<24x64xf32>
    %156 = arith.addf %154, %155 : vector<24x64xf32>
    %cst_51 = arith.constant 5.000000e-01 : f32
    %157 = vector.broadcast %cst_51 : f32 to vector<24x64xf32>
    %158 = arith.mulf %157, %156 : vector<24x64xf32>
    %cst_52 = arith.constant 0.707106769 : f32
    %159 = vector.broadcast %cst_52 : f32 to vector<24x64xf32>
    %160 = arith.mulf %156, %159 : vector<24x64xf32>
    %161 = math.absf %160 : vector<24x64xf32>
    %cst_53 = arith.constant 0.327591091 : f32
    %162 = vector.broadcast %cst_53 : f32 to vector<24x64xf32>
    %163 = arith.mulf %162, %161 : vector<24x64xf32>
    %cst_54 = arith.constant 1.000000e+00 : f32
    %164 = vector.broadcast %cst_54 : f32 to vector<24x64xf32>
    %165 = arith.addf %164, %163 : vector<24x64xf32>
    %cst_55 = arith.constant 1.000000e+00 : f32
    %166 = vector.broadcast %cst_55 : f32 to vector<24x64xf32>
    %167 = arith.divf %166, %165 : vector<24x64xf32>
    %cst_56 = arith.constant 1.06140542 : f32
    %168 = vector.broadcast %cst_56 : f32 to vector<24x64xf32>
    %169 = arith.mulf %168, %167 : vector<24x64xf32>
    %cst_57 = arith.constant -1.45315206 : f32
    %170 = vector.broadcast %cst_57 : f32 to vector<24x64xf32>
    %171 = arith.addf %169, %170 : vector<24x64xf32>
    %172 = arith.mulf %171, %167 : vector<24x64xf32>
    %cst_58 = arith.constant 1.42141378 : f32
    %173 = vector.broadcast %cst_58 : f32 to vector<24x64xf32>
    %174 = arith.addf %172, %173 : vector<24x64xf32>
    %175 = arith.mulf %174, %167 : vector<24x64xf32>
    %cst_59 = arith.constant -0.284496725 : f32
    %176 = vector.broadcast %cst_59 : f32 to vector<24x64xf32>
    %177 = arith.addf %175, %176 : vector<24x64xf32>
    %178 = arith.mulf %177, %167 : vector<24x64xf32>
    %cst_60 = arith.constant 0.254829586 : f32
    %179 = vector.broadcast %cst_60 : f32 to vector<24x64xf32>
    %180 = arith.addf %178, %179 : vector<24x64xf32>
    %181 = arith.mulf %180, %167 : vector<24x64xf32>
    %cst_61 = arith.constant 0.000000e+00 : f32
    %182 = vector.broadcast %cst_61 : f32 to vector<24x64xf32>
    %183 = arith.subf %182, %161 : vector<24x64xf32>
    %184 = arith.mulf %183, %161 : vector<24x64xf32>
    %185 = math.exp %184 : vector<24x64xf32>
    %186 = arith.mulf %181, %185 : vector<24x64xf32>
    %cst_62 = arith.constant 1.000000e+00 : f32
    %187 = vector.broadcast %cst_62 : f32 to vector<24x64xf32>
    %188 = arith.subf %187, %186 : vector<24x64xf32>
    %cst_63 = arith.constant 0.000000e+00 : f32
    %189 = vector.broadcast %cst_63 : f32 to vector<24x64xf32>
    %190 = arith.cmpf oge, %160, %189 : vector<24x64xf32>
    %cst_64 = arith.constant 0.000000e+00 : f32
    %191 = vector.broadcast %cst_64 : f32 to vector<24x64xf32>
    %192 = arith.subf %191, %188 : vector<24x64xf32>
    %193 = arith.select %190, %188, %192 : vector<24x64xi1>, vector<24x64xf32>
    %cst_65 = arith.constant 1.000000e+00 : f32
    %194 = vector.broadcast %cst_65 : f32 to vector<24x64xf32>
    %195 = arith.addf %194, %193 : vector<24x64xf32>
    %196 = arith.mulf %158, %195 : vector<24x64xf32>
    %c0_66 = arith.constant 0 : index
    %c0_67 = arith.constant 0 : index
    %197 = vector.load %arg9[%c0_66, %c0_67] : memref<64x128xf32, #tpu.memory_space<vmem>>, vector<64x128xf32>
    %cst_68 = arith.constant dense<0.000000e+00> : vector<24x128xf32>
    %198 = tpu.matmul %126, %197, %cst_68 {dimension_numbers = #tpu.dot_dimension_numbers<[1], [0], [0], [1], [0, 0, 1, 1], [], []>} : vector<24x64xf32>, vector<64x128xf32>, vector<24x128xf32> -> vector<24x128xf32>
    %199 = vector.broadcast %23 : vector<1x128xf32> to vector<24x128xf32>
    %200 = arith.addf %198, %199 : vector<24x128xf32>
    %c0_69 = arith.constant 0 : index
    %c0_70 = arith.constant 0 : index
    %201 = vector.load %arg10[%c0_69, %c0_70] : memref<64x64xf32, #tpu.memory_space<vmem>>, vector<64x64xf32>
    %cst_71 = arith.constant dense<0.000000e+00> : vector<24x64xf32>
    %202 = tpu.matmul %196, %201, %cst_71 {dimension_numbers = #tpu.dot_dimension_numbers<[1], [0], [0], [1], [0, 0, 1, 1], [], []>} : vector<24x64xf32>, vector<64x64xf32>, vector<24x64xf32> -> vector<24x64xf32>
    %203 = vector.broadcast %12 : vector<1x64xf32> to vector<24x64xf32>
    %204 = arith.addf %202, %203 : vector<24x64xf32>
    %205 = vector.extract_strided_slice %200 {offsets = [0, 0], sizes = [24, 64], strides = [1, 1]} : vector<24x128xf32> to vector<24x64xf32>
    %206 = vector.shape_cast %205 : vector<24x64xf32> to vector<3x8x64xf32>
    %207 = vector.extract_strided_slice %200 {offsets = [0, 64], sizes = [24, 64], strides = [1, 1]} : vector<24x128xf32> to vector<24x64xf32>
    %208 = vector.shape_cast %207 : vector<24x64xf32> to vector<3x8x64xf32>
    %209 = vector.shape_cast %204 : vector<24x64xf32> to vector<3x8x64xf32>
    %210 = vector.extract_strided_slice %206 {offsets = [0, 0, 0], sizes = [1, 8, 64], strides = [1, 1, 1]} : vector<3x8x64xf32> to vector<1x8x64xf32>
    %211 = vector.shape_cast %210 : vector<1x8x64xf32> to vector<8x64xf32>
    %212 = vector.extract_strided_slice %206 {offsets = [0, 0, 0], sizes = [1, 8, 64], strides = [1, 1, 1]} : vector<3x8x64xf32> to vector<1x8x64xf32>
    %213 = vector.shape_cast %212 : vector<1x8x64xf32> to vector<8x64xf32>
    %214 = vector.extract_strided_slice %206 {offsets = [1, 0, 0], sizes = [1, 8, 64], strides = [1, 1, 1]} : vector<3x8x64xf32> to vector<1x8x64xf32>
    %215 = vector.shape_cast %214 : vector<1x8x64xf32> to vector<8x64xf32>
    %216 = vector.extract_strided_slice %206 {offsets = [1, 0, 0], sizes = [1, 8, 64], strides = [1, 1, 1]} : vector<3x8x64xf32> to vector<1x8x64xf32>
    %217 = vector.shape_cast %216 : vector<1x8x64xf32> to vector<8x64xf32>
    %218 = vector.extract_strided_slice %206 {offsets = [2, 0, 0], sizes = [1, 8, 64], strides = [1, 1, 1]} : vector<3x8x64xf32> to vector<1x8x64xf32>
    %219 = vector.shape_cast %218 : vector<1x8x64xf32> to vector<8x64xf32>
    %220 = vector.extract_strided_slice %206 {offsets = [2, 0, 0], sizes = [1, 8, 64], strides = [1, 1, 1]} : vector<3x8x64xf32> to vector<1x8x64xf32>
    %221 = vector.shape_cast %220 : vector<1x8x64xf32> to vector<8x64xf32>
    %222 = tpu.concatenate %211, %213, %215, %217, %219, %221 in 1 : vector<8x64xf32>, vector<8x64xf32>, vector<8x64xf32>, vector<8x64xf32>, vector<8x64xf32>, vector<8x64xf32> -> vector<8x384xf32>
    %223 = vector.extract_strided_slice %208 {offsets = [1, 0, 0], sizes = [1, 8, 64], strides = [1, 1, 1]} : vector<3x8x64xf32> to vector<1x8x64xf32>
    %224 = vector.shape_cast %223 : vector<1x8x64xf32> to vector<8x64xf32>
    %225 = vector.extract_strided_slice %208 {offsets = [2, 0, 0], sizes = [1, 8, 64], strides = [1, 1, 1]} : vector<3x8x64xf32> to vector<1x8x64xf32>
    %226 = vector.shape_cast %225 : vector<1x8x64xf32> to vector<8x64xf32>
    %227 = vector.extract_strided_slice %208 {offsets = [0, 0, 0], sizes = [1, 8, 64], strides = [1, 1, 1]} : vector<3x8x64xf32> to vector<1x8x64xf32>
    %228 = vector.shape_cast %227 : vector<1x8x64xf32> to vector<8x64xf32>
    %229 = vector.extract_strided_slice %208 {offsets = [2, 0, 0], sizes = [1, 8, 64], strides = [1, 1, 1]} : vector<3x8x64xf32> to vector<1x8x64xf32>
    %230 = vector.shape_cast %229 : vector<1x8x64xf32> to vector<8x64xf32>
    %231 = vector.extract_strided_slice %208 {offsets = [0, 0, 0], sizes = [1, 8, 64], strides = [1, 1, 1]} : vector<3x8x64xf32> to vector<1x8x64xf32>
    %232 = vector.shape_cast %231 : vector<1x8x64xf32> to vector<8x64xf32>
    %233 = vector.extract_strided_slice %208 {offsets = [1, 0, 0], sizes = [1, 8, 64], strides = [1, 1, 1]} : vector<3x8x64xf32> to vector<1x8x64xf32>
    %234 = vector.shape_cast %233 : vector<1x8x64xf32> to vector<8x64xf32>
    %235 = tpu.concatenate %224, %226, %228, %230, %232, %234 in 1 : vector<8x64xf32>, vector<8x64xf32>, vector<8x64xf32>, vector<8x64xf32>, vector<8x64xf32>, vector<8x64xf32> -> vector<8x384xf32>
    %236 = vector.extract_strided_slice %209 {offsets = [1, 0, 0], sizes = [1, 8, 64], strides = [1, 1, 1]} : vector<3x8x64xf32> to vector<1x8x64xf32>
    %237 = vector.shape_cast %236 : vector<1x8x64xf32> to vector<8x64xf32>
    %238 = vector.extract_strided_slice %209 {offsets = [2, 0, 0], sizes = [1, 8, 64], strides = [1, 1, 1]} : vector<3x8x64xf32> to vector<1x8x64xf32>
    %239 = vector.shape_cast %238 : vector<1x8x64xf32> to vector<8x64xf32>
    %240 = vector.extract_strided_slice %209 {offsets = [0, 0, 0], sizes = [1, 8, 64], strides = [1, 1, 1]} : vector<3x8x64xf32> to vector<1x8x64xf32>
    %241 = vector.shape_cast %240 : vector<1x8x64xf32> to vector<8x64xf32>
    %242 = vector.extract_strided_slice %209 {offsets = [2, 0, 0], sizes = [1, 8, 64], strides = [1, 1, 1]} : vector<3x8x64xf32> to vector<1x8x64xf32>
    %243 = vector.shape_cast %242 : vector<1x8x64xf32> to vector<8x64xf32>
    %244 = vector.extract_strided_slice %209 {offsets = [0, 0, 0], sizes = [1, 8, 64], strides = [1, 1, 1]} : vector<3x8x64xf32> to vector<1x8x64xf32>
    %245 = vector.shape_cast %244 : vector<1x8x64xf32> to vector<8x64xf32>
    %246 = vector.extract_strided_slice %209 {offsets = [1, 0, 0], sizes = [1, 8, 64], strides = [1, 1, 1]} : vector<3x8x64xf32> to vector<1x8x64xf32>
    %247 = vector.shape_cast %246 : vector<1x8x64xf32> to vector<8x64xf32>
    %248 = tpu.concatenate %237, %239, %241, %243, %245, %247 in 1 : vector<8x64xf32>, vector<8x64xf32>, vector<8x64xf32>, vector<8x64xf32>, vector<8x64xf32>, vector<8x64xf32> -> vector<8x384xf32>
    %249 = arith.mulf %222, %235 : vector<8x384xf32>
    %c0_72 = arith.constant 0 : index
    %c0_73 = arith.constant 0 : index
    %250 = vector.load %arg17[%c0_72, %c0_73] : memref<384x24xf32, #tpu.memory_space<vmem>>, vector<384x24xf32>
    %cst_74 = arith.constant dense<0.000000e+00> : vector<8x24xf32>
    %251 = tpu.matmul %249, %250, %cst_74 {dimension_numbers = #tpu.dot_dimension_numbers<[1], [0], [0], [1], [0, 0, 1, 1], [], []>} : vector<8x384xf32>, vector<384x24xf32>, vector<8x24xf32> -> vector<8x24xf32>
    %252 = vector.extract_strided_slice %251 {offsets = [0, 0], sizes = [8, 4], strides = [1, 1]} : vector<8x24xf32> to vector<8x4xf32>
    %253 = vector.extract_strided_slice %251 {offsets = [0, 4], sizes = [8, 4], strides = [1, 1]} : vector<8x24xf32> to vector<8x4xf32>
    %254 = arith.maximumf %252, %253 : vector<8x4xf32>
    %255 = arith.subf %252, %254 : vector<8x4xf32>
    %256 = math.exp %255 : vector<8x4xf32>
    %257 = arith.subf %253, %254 : vector<8x4xf32>
    %258 = math.exp %257 : vector<8x4xf32>
    %259 = arith.addf %256, %258 : vector<8x4xf32>
    %260 = tpu.reciprocal %259 {approx = true} : vector<8x4xf32> -> vector<8x4xf32>
    %261 = arith.mulf %256, %260 : vector<8x4xf32>
    %262 = arith.mulf %258, %260 : vector<8x4xf32>
    %263 = vector.extract_strided_slice %251 {offsets = [0, 8], sizes = [8, 4], strides = [1, 1]} : vector<8x24xf32> to vector<8x4xf32>
    %264 = vector.extract_strided_slice %251 {offsets = [0, 12], sizes = [8, 4], strides = [1, 1]} : vector<8x24xf32> to vector<8x4xf32>
    %265 = arith.maximumf %263, %264 : vector<8x4xf32>
    %266 = arith.subf %263, %265 : vector<8x4xf32>
    %267 = math.exp %266 : vector<8x4xf32>
    %268 = arith.subf %264, %265 : vector<8x4xf32>
    %269 = math.exp %268 : vector<8x4xf32>
    %270 = arith.addf %267, %269 : vector<8x4xf32>
    %271 = tpu.reciprocal %270 {approx = true} : vector<8x4xf32> -> vector<8x4xf32>
    %272 = arith.mulf %267, %271 : vector<8x4xf32>
    %273 = arith.mulf %269, %271 : vector<8x4xf32>
    %274 = vector.extract_strided_slice %251 {offsets = [0, 16], sizes = [8, 4], strides = [1, 1]} : vector<8x24xf32> to vector<8x4xf32>
    %275 = vector.extract_strided_slice %251 {offsets = [0, 20], sizes = [8, 4], strides = [1, 1]} : vector<8x24xf32> to vector<8x4xf32>
    %276 = arith.maximumf %274, %275 : vector<8x4xf32>
    %277 = arith.subf %274, %276 : vector<8x4xf32>
    %278 = math.exp %277 : vector<8x4xf32>
    %279 = arith.subf %275, %276 : vector<8x4xf32>
    %280 = math.exp %279 : vector<8x4xf32>
    %281 = arith.addf %278, %280 : vector<8x4xf32>
    %282 = tpu.reciprocal %281 {approx = true} : vector<8x4xf32> -> vector<8x4xf32>
    %283 = arith.mulf %278, %282 : vector<8x4xf32>
    %284 = arith.mulf %280, %282 : vector<8x4xf32>
    %285 = tpu.concatenate %261, %262, %272, %273, %283, %284 in 1 : vector<8x4xf32>, vector<8x4xf32>, vector<8x4xf32>, vector<8x4xf32>, vector<8x4xf32>, vector<8x4xf32> -> vector<8x24xf32>
    %c0_75 = arith.constant 0 : index
    %c0_76 = arith.constant 0 : index
    %286 = vector.load %arg18[%c0_75, %c0_76] : memref<24x384xf32, #tpu.memory_space<vmem>>, vector<24x384xf32>
    %cst_77 = arith.constant dense<0.000000e+00> : vector<8x384xf32>
    %287 = tpu.matmul %285, %286, %cst_77 {dimension_numbers = #tpu.dot_dimension_numbers<[1], [0], [0], [1], [0, 0, 1, 1], [], []>} : vector<8x24xf32>, vector<24x384xf32>, vector<8x384xf32> -> vector<8x384xf32>
    %288 = arith.mulf %287, %248 : vector<8x384xf32>
    %289 = vector.extract_strided_slice %288 {offsets = [0, 0], sizes = [8, 64], strides = [1, 1]} : vector<8x384xf32> to vector<8x64xf32>
    %290 = vector.extract_strided_slice %288 {offsets = [0, 64], sizes = [8, 64], strides = [1, 1]} : vector<8x384xf32> to vector<8x64xf32>
    %291 = arith.addf %289, %290 : vector<8x64xf32>
    %292 = vector.extract_strided_slice %288 {offsets = [0, 128], sizes = [8, 64], strides = [1, 1]} : vector<8x384xf32> to vector<8x64xf32>
    %293 = vector.extract_strided_slice %288 {offsets = [0, 192], sizes = [8, 64], strides = [1, 1]} : vector<8x384xf32> to vector<8x64xf32>
    %294 = arith.addf %292, %293 : vector<8x64xf32>
    %295 = vector.extract_strided_slice %288 {offsets = [0, 256], sizes = [8, 64], strides = [1, 1]} : vector<8x384xf32> to vector<8x64xf32>
    %296 = vector.extract_strided_slice %288 {offsets = [0, 320], sizes = [8, 64], strides = [1, 1]} : vector<8x384xf32> to vector<8x64xf32>
    %297 = arith.addf %295, %296 : vector<8x64xf32>
    %298 = tpu.concatenate %291, %294, %297 in 0 : vector<8x64xf32>, vector<8x64xf32>, vector<8x64xf32> -> vector<24x64xf32>
    %299 = arith.addf %196, %298 : vector<24x64xf32>
    %cst_78 = arith.constant dense<0.000000e+00> : vector<24xf32>
    %300 = vector.multi_reduction <add>, %299, %cst_78 [1] : vector<24x64xf32> to vector<24xf32>
    %301 = vector.shape_cast %300 : vector<24xf32> to vector<24x1xf32>
    %cst_79 = arith.constant 6.400000e+01 : f32
    %302 = vector.broadcast %cst_79 : f32 to vector<24x1xf32>
    %303 = arith.divf %301, %302 : vector<24x1xf32>
    %304 = arith.mulf %299, %299 : vector<24x64xf32>
    %cst_80 = arith.constant dense<0.000000e+00> : vector<24xf32>
    %305 = vector.multi_reduction <add>, %304, %cst_80 [1] : vector<24x64xf32> to vector<24xf32>
    %306 = vector.shape_cast %305 : vector<24xf32> to vector<24x1xf32>
    %cst_81 = arith.constant 6.400000e+01 : f32
    %307 = vector.broadcast %cst_81 : f32 to vector<24x1xf32>
    %308 = arith.divf %306, %307 : vector<24x1xf32>
    %309 = arith.mulf %303, %303 : vector<24x1xf32>
    %310 = arith.subf %308, %309 : vector<24x1xf32>
    %cst_82 = arith.constant 0.000000e+00 : f32
    %311 = vector.broadcast %cst_82 : f32 to vector<24x1xf32>
    %312 = arith.maximumf %310, %311 : vector<24x1xf32>
    %313 = vector.broadcast %303 : vector<24x1xf32> to vector<24x64xf32>
    %314 = arith.subf %299, %313 : vector<24x64xf32>
    %cst_83 = arith.constant 9.99999974E-6 : f32
    %315 = vector.broadcast %cst_83 : f32 to vector<24x1xf32>
    %316 = arith.addf %312, %315 : vector<24x1xf32>
    %317 = math.rsqrt %316 : vector<24x1xf32>
    %318 = vector.broadcast %317 : vector<24x1xf32> to vector<24x64xf32>
    %319 = arith.mulf %314, %318 : vector<24x64xf32>
    %320 = vector.broadcast %13 : vector<1x64xf32> to vector<24x64xf32>
    %321 = arith.mulf %319, %320 : vector<24x64xf32>
    %322 = vector.broadcast %14 : vector<1x64xf32> to vector<24x64xf32>
    %323 = arith.addf %321, %322 : vector<24x64xf32>
    %324 = arith.truncf %323 : vector<24x64xf32> to vector<24x64xbf16>
    %c0_84 = arith.constant 0 : index
    %c0_85 = arith.constant 0 : index
    %325 = vector.load %arg11[%c0_84, %c0_85] : memref<64x2048xbf16, #tpu.memory_space<vmem>>, vector<64x2048xbf16>
    %cst_86 = arith.constant dense<0.000000e+00> : vector<24x2048xf32>
    %326 = tpu.matmul %324, %325, %cst_86 {dimension_numbers = #tpu.dot_dimension_numbers<[1], [0], [0], [1], [0, 0, 1, 1], [], []>} : vector<24x64xbf16>, vector<64x2048xbf16>, vector<24x2048xf32> -> vector<24x2048xf32>
    %327 = vector.broadcast %27 : vector<1x2048xf32> to vector<24x2048xf32>
    %328 = arith.addf %326, %327 : vector<24x2048xf32>
    %cst_87 = arith.constant dense<0.000000e+00> : vector<24xf32>
    %329 = vector.multi_reduction <add>, %328, %cst_87 [1] : vector<24x2048xf32> to vector<24xf32>
    %330 = vector.shape_cast %329 : vector<24xf32> to vector<24x1xf32>
    %cst_88 = arith.constant 2.048000e+03 : f32
    %331 = vector.broadcast %cst_88 : f32 to vector<24x1xf32>
    %332 = arith.divf %330, %331 : vector<24x1xf32>
    %333 = arith.mulf %328, %328 : vector<24x2048xf32>
    %cst_89 = arith.constant dense<0.000000e+00> : vector<24xf32>
    %334 = vector.multi_reduction <add>, %333, %cst_89 [1] : vector<24x2048xf32> to vector<24xf32>
    %335 = vector.shape_cast %334 : vector<24xf32> to vector<24x1xf32>
    %cst_90 = arith.constant 2.048000e+03 : f32
    %336 = vector.broadcast %cst_90 : f32 to vector<24x1xf32>
    %337 = arith.divf %335, %336 : vector<24x1xf32>
    %338 = arith.mulf %332, %332 : vector<24x1xf32>
    %339 = arith.subf %337, %338 : vector<24x1xf32>
    %cst_91 = arith.constant 0.000000e+00 : f32
    %340 = vector.broadcast %cst_91 : f32 to vector<24x1xf32>
    %341 = arith.maximumf %339, %340 : vector<24x1xf32>
    %cst_92 = arith.constant 9.99999974E-6 : f32
    %342 = vector.broadcast %cst_92 : f32 to vector<24x1xf32>
    %343 = arith.addf %341, %342 : vector<24x1xf32>
    %344 = math.rsqrt %343 : vector<24x1xf32>
    %345 = arith.truncf %328 : vector<24x2048xf32> to vector<24x2048xbf16>
    %346 = arith.truncf %332 : vector<24x1xf32> to vector<24x1xbf16>
    %347 = vector.broadcast %346 : vector<24x1xbf16> to vector<24x2048xbf16>
    %348 = arith.subf %345, %347 : vector<24x2048xbf16>
    %349 = arith.truncf %344 : vector<24x1xf32> to vector<24x1xbf16>
    %350 = vector.broadcast %349 : vector<24x1xbf16> to vector<24x2048xbf16>
    %351 = arith.mulf %348, %350 : vector<24x2048xbf16>
    %352 = arith.truncf %28 : vector<1x2048xf32> to vector<1x2048xbf16>
    %353 = vector.broadcast %352 : vector<1x2048xbf16> to vector<24x2048xbf16>
    %354 = arith.mulf %351, %353 : vector<24x2048xbf16>
    %355 = arith.truncf %29 : vector<1x2048xf32> to vector<1x2048xbf16>
    %356 = vector.broadcast %355 : vector<1x2048xbf16> to vector<24x2048xbf16>
    %357 = arith.addf %354, %356 : vector<24x2048xbf16>
    %cst_93 = arith.constant 5.000000e-01 : bf16
    %358 = vector.broadcast %cst_93 : bf16 to vector<24x2048xbf16>
    %359 = arith.mulf %358, %357 : vector<24x2048xbf16>
    %cst_94 = arith.constant 4.467770e-02 : bf16
    %360 = vector.broadcast %cst_94 : bf16 to vector<24x2048xbf16>
    %361 = arith.mulf %360, %357 : vector<24x2048xbf16>
    %362 = arith.mulf %361, %357 : vector<24x2048xbf16>
    %363 = arith.mulf %362, %357 : vector<24x2048xbf16>
    %364 = arith.addf %357, %363 : vector<24x2048xbf16>
    %cst_95 = arith.constant 7.968750e-01 : bf16
    %365 = vector.broadcast %cst_95 : bf16 to vector<24x2048xbf16>
    %366 = arith.mulf %365, %364 : vector<24x2048xbf16>
    %367 = math.tanh %366 : vector<24x2048xbf16>
    %cst_96 = arith.constant 1.000000e+00 : bf16
    %368 = vector.broadcast %cst_96 : bf16 to vector<24x2048xbf16>
    %369 = arith.addf %368, %367 : vector<24x2048xbf16>
    %370 = arith.mulf %359, %369 : vector<24x2048xbf16>
    %c0_97 = arith.constant 0 : index
    %c0_98 = arith.constant 0 : index
    %371 = vector.load %arg12[%c0_97, %c0_98] : memref<2048x64xbf16, #tpu.memory_space<vmem>>, vector<2048x64xbf16>
    %cst_99 = arith.constant dense<0.000000e+00> : vector<24x64xf32>
    %372 = tpu.matmul %370, %371, %cst_99 {dimension_numbers = #tpu.dot_dimension_numbers<[1], [0], [0], [1], [0, 0, 1, 1], [], []>} : vector<24x2048xbf16>, vector<2048x64xbf16>, vector<24x64xf32> -> vector<24x64xf32>
    %373 = vector.broadcast %15 : vector<1x64xf32> to vector<24x64xf32>
    %374 = arith.addf %372, %373 : vector<24x64xf32>
    %375 = arith.addf %323, %374 : vector<24x64xf32>
    %cst_100 = arith.constant dense<0.000000e+00> : vector<24xf32>
    %376 = vector.multi_reduction <add>, %375, %cst_100 [1] : vector<24x64xf32> to vector<24xf32>
    %377 = vector.shape_cast %376 : vector<24xf32> to vector<24x1xf32>
    %cst_101 = arith.constant 6.400000e+01 : f32
    %378 = vector.broadcast %cst_101 : f32 to vector<24x1xf32>
    %379 = arith.divf %377, %378 : vector<24x1xf32>
    %380 = arith.mulf %375, %375 : vector<24x64xf32>
    %cst_102 = arith.constant dense<0.000000e+00> : vector<24xf32>
    %381 = vector.multi_reduction <add>, %380, %cst_102 [1] : vector<24x64xf32> to vector<24xf32>
    %382 = vector.shape_cast %381 : vector<24xf32> to vector<24x1xf32>
    %cst_103 = arith.constant 6.400000e+01 : f32
    %383 = vector.broadcast %cst_103 : f32 to vector<24x1xf32>
    %384 = arith.divf %382, %383 : vector<24x1xf32>
    %385 = arith.mulf %379, %379 : vector<24x1xf32>
    %386 = arith.subf %384, %385 : vector<24x1xf32>
    %cst_104 = arith.constant 0.000000e+00 : f32
    %387 = vector.broadcast %cst_104 : f32 to vector<24x1xf32>
    %388 = arith.maximumf %386, %387 : vector<24x1xf32>
    %389 = vector.broadcast %379 : vector<24x1xf32> to vector<24x64xf32>
    %390 = arith.subf %375, %389 : vector<24x64xf32>
    %cst_105 = arith.constant 9.99999974E-6 : f32
    %391 = vector.broadcast %cst_105 : f32 to vector<24x1xf32>
    %392 = arith.addf %388, %391 : vector<24x1xf32>
    %393 = math.rsqrt %392 : vector<24x1xf32>
    %394 = vector.broadcast %393 : vector<24x1xf32> to vector<24x64xf32>
    %395 = arith.mulf %390, %394 : vector<24x64xf32>
    %396 = vector.broadcast %16 : vector<1x64xf32> to vector<24x64xf32>
    %397 = arith.mulf %395, %396 : vector<24x64xf32>
    %398 = vector.broadcast %17 : vector<1x64xf32> to vector<24x64xf32>
    %399 = arith.addf %397, %398 : vector<24x64xf32>
    %c0_106 = arith.constant 0 : index
    %c0_107 = arith.constant 0 : index
    %400 = vector.load %arg13[%c0_106, %c0_107] : memref<64x128xf32, #tpu.memory_space<vmem>>, vector<64x128xf32>
    %cst_108 = arith.constant dense<0.000000e+00> : vector<24x128xf32>
    %401 = tpu.matmul %126, %400, %cst_108 {dimension_numbers = #tpu.dot_dimension_numbers<[1], [0], [0], [1], [0, 0, 1, 1], [], []>} : vector<24x64xf32>, vector<64x128xf32>, vector<24x128xf32> -> vector<24x128xf32>
    %c0_109 = arith.constant 0 : index
    %c0_110 = arith.constant 0 : index
    %402 = vector.load %arg14[%c0_109, %c0_110] : memref<64x128xf32, #tpu.memory_space<vmem>>, vector<64x128xf32>
    %cst_111 = arith.constant dense<0.000000e+00> : vector<24x128xf32>
    %403 = tpu.matmul %399, %402, %cst_111 {dimension_numbers = #tpu.dot_dimension_numbers<[1], [0], [0], [1], [0, 0, 1, 1], [], []>} : vector<24x64xf32>, vector<64x128xf32>, vector<24x128xf32> -> vector<24x128xf32>
    %404 = arith.addf %401, %403 : vector<24x128xf32>
    %405 = vector.broadcast %24 : vector<1x128xf32> to vector<24x128xf32>
    %406 = arith.addf %404, %405 : vector<24x128xf32>
    %cst_112 = arith.constant dense<0.000000e+00> : vector<24xf32>
    %407 = vector.multi_reduction <add>, %406, %cst_112 [1] : vector<24x128xf32> to vector<24xf32>
    %408 = vector.shape_cast %407 : vector<24xf32> to vector<24x1xf32>
    %cst_113 = arith.constant 1.280000e+02 : f32
    %409 = vector.broadcast %cst_113 : f32 to vector<24x1xf32>
    %410 = arith.divf %408, %409 : vector<24x1xf32>
    %411 = arith.mulf %406, %406 : vector<24x128xf32>
    %cst_114 = arith.constant dense<0.000000e+00> : vector<24xf32>
    %412 = vector.multi_reduction <add>, %411, %cst_114 [1] : vector<24x128xf32> to vector<24xf32>
    %413 = vector.shape_cast %412 : vector<24xf32> to vector<24x1xf32>
    %cst_115 = arith.constant 1.280000e+02 : f32
    %414 = vector.broadcast %cst_115 : f32 to vector<24x1xf32>
    %415 = arith.divf %413, %414 : vector<24x1xf32>
    %416 = arith.mulf %410, %410 : vector<24x1xf32>
    %417 = arith.subf %415, %416 : vector<24x1xf32>
    %cst_116 = arith.constant 0.000000e+00 : f32
    %418 = vector.broadcast %cst_116 : f32 to vector<24x1xf32>
    %419 = arith.maximumf %417, %418 : vector<24x1xf32>
    %420 = vector.broadcast %410 : vector<24x1xf32> to vector<24x128xf32>
    %421 = arith.subf %406, %420 : vector<24x128xf32>
    %cst_117 = arith.constant 9.99999974E-6 : f32
    %422 = vector.broadcast %cst_117 : f32 to vector<24x1xf32>
    %423 = arith.addf %419, %422 : vector<24x1xf32>
    %424 = math.rsqrt %423 : vector<24x1xf32>
    %425 = vector.broadcast %424 : vector<24x1xf32> to vector<24x128xf32>
    %426 = arith.mulf %421, %425 : vector<24x128xf32>
    %427 = vector.broadcast %25 : vector<1x128xf32> to vector<24x128xf32>
    %428 = arith.mulf %426, %427 : vector<24x128xf32>
    %429 = vector.broadcast %26 : vector<1x128xf32> to vector<24x128xf32>
    %430 = arith.addf %428, %429 : vector<24x128xf32>
    %cst_118 = arith.constant 5.000000e-01 : f32
    %431 = vector.broadcast %cst_118 : f32 to vector<24x128xf32>
    %432 = arith.mulf %431, %430 : vector<24x128xf32>
    %cst_119 = arith.constant 0.707106769 : f32
    %433 = vector.broadcast %cst_119 : f32 to vector<24x128xf32>
    %434 = arith.mulf %430, %433 : vector<24x128xf32>
    %435 = math.absf %434 : vector<24x128xf32>
    %cst_120 = arith.constant 0.327591091 : f32
    %436 = vector.broadcast %cst_120 : f32 to vector<24x128xf32>
    %437 = arith.mulf %436, %435 : vector<24x128xf32>
    %cst_121 = arith.constant 1.000000e+00 : f32
    %438 = vector.broadcast %cst_121 : f32 to vector<24x128xf32>
    %439 = arith.addf %438, %437 : vector<24x128xf32>
    %cst_122 = arith.constant 1.000000e+00 : f32
    %440 = vector.broadcast %cst_122 : f32 to vector<24x128xf32>
    %441 = arith.divf %440, %439 : vector<24x128xf32>
    %cst_123 = arith.constant 1.06140542 : f32
    %442 = vector.broadcast %cst_123 : f32 to vector<24x128xf32>
    %443 = arith.mulf %442, %441 : vector<24x128xf32>
    %cst_124 = arith.constant -1.45315206 : f32
    %444 = vector.broadcast %cst_124 : f32 to vector<24x128xf32>
    %445 = arith.addf %443, %444 : vector<24x128xf32>
    %446 = arith.mulf %445, %441 : vector<24x128xf32>
    %cst_125 = arith.constant 1.42141378 : f32
    %447 = vector.broadcast %cst_125 : f32 to vector<24x128xf32>
    %448 = arith.addf %446, %447 : vector<24x128xf32>
    %449 = arith.mulf %448, %441 : vector<24x128xf32>
    %cst_126 = arith.constant -0.284496725 : f32
    %450 = vector.broadcast %cst_126 : f32 to vector<24x128xf32>
    %451 = arith.addf %449, %450 : vector<24x128xf32>
    %452 = arith.mulf %451, %441 : vector<24x128xf32>
    %cst_127 = arith.constant 0.254829586 : f32
    %453 = vector.broadcast %cst_127 : f32 to vector<24x128xf32>
    %454 = arith.addf %452, %453 : vector<24x128xf32>
    %455 = arith.mulf %454, %441 : vector<24x128xf32>
    %cst_128 = arith.constant 0.000000e+00 : f32
    %456 = vector.broadcast %cst_128 : f32 to vector<24x128xf32>
    %457 = arith.subf %456, %435 : vector<24x128xf32>
    %458 = arith.mulf %457, %435 : vector<24x128xf32>
    %459 = math.exp %458 : vector<24x128xf32>
    %460 = arith.mulf %455, %459 : vector<24x128xf32>
    %cst_129 = arith.constant 1.000000e+00 : f32
    %461 = vector.broadcast %cst_129 : f32 to vector<24x128xf32>
    %462 = arith.subf %461, %460 : vector<24x128xf32>
    %cst_130 = arith.constant 0.000000e+00 : f32
    %463 = vector.broadcast %cst_130 : f32 to vector<24x128xf32>
    %464 = arith.cmpf oge, %434, %463 : vector<24x128xf32>
    %cst_131 = arith.constant 0.000000e+00 : f32
    %465 = vector.broadcast %cst_131 : f32 to vector<24x128xf32>
    %466 = arith.subf %465, %462 : vector<24x128xf32>
    %467 = arith.select %464, %462, %466 : vector<24x128xi1>, vector<24x128xf32>
    %cst_132 = arith.constant 1.000000e+00 : f32
    %468 = vector.broadcast %cst_132 : f32 to vector<24x128xf32>
    %469 = arith.addf %468, %467 : vector<24x128xf32>
    %470 = arith.mulf %432, %469 : vector<24x128xf32>
    %c0_133 = arith.constant 0 : index
    %c0_134 = arith.constant 0 : index
    %471 = vector.load %arg15[%c0_133, %c0_134] : memref<128x64xf32, #tpu.memory_space<vmem>>, vector<128x64xf32>
    %cst_135 = arith.constant dense<0.000000e+00> : vector<24x64xf32>
    %472 = tpu.matmul %470, %471, %cst_135 {dimension_numbers = #tpu.dot_dimension_numbers<[1], [0], [0], [1], [0, 0, 1, 1], [], []>} : vector<24x128xf32>, vector<128x64xf32>, vector<24x64xf32> -> vector<24x64xf32>
    %473 = vector.broadcast %18 : vector<1x64xf32> to vector<24x64xf32>
    %474 = arith.addf %472, %473 : vector<24x64xf32>
    %cst_136 = arith.constant dense<0.000000e+00> : vector<24xf32>
    %475 = vector.multi_reduction <add>, %474, %cst_136 [1] : vector<24x64xf32> to vector<24xf32>
    %476 = vector.shape_cast %475 : vector<24xf32> to vector<24x1xf32>
    %cst_137 = arith.constant 6.400000e+01 : f32
    %477 = vector.broadcast %cst_137 : f32 to vector<24x1xf32>
    %478 = arith.divf %476, %477 : vector<24x1xf32>
    %479 = arith.mulf %474, %474 : vector<24x64xf32>
    %cst_138 = arith.constant dense<0.000000e+00> : vector<24xf32>
    %480 = vector.multi_reduction <add>, %479, %cst_138 [1] : vector<24x64xf32> to vector<24xf32>
    %481 = vector.shape_cast %480 : vector<24xf32> to vector<24x1xf32>
    %cst_139 = arith.constant 6.400000e+01 : f32
    %482 = vector.broadcast %cst_139 : f32 to vector<24x1xf32>
    %483 = arith.divf %481, %482 : vector<24x1xf32>
    %484 = arith.mulf %478, %478 : vector<24x1xf32>
    %485 = arith.subf %483, %484 : vector<24x1xf32>
    %cst_140 = arith.constant 0.000000e+00 : f32
    %486 = vector.broadcast %cst_140 : f32 to vector<24x1xf32>
    %487 = arith.maximumf %485, %486 : vector<24x1xf32>
    %488 = vector.broadcast %478 : vector<24x1xf32> to vector<24x64xf32>
    %489 = arith.subf %474, %488 : vector<24x64xf32>
    %cst_141 = arith.constant 9.99999974E-6 : f32
    %490 = vector.broadcast %cst_141 : f32 to vector<24x1xf32>
    %491 = arith.addf %487, %490 : vector<24x1xf32>
    %492 = math.rsqrt %491 : vector<24x1xf32>
    %493 = vector.broadcast %492 : vector<24x1xf32> to vector<24x64xf32>
    %494 = arith.mulf %489, %493 : vector<24x64xf32>
    %495 = vector.broadcast %19 : vector<1x64xf32> to vector<24x64xf32>
    %496 = arith.mulf %494, %495 : vector<24x64xf32>
    %497 = vector.broadcast %20 : vector<1x64xf32> to vector<24x64xf32>
    %498 = arith.addf %496, %497 : vector<24x64xf32>
    %cst_142 = arith.constant 5.000000e-01 : f32
    %499 = vector.broadcast %cst_142 : f32 to vector<24x64xf32>
    %500 = arith.mulf %499, %498 : vector<24x64xf32>
    %cst_143 = arith.constant 0.707106769 : f32
    %501 = vector.broadcast %cst_143 : f32 to vector<24x64xf32>
    %502 = arith.mulf %498, %501 : vector<24x64xf32>
    %503 = math.absf %502 : vector<24x64xf32>
    %cst_144 = arith.constant 0.327591091 : f32
    %504 = vector.broadcast %cst_144 : f32 to vector<24x64xf32>
    %505 = arith.mulf %504, %503 : vector<24x64xf32>
    %cst_145 = arith.constant 1.000000e+00 : f32
    %506 = vector.broadcast %cst_145 : f32 to vector<24x64xf32>
    %507 = arith.addf %506, %505 : vector<24x64xf32>
    %cst_146 = arith.constant 1.000000e+00 : f32
    %508 = vector.broadcast %cst_146 : f32 to vector<24x64xf32>
    %509 = arith.divf %508, %507 : vector<24x64xf32>
    %cst_147 = arith.constant 1.06140542 : f32
    %510 = vector.broadcast %cst_147 : f32 to vector<24x64xf32>
    %511 = arith.mulf %510, %509 : vector<24x64xf32>
    %cst_148 = arith.constant -1.45315206 : f32
    %512 = vector.broadcast %cst_148 : f32 to vector<24x64xf32>
    %513 = arith.addf %511, %512 : vector<24x64xf32>
    %514 = arith.mulf %513, %509 : vector<24x64xf32>
    %cst_149 = arith.constant 1.42141378 : f32
    %515 = vector.broadcast %cst_149 : f32 to vector<24x64xf32>
    %516 = arith.addf %514, %515 : vector<24x64xf32>
    %517 = arith.mulf %516, %509 : vector<24x64xf32>
    %cst_150 = arith.constant -0.284496725 : f32
    %518 = vector.broadcast %cst_150 : f32 to vector<24x64xf32>
    %519 = arith.addf %517, %518 : vector<24x64xf32>
    %520 = arith.mulf %519, %509 : vector<24x64xf32>
    %cst_151 = arith.constant 0.254829586 : f32
    %521 = vector.broadcast %cst_151 : f32 to vector<24x64xf32>
    %522 = arith.addf %520, %521 : vector<24x64xf32>
    %523 = arith.mulf %522, %509 : vector<24x64xf32>
    %cst_152 = arith.constant 0.000000e+00 : f32
    %524 = vector.broadcast %cst_152 : f32 to vector<24x64xf32>
    %525 = arith.subf %524, %503 : vector<24x64xf32>
    %526 = arith.mulf %525, %503 : vector<24x64xf32>
    %527 = math.exp %526 : vector<24x64xf32>
    %528 = arith.mulf %523, %527 : vector<24x64xf32>
    %cst_153 = arith.constant 1.000000e+00 : f32
    %529 = vector.broadcast %cst_153 : f32 to vector<24x64xf32>
    %530 = arith.subf %529, %528 : vector<24x64xf32>
    %cst_154 = arith.constant 0.000000e+00 : f32
    %531 = vector.broadcast %cst_154 : f32 to vector<24x64xf32>
    %532 = arith.cmpf oge, %502, %531 : vector<24x64xf32>
    %cst_155 = arith.constant 0.000000e+00 : f32
    %533 = vector.broadcast %cst_155 : f32 to vector<24x64xf32>
    %534 = arith.subf %533, %530 : vector<24x64xf32>
    %535 = arith.select %532, %530, %534 : vector<24x64xi1>, vector<24x64xf32>
    %cst_156 = arith.constant 1.000000e+00 : f32
    %536 = vector.broadcast %cst_156 : f32 to vector<24x64xf32>
    %537 = arith.addf %536, %535 : vector<24x64xf32>
    %538 = arith.mulf %500, %537 : vector<24x64xf32>
    %cst_157 = arith.constant dense<0.000000e+00> : vector<24xf32>
    %539 = vector.multi_reduction <add>, %538, %cst_157 [1] : vector<24x64xf32> to vector<24xf32>
    %540 = vector.shape_cast %539 : vector<24xf32> to vector<24x1xf32>
    %cst_158 = arith.constant 6.400000e+01 : f32
    %541 = vector.broadcast %cst_158 : f32 to vector<24x1xf32>
    %542 = arith.divf %540, %541 : vector<24x1xf32>
    %543 = arith.mulf %538, %538 : vector<24x64xf32>
    %cst_159 = arith.constant dense<0.000000e+00> : vector<24xf32>
    %544 = vector.multi_reduction <add>, %543, %cst_159 [1] : vector<24x64xf32> to vector<24xf32>
    %545 = vector.shape_cast %544 : vector<24xf32> to vector<24x1xf32>
    %cst_160 = arith.constant 6.400000e+01 : f32
    %546 = vector.broadcast %cst_160 : f32 to vector<24x1xf32>
    %547 = arith.divf %545, %546 : vector<24x1xf32>
    %548 = arith.mulf %542, %542 : vector<24x1xf32>
    %549 = arith.subf %547, %548 : vector<24x1xf32>
    %cst_161 = arith.constant 0.000000e+00 : f32
    %550 = vector.broadcast %cst_161 : f32 to vector<24x1xf32>
    %551 = arith.maximumf %549, %550 : vector<24x1xf32>
    %552 = vector.broadcast %542 : vector<24x1xf32> to vector<24x64xf32>
    %553 = arith.subf %538, %552 : vector<24x64xf32>
    %cst_162 = arith.constant 9.99999974E-6 : f32
    %554 = vector.broadcast %cst_162 : f32 to vector<24x1xf32>
    %555 = arith.addf %551, %554 : vector<24x1xf32>
    %556 = math.rsqrt %555 : vector<24x1xf32>
    %557 = vector.broadcast %556 : vector<24x1xf32> to vector<24x64xf32>
    %558 = arith.mulf %553, %557 : vector<24x64xf32>
    %559 = vector.broadcast %21 : vector<1x64xf32> to vector<24x64xf32>
    %560 = arith.mulf %558, %559 : vector<24x64xf32>
    %561 = vector.broadcast %22 : vector<1x64xf32> to vector<24x64xf32>
    %562 = arith.addf %560, %561 : vector<24x64xf32>
    %563 = vector.shape_cast %562 : vector<24x64xf32> to vector<3x8x64xf32>
    %c0_163 = arith.constant 0 : index
    %c0_164 = arith.constant 0 : index
    %564 = vector.load %arg16[%c0_163, %c0_164] : memref<1x64xf32, #tpu.memory_space<vmem>>, vector<1x64xf32>
    %565 = vector.extract_strided_slice %563 {offsets = [0, 0, 0], sizes = [1, 8, 64], strides = [1, 1, 1]} : vector<3x8x64xf32> to vector<1x8x64xf32>
    %566 = vector.shape_cast %565 : vector<1x8x64xf32> to vector<8x64xf32>
    %567 = vector.broadcast %564 : vector<1x64xf32> to vector<8x64xf32>
    %568 = arith.mulf %566, %567 : vector<8x64xf32>
    %cst_165 = arith.constant dense<0.000000e+00> : vector<8xf32>
    %569 = vector.multi_reduction <add>, %568, %cst_165 [1] : vector<8x64xf32> to vector<8xf32>
    %570 = vector.shape_cast %569 : vector<8xf32> to vector<8x1xf32>
    %571 = vector.extract_strided_slice %563 {offsets = [1, 0, 0], sizes = [1, 8, 64], strides = [1, 1, 1]} : vector<3x8x64xf32> to vector<1x8x64xf32>
    %572 = vector.shape_cast %571 : vector<1x8x64xf32> to vector<8x64xf32>
    %573 = vector.broadcast %564 : vector<1x64xf32> to vector<8x64xf32>
    %574 = arith.mulf %572, %573 : vector<8x64xf32>
    %cst_166 = arith.constant dense<0.000000e+00> : vector<8xf32>
    %575 = vector.multi_reduction <add>, %574, %cst_166 [1] : vector<8x64xf32> to vector<8xf32>
    %576 = vector.shape_cast %575 : vector<8xf32> to vector<8x1xf32>
    %577 = vector.extract_strided_slice %563 {offsets = [2, 0, 0], sizes = [1, 8, 64], strides = [1, 1, 1]} : vector<3x8x64xf32> to vector<1x8x64xf32>
    %578 = vector.shape_cast %577 : vector<1x8x64xf32> to vector<8x64xf32>
    %579 = vector.broadcast %564 : vector<1x64xf32> to vector<8x64xf32>
    %580 = arith.mulf %578, %579 : vector<8x64xf32>
    %cst_167 = arith.constant dense<0.000000e+00> : vector<8xf32>
    %581 = vector.multi_reduction <add>, %580, %cst_167 [1] : vector<8x64xf32> to vector<8xf32>
    %582 = vector.shape_cast %581 : vector<8xf32> to vector<8x1xf32>
    %583 = tpu.concatenate %570, %576, %582 in 1 : vector<8x1xf32>, vector<8x1xf32>, vector<8x1xf32> -> vector<8x3xf32>
    %cst_168 = arith.constant 1.000000e+00 : f32
    %584 = vector.broadcast %cst_168 : f32 to vector<8x4xf32>
    %cst_169 = arith.constant 0.000000e+00 : f32
    %585 = vector.broadcast %cst_169 : f32 to vector<8x1xf32>
    %586 = tpu.concatenate %583, %251, %584, %261, %262, %272, %584, %273, %283, %284, %584, %585 in 1 : vector<8x3xf32>, vector<8x24xf32>, vector<8x4xf32>, vector<8x4xf32>, vector<8x4xf32>, vector<8x4xf32>, vector<8x4xf32>, vector<8x4xf32>, vector<8x4xf32>, vector<8x4xf32>, vector<8x4xf32>, vector<8x1xf32> -> vector<8x64xf32>
    %c0_170 = arith.constant 0 : index
    %c0_171 = arith.constant 0 : index
    %587 = vector.load %arg19[%c0_170, %c0_171] : memref<8x64xf32, #tpu.memory_space<vmem>>, vector<8x64xf32>
    tpu.vector_store %arg19[%c0_170, %c0_171], %586 {strides = array<i32>} : memref<8x64xf32, #tpu.memory_space<vmem>>, vector<8x64xf32>,
    return
  }
  func.func @transform_0(%arg0: i32) -> (i32, i32, i32) {
    %c0_i32 = arith.constant 0 : i32
    %c0_i32_0 = arith.constant 0 : i32
    %c0_i32_1 = arith.constant 0 : i32
    return %c0_i32, %arg0, %c0_i32_0 : i32, i32, i32
  }
  func.func @transform_1(%arg0: i32) -> (i32, i32, i32) {
    %c0_i32 = arith.constant 0 : i32
    %c0_i32_0 = arith.constant 0 : i32
    %c0_i32_1 = arith.constant 0 : i32
    return %c0_i32, %arg0, %c0_i32_0 : i32, i32, i32
  }
  func.func @transform_2(%arg0: i32) -> (i32, i32) {
    %c0_i32 = arith.constant 0 : i32
    %c0_i32_0 = arith.constant 0 : i32
    %c0_i32_1 = arith.constant 0 : i32
    return %c0_i32, %c0_i32_0 : i32, i32
  }
  func.func @transform_3(%arg0: i32) -> (i32, i32) {
    %c0_i32 = arith.constant 0 : i32
    %c0_i32_0 = arith.constant 0 : i32
    %c0_i32_1 = arith.constant 0 : i32
    return %c0_i32, %c0_i32_0 : i32, i32
  }
  func.func @transform_4(%arg0: i32) -> (i32, i32) {
    %c0_i32 = arith.constant 0 : i32
    %c0_i32_0 = arith.constant 0 : i32
    %c0_i32_1 = arith.constant 0 : i32
    return %c0_i32, %c0_i32_0 : i32, i32
  }
  func.func @transform_5(%arg0: i32) -> (i32, i32) {
    %c0_i32 = arith.constant 0 : i32
    %c0_i32_0 = arith.constant 0 : i32
    %c0_i32_1 = arith.constant 0 : i32
    return %c0_i32, %c0_i32_0 : i32, i32
  }
  func.func @transform_6(%arg0: i32) -> (i32, i32) {
    %c0_i32 = arith.constant 0 : i32
    %c0_i32_0 = arith.constant 0 : i32
    %c0_i32_1 = arith.constant 0 : i32
    return %c0_i32, %c0_i32_0 : i32, i32
  }
  func.func @transform_7(%arg0: i32) -> (i32, i32) {
    %c0_i32 = arith.constant 0 : i32
    %c0_i32_0 = arith.constant 0 : i32
    %c0_i32_1 = arith.constant 0 : i32
    return %c0_i32, %c0_i32_0 : i32, i32
  }
  func.func @transform_8(%arg0: i32) -> (i32, i32) {
    %c0_i32 = arith.constant 0 : i32
    %c0_i32_0 = arith.constant 0 : i32
    %c0_i32_1 = arith.constant 0 : i32
    return %c0_i32, %c0_i32_0 : i32, i32
  }
  func.func @transform_9(%arg0: i32) -> (i32, i32) {
    %c0_i32 = arith.constant 0 : i32
    %c0_i32_0 = arith.constant 0 : i32
    %c0_i32_1 = arith.constant 0 : i32
    return %c0_i32, %c0_i32_0 : i32, i32
  }
  func.func @transform_10(%arg0: i32) -> (i32, i32) {
    %c0_i32 = arith.constant 0 : i32
    %c0_i32_0 = arith.constant 0 : i32
    %c0_i32_1 = arith.constant 0 : i32
    return %c0_i32, %c0_i32_0 : i32, i32
  }
  func.func @transform_11(%arg0: i32) -> (i32, i32) {
    %c0_i32 = arith.constant 0 : i32
    %c0_i32_0 = arith.constant 0 : i32
    %c0_i32_1 = arith.constant 0 : i32
    return %c0_i32, %c0_i32_0 : i32, i32
  }
  func.func @transform_12(%arg0: i32) -> (i32, i32) {
    %c0_i32 = arith.constant 0 : i32
    %c0_i32_0 = arith.constant 0 : i32
    %c0_i32_1 = arith.constant 0 : i32
    return %c0_i32, %c0_i32_0 : i32, i32
  }
  func.func @transform_13(%arg0: i32) -> (i32, i32) {
    %c0_i32 = arith.constant 0 : i32
    %c0_i32_0 = arith.constant 0 : i32
    %c0_i32_1 = arith.constant 0 : i32
    return %c0_i32, %c0_i32_0 : i32, i32
  }
  func.func @transform_14(%arg0: i32) -> (i32, i32) {
    %c0_i32 = arith.constant 0 : i32
    %c0_i32_0 = arith.constant 0 : i32
    %c0_i32_1 = arith.constant 0 : i32
    return %c0_i32, %c0_i32_0 : i32, i32
  }
  func.func @transform_15(%arg0: i32) -> (i32, i32) {
    %c0_i32 = arith.constant 0 : i32
    %c0_i32_0 = arith.constant 0 : i32
    %c0_i32_1 = arith.constant 0 : i32
    return %c0_i32, %c0_i32_0 : i32, i32
  }
  func.func @transform_16(%arg0: i32) -> (i32, i32) {
    %c0_i32 = arith.constant 0 : i32
    %c0_i32_0 = arith.constant 0 : i32
    %c0_i32_1 = arith.constant 0 : i32
    return %c0_i32, %c0_i32_0 : i32, i32
  }
  func.func @transform_17(%arg0: i32) -> (i32, i32) {
    %c0_i32 = arith.constant 0 : i32
    %c0_i32_0 = arith.constant 0 : i32
    %c0_i32_1 = arith.constant 0 : i32
    return %c0_i32, %c0_i32_0 : i32, i32
  }
  func.func @transform_18(%arg0: i32) -> (i32, i32) {
    %c0_i32 = arith.constant 0 : i32
    %c0_i32_0 = arith.constant 0 : i32
    return %arg0, %c0_i32 : i32, i32
  }
}

</mosaic_0001>

<bundles_post_ra>
// kernel: tpu_custom_call.1
= control target key start
LH: loop header
LB: loop body
LE: loop exit
PB: predicated region body
PF: predicated region fallthrough
CT: control target
= control target key end

     0   :  { %s9711_s0 = inlined_call_operand.vmem [shape: f32[3,8,16], index: 0, kind: input, shape index: {}]   ;;  %s9712_s1 = inlined_call_operand.vmem [shape: f32[3,8,5], index: 1, kind: input, shape index: {}]   ;;  %s9713_s2 = inlined_call_operand.vmem [shape: f32[2,16], index: 2, kind: input, shape index: {}]   ;;  %s9714_s3 = inlined_call_operand.vmem [shape: f32[17,64], index: 3, kind: input, shape index: {}]   ;;  %s9715_s4 = inlined_call_operand.vmem [shape: f32[4,128], index: 4, kind: input, shape index: {}]   ;;  %s9716_s5 = inlined_call_operand.vmem [shape: f32[3,2048], index: 5, kind: input, shape index: {}]   ;;  %s9717_s6 = inlined_call_operand.vmem [shape: f32[16,128], index: 6, kind: input, shape index: {}]   ;;  %s9718_s7 = inlined_call_operand.vmem [shape: f32[5,64], index: 7, kind: input, shape index: {}]   ;;  %s9719_s8 = inlined_call_operand.vmem [shape: f32[64,128], index: 8, kind: input, shape index: {}]   ;;  %s9720_s9 = inlined_call_operand.vmem [shape: f32[64,64], index: 9, kind: input, shape index: {}]   ;;  %s9721_s10 = inlined_call_operand.vmem [shape: bf16[64,2048], index: 10, kind: input, shape index: {}]   ;;  %s9722_s11 = inlined_call_operand.vmem [shape: bf16[2048,64], index: 11, kind: input, shape index: {}]   ;;  %s9723_s12 = inlined_call_operand.vmem [shape: f32[64,128], index: 12, kind: input, shape index: {}]   ;;  %s9724_s13 = inlined_call_operand.vmem [shape: f32[64,128], index: 13, kind: input, shape index: {}]   ;;  %s9725_s14 = inlined_call_operand.vmem [shape: f32[128,64], index: 14, kind: input, shape index: {}]   ;;  %s9726_s15 = inlined_call_operand.vmem [shape: f32[1,64], index: 15, kind: input, shape index: {}]   ;;  %s9727_s16 = inlined_call_operand.vmem [shape: f32[384,24], index: 16, kind: input, shape index: {}]   ;;  %s9728_s17 = inlined_call_operand.vmem [shape: f32[24,384], index: 17, kind: input, shape index: {}]   ;;  %s9729_s18 = inlined_call_operand.hbm [shape: f32[8,64], index: 18, kind: output, shape index: {}]  }
   0x1   :  { %9790 = sst [smem:[#allocation63_spill]] %s9711_s0 }
   0x2   :  { %9791 = sst [smem:[#allocation64_spill]] %s9712_s1 }
   0x3   :  { %9792 = sst [smem:[#allocation65_spill]] %s9713_s2 }
   0x4   :  { %s9793_s29 = sld [smem:[#allocation63_spill]]  ;;  %vm84_vm0 = vcmask 130048   ;;  %v149_v12 = vld [vmem:[%s9717_s6 + $0x8] sm:$0xff]  ;;  %v148_v13 = vld [vmem:[%s9717_s6] sm:$0xff]  ;;  %v9733_v14 = vmov 0.0   ;;  %vm6816_vm1 = vmmov 0  }
   0x5   :  { %6268 = vmatprep.subr.mxu0 %v9733_v14  ;;  %6272 = vmatprep.mubr.msk.f32.mxu0 %vm6816_vm1, %v9733_v14  ;;  %v391_v15 = vld [vmem:[%s9718_s7] sm:$0x1f]  ;;  %vm402_vm2 = vcmask 1044480   ;;  %s9794_s26 = sld [smem:[#allocation64_spill]]  ;;  %vm392_vm3 = vcmask 39936  }
   0x6   :  { %6269 = vmatpush3.msra.mxu0 %v149_v12  ;;  %6281 = vmatprep.subr.mxu1 %v9733_v14 }
   0x7   :  { %6270 = vmatprep.subr.mxu0 %v9733_v14  ;;  %6283 = vmatprep.mubr.msk.f32.mxu1 %vm6816_vm1, %v9733_v14 }
   0x8   :  { %6271 = vmatpush3.msra.mxu0 %v148_v13  ;;  %6282 = vmatpush3.msk.msra.mxu1 %vm402_vm2, %v391_v15 }
   0x9   :  { %6292 = vmatprep.subr.mxu0 %v9733_v14 }
   0xa   :  { %v6923_v0 = vld [vmem:[%s9793_s29 + $0x8] sm:$0xff]  ;;  %v6928_v1 = vld [vmem:[%s9793_s29] sm:$0xff]  ;;  %v6933_v2 = vld [vmem:[%s9793_s29 + $0x10] sm:$0xff] }
   0xb   :  { %v88_v3 = vsel %vm84_vm0, %v6923_v0, 0.0  ;;  %v85_v4 = vsel %vm84_vm0, %v6928_v1, 0.0  ;;  %v99_v5 = vmul.f32 %v6923_v0, %v6923_v0  ;;  %v98_v6 = vmul.f32 %v6928_v1, %v6928_v1  ;;  %v81_v16 = vld [vmem:[%s9794_s26] sm:$0xff]  ;;  %v82_v17 = vld [vmem:[%s9794_s26 + $0x8] sm:$0xff]  ;;  %v83_v18 = vld [vmem:[%s9794_s26 + $0x10] sm:$0xff] }
   0xc   :  { %89 = vadd.xlane.f32.xlu1 %v88_v3  ;;  %86 = vadd.xlane.f32.xlu0 %v85_v4  ;;  %v100_v7 = vmul.f32 %v6933_v2, %v6933_v2  ;;  %v91_v10 = vsel %vm84_vm0, %v6933_v2, 0.0 }
   0xd   :  { %v104_v8 = vsel %vm84_vm0, %v99_v5, 0.0  ;;  %v101_v9 = vsel %vm84_vm0, %v98_v6, 0.0  ;;  %6284 = vmatmul.mubr.msk.f32.vlgmr.msra.gmra.mxu1 %vm392_vm3, %v81_v16 }
   0xe   :  { %v107_v11 = vsel %vm84_vm0, %v100_v7, 0.0  ;;  %6286 = vmatprep.mubr.msk.f32.mxu1 %vm6816_vm1, %v9733_v14 }
  0x10   :  { %105 = vadd.xlane.f32.xlu1 %v104_v8  ;;  %102 = vadd.xlane.f32.xlu0 %v101_v9 }
  0x11   :  { %6287 = vmatmul.mubr.msk.f32.gmra.mxu1 %vm392_vm3, %v82_v17 }
  0x12   :  { %6289 = vmatprep.mubr.msk.f32.mxu1 %vm6816_vm1, %v9733_v14 }
  0x14   :  { %92 = vadd.xlane.f32.xlu0 %v91_v10  ;;  %108 = vadd.xlane.f32.xlu1 %v107_v11 }
  0x15   :  { %6290 = vmatmul.mubr.msk.f32.gmra.mxu1 %vm392_vm3, %v83_v18 }
  0x16   :  { %23 = vsyncpa [#allocation3], 0  ;;  %v134_v41 = vlaneseq  ;;  %s9797_s19 = sld [smem:[#allocation65_spill]]  ;;  %v7008_v7 = vld [vmem:[%s9714_s3] sm:$0xff]  ;;  %vm246_vm4 = vcmask 523264   ;;  %s6817_s21 = smov 64  }
  0x17   :  { %s6819_s29 = smov 4   ;;  %vm1142_vm11 = vcmask 31744   ;;  %vm1144_vm12 = vcmask 64512   ;;  %vm1146_vm13 = vcmask 97280   ;;  %vm1149_vm14 = vcmask 162816   ;;  %s6824_s30 = smov [#allocation2]  }
  0x18   :  { %v6980_v44 = vshrl.u32 %v134_v41, 7  ;;  %vm1160_vm15 = vcmask 195584   ;;  %s5677_s7 = sshll.u32 %s6824_s30, 4  ;;  %s5678_s7 = int_to_ptr.vmem [resolvable:$true] %s5677_s7 }
  0x19   :  { %s6793_s0 = scalar_lea.vmem %s5678_s7, 128  ;;  %p6798_p1 = scmp.lt.s32.totalorder %s5678_s7, %s5678_s7 }
  0x1a   :  { %9795 = vst [vmem:[#allocation5_spill] sm:$0xff] %v6980_v44  ;;  %v6983_v45 = vsub.s32 0, %v6980_v44  ;;  %v6989_v47 = vsub.s32 1, %v6980_v44  ;;  %p6794_p0 = scmp.ne.s32.totalorder %s5678_s7, %s6793_s0  ;;  %p6799_p2 = scmp.lt.s32.totalorder %s6793_s0, %s6793_s0 }
  0x1c   :  { %9796 = vst [vmem:[#allocation6_spill] sm:$0xff] %v6983_v45  ;;  %v65_v46 = vld [vmem:[%s9797_s19] sm:$0x3]  ;;  %9798 = vst [vmem:[#allocation7_spill] sm:$0xff] %v6989_v47  ;;  %v242_v8 = vrot.slane %v7008_v7, %v6983_v45  ;;  %p6800_p3 = por %p6799_p2, %p6798_p1 }
  0x1d   :  { %v137_v51 = vrot.slane %v65_v46, %v6983_v45  ;;  %v144_v54 = vrot.slane %v65_v46, %v6989_v47 }
  0x1e   :  { %p6801_p4 = pnand %p6800_p3, %p6794_p0 }
  0x95   :  { %v90_v19 = vpop.xlane.xlu1 %89  ;;  %v87_v20 = vpop.xlane.xlu0 %86 }
  0x96   :  { %v96_v21 = vmul.f32 0.0625, %v90_v19  ;;  %v95_v22 = vmul.f32 0.0625, %v87_v20 }
  0x98   :  { %v114_v23 = vmul.f32 %v96_v21, %v96_v21  ;;  %v113_v26 = vmul.f32 %v95_v22, %v95_v22  ;;  %v123_v49 = vsub.f32 %v6923_v0, %v96_v21  ;;  %v122_v50 = vsub.f32 %v6928_v1, %v95_v22 }
  0x99   :  { %v106_v24 = vpop.xlane.xlu1 %105  ;;  %v103_v25 = vpop.xlane.xlu0 %102 }
  0x9a   :  { %v111_v27 = vmul.f32 0.0625, %v106_v24  ;;  %v110_v28 = vmul.f32 0.0625, %v103_v25 }
  0x9c   :  { %v117_v29 = vsub.f32 %v111_v27, %v114_v23  ;;  %v116_v30 = vsub.f32 %v110_v28, %v113_v26  ;;  %v7043_v28 = vsub.s32 3, %v6980_v44 }
  0x9d   :  { %v93_v31 = vpop.xlane.xlu0 %92  ;;  %v109_v32 = vpop.xlane.xlu1 %108 }
  0x9e   :  { %v120_v33 = vmax.f32 %v117_v29, 0.0  ;;  %v119_v34 = vmax.f32 %v116_v30, 0.0  ;;  %v97_v35 = vmul.f32 0.0625, %v93_v31  ;;  %v112_v36 = vmul.f32 0.0625, %v109_v32  ;;  %9799 = vst [vmem:[#allocation8_spill] sm:$0xff] %v7043_v28  ;;  %v694_v30 = vld [vmem:[%s9719_s8 + $0x38] sm:$0xff] }
  0x9f   :  { %v504_v29 = vrot.slane %v7008_v7, %v7043_v28  ;;  %v693_v31 = vld [vmem:[%s9719_s8 + $0x30] sm:$0xff]  ;;  %v692_v32 = vld [vmem:[%s9719_s8 + $0x28] sm:$0xff] }
  0xa0   :  { %v126_v37 = vadd.f32 1e-05, %v120_v33  ;;  %v125_v38 = vadd.f32 1e-05, %v119_v34  ;;  %v115_v39 = vmul.f32 %v97_v35, %v97_v35  ;;  %v124_v57 = vsub.f32 %v6933_v2, %v97_v35  ;;  %v691_v33 = vld [vmem:[%s9719_s8 + $0x20] sm:$0xff]  ;;  %v690_v34 = vld [vmem:[%s9719_s8 + $0x18] sm:$0xff] }
  0xa1   :  { %v689_v35 = vld [vmem:[%s9719_s8 + $0x10] sm:$0xff] }
  0xa2   :  { %6615 = vrsqrt.f32 %v126_v37  ;;  %v118_v40 = vsub.f32 %v112_v36, %v115_v39  ;;  %v688_v36 = vld [vmem:[%s9719_s8 + $0x8] sm:$0xff]  ;;  %v687_v37 = vld [vmem:[%s9719_s8] sm:$0xff] }
  0xa3   :  { %6617 = vrsqrt.f32 %v125_v38 }
  0xa4   :  { %v121_v42 = vmax.f32 %v118_v40, 0.0 }
  0xa6   :  { %v127_v43 = vadd.f32 1e-05, %v121_v42 }
  0xa8   :  { %6619 = vrsqrt.f32 %v127_v43 }
  0xaf   :  { %v6616_v48 = vpop.eup %6615 }
  0xb0   :  { %v6618_v52 = vpop.eup %6617  ;;  %v132_v55 = vmul.f32 %v6616_v48, %v123_v49 }
  0xb1   :  { %v131_v53 = vmul.f32 %v6618_v52, %v122_v50 }
  0xb2   :  { %v139_v60 = vmul.f32 %v137_v51, %v132_v55 }
  0xb3   :  { %v138_v56 = vmul.f32 %v137_v51, %v131_v53 }
  0xb4   :  { %v146_v62 = vadd.f32 %v144_v54, %v139_v60 }
  0xb5   :  { %v6620_v58 = vpop.eup %6619  ;;  %v145_v59 = vadd.f32 %v144_v54, %v138_v56 }
  0xb6   :  { %v133_v61 = vmul.f32 %v6620_v58, %v124_v57 }
  0xb7   :  { %6273 = vmatmul.mubr.msk.f32.vlgmr.msra.gmra.mxu0 %vm84_vm0, %v145_v59 }
  0xb8   :  { %6275 = vmatprep.mubr.msk.f32.mxu0 %vm6816_vm1, %v9733_v14  ;;  %v140_v63 = vmul.f32 %v137_v51, %v133_v61  ;;  %6293 = vmatpush3.msra.mxu0 %v694_v30 }
  0xb9   :  { %6294 = vmatprep.subr.mxu0 %v9733_v14 }
  0xba   :  { %v147_v0 = vadd.f32 %v144_v54, %v140_v63  ;;  %6295 = vmatpush3.msra.mxu0 %v693_v31 }
  0xbb   :  { %6276 = vmatmul.mubr.msk.f32.gmra.mxu0 %vm84_vm0, %v146_v62  ;;  %6296 = vmatprep.subr.mxu0 %v9733_v14 }
  0xbc   :  { %6278 = vmatprep.mubr.msk.f32.mxu0 %vm6816_vm1, %v9733_v14  ;;  %6297 = vmatpush3.msra.mxu0 %v692_v32 }
  0xbd   :  { %6298 = vmatprep.subr.mxu0 %v9733_v14 }
  0xbe   :  { %6299 = vmatpush3.msra.mxu0 %v691_v33 }
  0xbf   :  { %6279 = vmatmul.mubr.msk.f32.gmra.mxu0 %vm84_vm0, %v147_v0  ;;  %6300 = vmatprep.subr.mxu0 %v9733_v14 }
  0xc0   :  { %6308 = vmatprep.mubr.msk.f32.mxu0 %vm6816_vm1, %v9733_v14  ;;  %6301 = vmatpush3.msra.mxu0 %v690_v34 }
  0xc1   :  { %6302 = vmatprep.subr.mxu0 %v9733_v14 }
  0xc2   :  { %6303 = vmatpush3.msra.mxu0 %v689_v35 }
  0xc3   :  { %6304 = vmatprep.subr.mxu0 %v9733_v14 }
  0xc4   :  { %6305 = vmatpush3.msra.mxu0 %v688_v36 }
  0xc5   :  { %6306 = vmatprep.subr.mxu0 %v9733_v14 }
  0xc6   :  { %6307 = vmatpush3.msra.mxu0 %v687_v37 }
  0xc7   :  { %6317 = vmatprep.subr.mxu0 %v9733_v14 }
  0xcd   :  { %v472_v1 = vpop.f32.mrf.mxu1 }
  0xcf   :  { %v6285_v2 = vpop.f32.mrf.mxu1 }
  0xd1   :  { %v477_v3 = vpop.f32.mrf.mxu1 }
  0xd3   :  { %v6288_v4 = vpop.f32.mrf.mxu1 }
  0xd5   :  { %v482_v5 = vpop.f32.mrf.mxu1 }
  0xd7   :  { %v6291_v6 = vpop.f32.mrf.mxu1 }
 0x177   :  { %v7012_v9 = vpop.f32.mrf.mxu0 }
 0x178   :  { %v7015_v10 = vadd.f32 %v242_v8, %v7012_v9 }
 0x179   :  { %v6274_v11 = vpop.f32.mrf.mxu0 }
 0x17a   :  { %v247_v12 = vsel %vm246_vm4, %v7015_v10, 0.0  ;;  %v260_v13 = vmul.f32 %v7015_v10, %v7015_v10  ;;  %v7095_v11 = vsub.s32 2, %v6980_v44 }
 0x17b   :  { %248 = vadd.xlane.f32.xlu0 %v247_v12  ;;  %v7021_v15 = vpop.f32.mrf.mxu0 }
 0x17c   :  { %v7024_v16 = vadd.f32 %v242_v8, %v7021_v15  ;;  %v263_v17 = vsel %vm246_vm4, %v260_v13, 0.0  ;;  %9800 = vst [vmem:[#allocation9_spill] sm:$0xff] %v7095_v11 }
 0x17d   :  { %264 = vadd.xlane.f32.xlu1 %v263_v17  ;;  %v6277_v18 = vpop.f32.mrf.mxu0  ;;  %v299_v17 = vrot.slane %v7008_v7, %v6989_v47 }
 0x17e   :  { %v250_v19 = vsel %vm246_vm4, %v7024_v16, 0.0  ;;  %v261_v20 = vmul.f32 %v7024_v16, %v7024_v16 }
 0x17f   :  { %251 = vadd.xlane.f32.xlu0 %v250_v19  ;;  %v7031_v21 = vpop.f32.mrf.mxu0 }
 0x180   :  { %v7034_v22 = vadd.f32 %v242_v8, %v7031_v21  ;;  %v266_v23 = vsel %vm246_vm4, %v261_v20, 0.0 }
 0x181   :  { %267 = vadd.xlane.f32.xlu1 %v266_v23  ;;  %v6280_v24 = vpop.f32.mrf.mxu0 }
 0x182   :  { %v253_v25 = vsel %vm246_vm4, %v7034_v22, 0.0  ;;  %v262_v26 = vmul.f32 %v7034_v22, %v7034_v22 }
 0x183   :  { %254 = vadd.xlane.f32.xlu0 %v253_v25 }
 0x184   :  { %v269_v27 = vsel %vm246_vm4, %v262_v26, 0.0 }
 0x185   :  { %270 = vadd.xlane.f32.xlu1 %v269_v27 }
 0x196   :  { %506 = vrot.lane.b32.xlu1 %v504_v29, %s6817_s21 }
 0x199   :  { %489 = vrot.lane.b32.xlu0 %v472_v1, %s6817_s21 }
 0x19a   :  { %491 = vrot.lane.b32.xlu1 %v477_v3, %s6817_s21 }
 0x19e   :  { %493 = vrot.lane.b32.xlu1 %v482_v5, %s6817_s21 }
 0x204   :  { %v249_v38 = vpop.xlane.xlu0 %248 }
 0x205   :  { %v257_v39 = vmul.f32 0.015625, %v249_v38 }
 0x206   :  { %v265_v40 = vpop.xlane.xlu1 %264 }
 0x207   :  { %v275_v41 = vmul.f32 %v257_v39, %v257_v39  ;;  %v272_v42 = vmul.f32 0.015625, %v265_v40  ;;  %v284_v13 = vsub.f32 %v7015_v10, %v257_v39  ;;  %v306_v10 = vrot.slane %v7008_v7, %v7095_v11 }
 0x208   :  { %v252_v43 = vpop.xlane.xlu0 %251 }
 0x209   :  { %v278_v46 = vsub.f32 %v272_v42, %v275_v41  ;;  %v258_v48 = vmul.f32 0.015625, %v252_v43 }
 0x20a   :  { %v268_v49 = vpop.xlane.xlu1 %267 }
 0x20b   :  { %v281_v50 = vmax.f32 %v278_v46, 0.0  ;;  %v276_v51 = vmul.f32 %v258_v48, %v258_v48  ;;  %v273_v52 = vmul.f32 0.015625, %v268_v49  ;;  %v285_v25 = vsub.f32 %v7024_v16, %v258_v48 }
 0x20c   :  { %v255_v53 = vpop.xlane.xlu0 %254 }
 0x20d   :  { %v287_v54 = vadd.f32 1e-05, %v281_v50  ;;  %v279_v55 = vsub.f32 %v273_v52, %v276_v51  ;;  %v259_v56 = vmul.f32 0.015625, %v255_v53 }
 0x20e   :  { %v271_v57 = vpop.xlane.xlu1 %270 }
 0x20f   :  { %6621 = vrsqrt.f32 %v287_v54  ;;  %v282_v58 = vmax.f32 %v279_v55, 0.0  ;;  %v277_v59 = vmul.f32 %v259_v56, %v259_v56  ;;  %v274_v60 = vmul.f32 0.015625, %v271_v57 }
 0x210   :  { %v490_v61 = vpop.permute.xlu0 %489  ;;  %v286_v32 = vsub.f32 %v7034_v22, %v259_v56 }
 0x211   :  { %v288_v62 = vadd.f32 1e-05, %v282_v58  ;;  %v498_v63 = vadd.f32 %v490_v61, %v7012_v9  ;;  %v280_v0 = vsub.f32 %v274_v60, %v277_v59 }
 0x212   :  { %v507_v1 = vpop.permute.xlu1 %506 }
 0x213   :  { %6623 = vrsqrt.f32 %v288_v62  ;;  %v7084_v2 = vadd.f32 %v507_v1, %v498_v63  ;;  %v283_v3 = vmax.f32 %v280_v0, 0.0 }
 0x215   :  { %515 = vrot.lane.b32.xlu0 %v7084_v2, %s6817_s21  ;;  %v536_v4 = vmul.f32 %v7084_v2, %v7084_v2  ;;  %v289_v5 = vadd.f32 1e-05, %v283_v3 }
 0x216   :  { %v492_v6 = vpop.permute.xlu1 %491 }
 0x217   :  { %v499_v8 = vadd.f32 %v492_v6, %v7021_v15  ;;  %542 = vrot.lane.b32.xlu1 %v536_v4, %s6817_s21  ;;  %6625 = vrsqrt.f32 %v289_v5 }
 0x219   :  { %v7092_v9 = vadd.f32 %v507_v1, %v499_v8 }
 0x21a   :  { %v494_v12 = vpop.permute.xlu1 %493 }
 0x21b   :  { %v500_v18 = vadd.f32 %v494_v12, %v7031_v21  ;;  %517 = vrot.lane.b32.xlu0 %v7092_v9, %s6817_s21  ;;  %v537_v15 = vmul.f32 %v7092_v9, %v7092_v9 }
 0x21c   :  { %v6622_v19 = vpop.eup %6621 }
 0x21d   :  { %v293_v20 = vmul.f32 %v6622_v19, %v284_v13  ;;  %v7105_v23 = vadd.f32 %v507_v1, %v500_v18  ;;  %544 = vrot.lane.b32.xlu1 %v537_v15, %s6817_s21 }
 0x21f   :  { %v300_v24 = vmul.f32 %v299_v17, %v293_v20  ;;  %519 = vrot.lane.b32.xlu0 %v7105_v23, %s6817_s21  ;;  %v538_v21 = vmul.f32 %v7105_v23, %v7105_v23 }
 0x220   :  { %v6624_v26 = vpop.eup %6623 }
 0x221   :  { %546 = vrot.lane.b32.xlu1 %v538_v21, %s6817_s21  ;;  %v7116_v27 = vadd.f32 %v306_v10, %v300_v24  ;;  %v294_v29 = vmul.f32 %v6624_v26, %v285_v25 }
 0x223   :  { %v7119_v30 = vmul.f32 0.70710677, %v7116_v27  ;;  %v301_v31 = vmul.f32 %v299_v17, %v294_v29 }
 0x224   :  { %v6626_v33 = vpop.eup %6625 }
 0x225   :  { %v316_v16 = vand.u32 2147483647, %v7119_v30  ;;  %v7123_v34 = vadd.f32 %v306_v10, %v301_v31  ;;  %v295_v35 = vmul.f32 %v6626_v33, %v286_v32  ;;  %vm376_vm5 = vcmp.ge.f32.partialorder %v7119_v30, 0.0 }
 0x227   :  { %v319_v36 = vmul.f32 0.3275911, %v316_v16  ;;  %v7126_v37 = vmul.f32 0.70710677, %v7123_v34  ;;  %v302_v38 = vmul.f32 %v299_v17, %v295_v35  ;;  %v358_v49 = vsub.f32 0.0, %v316_v16 }
 0x228   :  { %v311_v30 = vmul.f32 0.5, %v7123_v34 }
 0x229   :  { %v322_v39 = vadd.f32 1.0, %v319_v36  ;;  %v317_v40 = vand.u32 2147483647, %v7126_v37  ;;  %v7129_v41 = vadd.f32 %v306_v10, %v302_v38  ;;  %v361_v51 = vmul.f32 %v358_v49, %v316_v16 }
 0x22a   :  { %vm377_vm6 = vcmp.ge.f32.partialorder %v7126_v37, 0.0 }
 0x22b   :  { %6627 = vrcp.f32 %v322_v39  ;;  %v320_v42 = vmul.f32 0.3275911, %v317_v40  ;;  %v7132_v22 = vmul.f32 0.70710677, %v7129_v41  ;;  %v359_v52 = vsub.f32 0.0, %v317_v40 }
 0x22c   :  { %v364_v55 = vmul.f32 1.442695, %v361_v51 }
 0x22d   :  { %v323_v43 = vadd.f32 1.0, %v320_v42  ;;  %v318_v46 = vand.u32 2147483647, %v7132_v22  ;;  %v362_v56 = vmul.f32 %v359_v52, %v317_v40  ;;  %vm378_vm7 = vcmp.ge.f32.partialorder %v7132_v22, 0.0 }
 0x22f   :  { %6629 = vrcp.f32 %v323_v43  ;;  %v321_v48 = vmul.f32 0.3275911, %v318_v46  ;;  %v360_v57 = vsub.f32 0.0, %v318_v46  ;;  %v366_v62 = vmul.f32 1.442695, %v362_v56 }
 0x231   :  { %v324_v50 = vadd.f32 1.0, %v321_v48  ;;  %v363_v63 = vmul.f32 %v360_v57, %v318_v46  ;;  %v310_v48 = vmul.f32 0.5, %v7116_v27 }
 0x233   :  { %6631 = vrcp.f32 %v324_v50  ;;  %v368_v8 = vmul.f32 1.442695, %v363_v63 }
 0x234   :  { %6633 = vpow2.f32 %v364_v55 }
 0x235   :  { %6635 = vpow2.f32 %v366_v62 }
 0x236   :  { %6637 = vpow2.f32 %v368_v8 }
 0x238   :  { %v6628_v53 = vpop.eup %6627 }
 0x239   :  { %v331_v54 = vmul.f32 1.0614054, %v6628_v53 }
 0x23b   :  { %v334_v58 = vadd.f32 -1.4531521, %v331_v54 }
 0x23c   :  { %v6630_v59 = vpop.eup %6629 }
 0x23d   :  { %v337_v60 = vmul.f32 %v6628_v53, %v334_v58  ;;  %v332_v61 = vmul.f32 1.0614054, %v6630_v59 }
 0x23f   :  { %v340_v0 = vadd.f32 1.4214138, %v337_v60  ;;  %v335_v1 = vadd.f32 -1.4531521, %v332_v61 }
 0x240   :  { %v6632_v3 = vpop.eup %6631 }
 0x241   :  { %v343_v4 = vmul.f32 %v6628_v53, %v340_v0  ;;  %v338_v5 = vmul.f32 %v6630_v59, %v335_v1  ;;  %v333_v6 = vmul.f32 1.0614054, %v6632_v3  ;;  %v6634_v26 = vpop.eup %6633 }
 0x242   :  { %v6636_v36 = vpop.eup %6635 }
 0x243   :  { %v346_v12 = vadd.f32 -0.28449672, %v343_v4  ;;  %v341_v13 = vadd.f32 1.4214138, %v338_v5  ;;  %v336_v17 = vadd.f32 -1.4531521, %v333_v6  ;;  %v6638_v51 = vpop.eup %6637 }
 0x245   :  { %v349_v18 = vmul.f32 %v6628_v53, %v346_v12  ;;  %v344_v15 = vmul.f32 %v6630_v59, %v341_v13  ;;  %v339_v19 = vmul.f32 %v6632_v3, %v336_v17  ;;  %v7166_v12 = vsub.s32 5, %v6980_v44 }
 0x246   :  { %v7171_v17 = vsub.s32 4, %v6980_v44 }
 0x247   :  { %v352_v20 = vadd.f32 0.2548296, %v349_v18  ;;  %v347_v10 = vadd.f32 -0.28449672, %v344_v15  ;;  %v342_v24 = vadd.f32 1.4214138, %v339_v19  ;;  %v598_v13 = vrot.slane %v7008_v7, %v7166_v12 }
 0x248   :  { %9804 = vst [vmem:[#allocation13_spill] sm:$0xff] %v7166_v12  ;;  %9805 = vst [vmem:[#allocation14_spill] sm:$0xff] %v7171_v17  ;;  %v587_v18 = vrot.slane %v7008_v7, %v7171_v17  ;;  %v795_v15 = vld [vmem:[%s9720_s9 + $0x38] sm:$0xff]  ;;  %v794_v7 = vld [vmem:[%s9720_s9 + $0x30] sm:$0xff] }
 0x249   :  { %v355_v25 = vmul.f32 %v6628_v53, %v352_v20  ;;  %v350_v21 = vmul.f32 %v6630_v59, %v347_v10  ;;  %v345_v29 = vmul.f32 %v6632_v3, %v342_v24  ;;  %v958_v19 = vld [vmem:[%s9727_s16 + $0xf8] sm:$0xff]  ;;  %v957_v10 = vld [vmem:[%s9727_s16 + $0xf0] sm:$0xff] }
 0x24a   :  { %v942_v20 = vld [vmem:[%s9727_s16 + $0x78] sm:$0xff]  ;;  %5947 = vmatprep.subr.mxu1 %v958_v19  ;;  %v941_v24 = vld [vmem:[%s9727_s16 + $0x70] sm:$0xff] }
 0x24b   :  { %v370_v31 = vmul.f32 %v6634_v26, %v355_v25  ;;  %v353_v32 = vadd.f32 0.2548296, %v350_v21  ;;  %v348_v33 = vadd.f32 -0.28449672, %v345_v29  ;;  %5948 = vmatpush3.msra.mxu1 %v942_v20  ;;  %v793_v25 = vld [vmem:[%s9720_s9 + $0x28] sm:$0xff] }
 0x24c   :  { %v956_v21 = vld [vmem:[%s9727_s16 + $0xe8] sm:$0xff]  ;;  %5949 = vmatprep.subr.mxu1 %v957_v10  ;;  %v69_v29 = vld [vmem:[%s9715_s4] sm:$0xf] }
 0x24d   :  { %v373_v16 = vsub.f32 1.0, %v370_v31  ;;  %v356_v35 = vmul.f32 %v6630_v59, %v353_v32  ;;  %v351_v38 = vmul.f32 %v6632_v3, %v348_v33  ;;  %v312_v59 = vmul.f32 0.5, %v7129_v41  ;;  %v940_v26 = vld [vmem:[%s9727_s16 + $0x68] sm:$0xff]  ;;  %5950 = vmatpush3.msra.mxu1 %v941_v24  ;;  %v792_v31 = vld [vmem:[%s9720_s9 + $0x20] sm:$0xff] }
 0x24e   :  { %v955_v32 = vld [vmem:[%s9727_s16 + $0xe0] sm:$0xff]  ;;  %5951 = vmatprep.subr.mxu1 %v956_v21 }
 0x24f   :  { %v379_v39 = vsub.f32 0.0, %v373_v16  ;;  %v371_v40 = vmul.f32 %v6636_v36, %v356_v35  ;;  %v354_v42 = vadd.f32 0.2548296, %v351_v38  ;;  %v939_v33 = vld [vmem:[%s9727_s16 + $0x60] sm:$0xff]  ;;  %5952 = vmatpush3.msra.mxu1 %v940_v26  ;;  %v791_v35 = vld [vmem:[%s9720_s9 + $0x18] sm:$0xff] }
 0x250   :  { %v954_v36 = vld [vmem:[%s9727_s16 + $0xd8] sm:$0xff]  ;;  %5953 = vmatprep.subr.mxu1 %v955_v32 }
 0x251   :  { %v382_v43 = vsel %vm376_vm5, %v373_v16, %v379_v39  ;;  %v374_v46 = vsub.f32 1.0, %v371_v40  ;;  %v357_v50 = vmul.f32 %v6632_v3, %v354_v42  ;;  %v698_v39 = vrot.slane %v69_v29, %v6983_v45  ;;  %v938_v40 = vld [vmem:[%s9727_s16 + $0x58] sm:$0xff]  ;;  %5954 = vmatpush3.msra.mxu1 %v939_v33 }
 0x252   :  { %v385_v49 = vadd.f32 1.0, %v382_v43  ;;  %v790_v43 = vld [vmem:[%s9720_s9 + $0x10] sm:$0xff]  ;;  %5955 = vmatprep.subr.mxu1 %v954_v36 }
 0x253   :  { %v380_v52 = vsub.f32 0.0, %v374_v46  ;;  %v372_v54 = vmul.f32 %v6638_v51, %v357_v50  ;;  %v937_v50 = vld [vmem:[%s9727_s16 + $0x50] sm:$0xff]  ;;  %5956 = vmatpush3.msra.mxu1 %v938_v40 }
 0x254   :  { %v7137_v53 = vmul.f32 %v385_v49, %v310_v48 }
 0x255   :  { %v383_v55 = vsel %vm377_vm6, %v374_v46, %v380_v52  ;;  %v375_v57 = vsub.f32 1.0, %v372_v54  ;;  %v953_v46 = vld [vmem:[%s9727_s16 + $0xd0] sm:$0xff]  ;;  %v789_v52 = vld [vmem:[%s9720_s9 + $0x8] sm:$0xff] }
 0x256   :  { %9801 = vst [vmem:[#allocation10_spill] sm:$0xff] %v7137_v53  ;;  %6309 = vmatmul.mubr.msk.f32.vlgmr.msra.gmra.mxu0 %vm246_vm4, %v7137_v53  ;;  %v386_v56 = vadd.f32 1.0, %v383_v55  ;;  %5957 = vmatprep.subr.mxu1 %v953_v46 }
 0x257   :  { %6311 = vmatprep.mubr.msk.f32.mxu0 %vm6816_vm1, %v9733_v14  ;;  %v381_v58 = vsub.f32 0.0, %v375_v57  ;;  %6318 = vmatpush3.msra.mxu0 %v795_v15 }
 0x258   :  { %v7145_v27 = vmul.f32 %v386_v56, %v311_v30  ;;  %6319 = vmatprep.subr.mxu0 %v9733_v14  ;;  %v952_v30 = vld [vmem:[%s9727_s16 + $0xc8] sm:$0xff]  ;;  %5958 = vmatpush3.msra.mxu1 %v937_v50 }
 0x259   :  { %v384_v37 = vsel %vm378_vm7, %v375_v57, %v381_v58  ;;  %6320 = vmatpush3.msra.mxu0 %v794_v7  ;;  %v936_v58 = vld [vmem:[%s9727_s16 + $0x48] sm:$0xff]  ;;  %5959 = vmatprep.subr.mxu1 %v952_v30  ;;  %vm5627_vm7 = vcmask 7168  }
 0x25a   :  { %9802 = vst [vmem:[#allocation11_spill] sm:$0xff] %v7145_v27  ;;  %6312 = vmatmul.mubr.msk.f32.gmra.mxu0 %vm246_vm4, %v7145_v27  ;;  %v387_v34 = vadd.f32 1.0, %v384_v37  ;;  %6321 = vmatprep.subr.mxu0 %v9733_v14  ;;  %v788_v37 = vld [vmem:[%s9720_s9] sm:$0xff] }
 0x25b   :  { %6314 = vmatprep.mubr.msk.f32.mxu0 %vm6816_vm1, %v9733_v14  ;;  %6322 = vmatpush3.msra.mxu0 %v793_v25 }
 0x25c   :  { %v7153_v60 = vmul.f32 %v387_v34, %v312_v59  ;;  %6323 = vmatprep.subr.mxu0 %v9733_v14  ;;  %5960 = vmatpush3.msra.mxu1 %v936_v58 }
 0x25d   :  { %6324 = vmatpush3.msra.mxu0 %v792_v31 }
 0x25e   :  { %9803 = vst [vmem:[#allocation12_spill] sm:$0xff] %v7153_v60  ;;  %6315 = vmatmul.mubr.msk.f32.gmra.mxu0 %vm246_vm4, %v7153_v60  ;;  %6325 = vmatprep.subr.mxu0 %v9733_v14 }
 0x25f   :  { %6333 = vmatprep.mubr.msk.f32.mxu0 %vm6816_vm1, %v9733_v14  ;;  %6326 = vmatpush3.msra.mxu0 %v791_v35 }
 0x260   :  { %6327 = vmatprep.subr.mxu0 %v9733_v14 }
 0x261   :  { %6328 = vmatpush3.msra.mxu0 %v790_v43 }
 0x262   :  { %6329 = vmatprep.subr.mxu0 %v9733_v14 }
 0x263   :  { %6330 = vmatpush3.msra.mxu0 %v789_v52 }
 0x264   :  { %6331 = vmatprep.subr.mxu0 %v9733_v14 }
 0x265   :  { %6332 = vmatpush3.msra.mxu0 %v788_v37 }
 0x266   :  { %6342 = vmatprep.subr.mxu0 %v9733_v14 }
 0x287   :  { %v516_v61 = vpop.permute.xlu0 %515 }
 0x288   :  { %v524_v22 = vsel %vm246_vm4, %v516_v61, 0.0  ;;  %v951_v61 = vld [vmem:[%s9727_s16 + $0xc0] sm:$0xff] }
 0x289   :  { %525 = vadd.xlane.f32.xlu0 %v524_v22  ;;  %v543_v62 = vpop.permute.xlu1 %542  ;;  %5961 = vmatprep.subr.mxu1 %v951_v61 }
 0x28a   :  { %v551_v63 = vsel %vm246_vm4, %v543_v62, 0.0  ;;  %v935_v62 = vld [vmem:[%s9727_s16 + $0x40] sm:$0xff] }
 0x28b   :  { %552 = vadd.xlane.f32.xlu1 %v551_v63  ;;  %5962 = vmatpush3.msra.mxu1 %v935_v62 }
 0x28d   :  { %v518_v0 = vpop.permute.xlu0 %517 }
 0x28e   :  { %v527_v41 = vsel %vm246_vm4, %v518_v0, 0.0 }
 0x28f   :  { %528 = vadd.xlane.f32.xlu0 %v527_v41  ;;  %v545_v1 = vpop.permute.xlu1 %544 }
 0x290   :  { %v554_v3 = vsel %vm246_vm4, %v545_v1, 0.0 }
 0x291   :  { %v520_v4 = vpop.permute.xlu0 %519 }
 0x292   :  { %v530_v8 = vsel %vm246_vm4, %v520_v4, 0.0 }
 0x293   :  { %555 = vadd.xlane.f32.xlu0 %v554_v3  ;;  %v547_v5 = vpop.permute.xlu1 %546 }
 0x294   :  { %v557_v6 = vsel %vm246_vm4, %v547_v5, 0.0 }
 0x295   :  { %558 = vadd.xlane.f32.xlu1 %v557_v6 }
 0x297   :  { %531 = vadd.xlane.f32.xlu0 %v530_v8 }
 0x2a6   :  { %600 = vrot.lane.b32.xlu1 %v598_v13, %s6817_s21 }
 0x2ad   :  { %589 = vrot.lane.b32.xlu0 %v587_v18, %s6817_s21 }
 0x312   :  { %v526_v16 = vpop.xlane.xlu0 %525 }
 0x313   :  { %v7225_v38 = vmul.f32 0.015625, %v526_v16 }
 0x314   :  { %v553_v42 = vpop.xlane.xlu1 %552 }
 0x315   :  { %v563_v48 = vmul.f32 %v7225_v38, %v7225_v38  ;;  %v560_v49 = vmul.f32 0.015625, %v553_v42  ;;  %v572_v26 = vsub.f32 %v7084_v2, %v7225_v38 }
 0x316   :  { %v774_v51 = vpop.f32.mrf.mxu0 }
 0x317   :  { %v566_v54 = vsub.f32 %v560_v49, %v563_v48  ;;  %v7247_v55 = vadd.f32 %v774_v51, %v698_v39 }
 0x318   :  { %v529_v56 = vpop.xlane.xlu0 %528  ;;  %v6310_v57 = vpop.f32.mrf.mxu0 }
 0x319   :  { %v569_v59 = vmax.f32 %v566_v54, 0.0  ;;  %v534_v34 = vmul.f32 0.015625, %v529_v56  ;;  %896 = vrot.lane.b32.xlu0 %v7247_v55, %s6817_s21 }
 0x31a   :  { %v779_v22 = vpop.f32.mrf.mxu0 }
 0x31b   :  { %v575_v63 = vadd.f32 1e-05, %v569_v59  ;;  %v7268_v0 = vadd.f32 %v779_v22, %v698_v39  ;;  %v564_v3 = vmul.f32 %v534_v34, %v534_v34 }
 0x31c   :  { %v556_v41 = vpop.xlane.xlu0 %555  ;;  %v6313_v1 = vpop.f32.mrf.mxu0 }
 0x31d   :  { %6639 = vrsqrt.f32 %v575_v63  ;;  %v561_v4 = vmul.f32 0.015625, %v556_v41 }
 0x31e   :  { %v784_v6 = vpop.f32.mrf.mxu0  ;;  %v559_v8 = vpop.xlane.xlu1 %558 }
 0x31f   :  { %v567_v5 = vsub.f32 %v561_v4, %v564_v3  ;;  %v7271_v13 = vadd.f32 %v784_v6, %v698_v39  ;;  %v562_v10 = vmul.f32 0.015625, %v559_v8  ;;  %v573_v39 = vsub.f32 %v7092_v9, %v534_v34 }
 0x320   :  { %v532_v18 = vpop.xlane.xlu0 %531  ;;  %v6316_v20 = vpop.f32.mrf.mxu0 }
 0x321   :  { %v570_v15 = vmax.f32 %v567_v5, 0.0  ;;  %v535_v19 = vmul.f32 0.015625, %v532_v18 }
 0x322   :  { %v601_v16 = vpop.permute.xlu1 %600 }
 0x323   :  { %v576_v7 = vadd.f32 1e-05, %v570_v15  ;;  %v565_v24 = vmul.f32 %v535_v19, %v535_v19  ;;  %v574_v38 = vsub.f32 %v7105_v23, %v535_v19 }
 0x324   :  { %v590_v32 = vpop.permute.xlu0 %589 }
 0x325   :  { %6641 = vrsqrt.f32 %v576_v7  ;;  %v568_v25 = vsub.f32 %v562_v10, %v565_v24 }
 0x327   :  { %v571_v21 = vmax.f32 %v568_v25, 0.0 }
 0x329   :  { %v577_v29 = vadd.f32 1e-05, %v571_v21 }
 0x32a   :  { %v6640_v31 = vpop.eup %6639 }
 0x32b   :  { %6643 = vrsqrt.f32 %v577_v29  ;;  %v581_v33 = vmul.f32 %v6640_v31, %v572_v26 }
 0x32d   :  { %v592_v35 = vmul.f32 %v590_v32, %v581_v33 }
 0x32f   :  { %v7275_v36 = vadd.f32 %v601_v16, %v592_v35 }
 0x331   :  { %v7279_v40 = vmul.f32 0.70710677, %v7275_v36 }
 0x332   :  { %v6642_v42 = vpop.eup %6641 }
 0x333   :  { %v582_v43 = vmul.f32 %v6642_v42, %v573_v39  ;;  %v612_v46 = vand.u32 2147483647, %v7279_v40  ;;  %v950_v42 = vld [vmem:[%s9727_s16 + $0xb8] sm:$0xff]  ;;  %vm672_vm8 = vcmp.ge.f32.partialorder %v7279_v40, 0.0 }
 0x334   :  { %5963 = vmatprep.subr.mxu1 %v950_v42  ;;  %v930_v40 = vld [vmem:[%s9727_s16 + $0x18] sm:$0xff] }
 0x335   :  { %v593_v48 = vmul.f32 %v590_v32, %v582_v43  ;;  %v615_v2 = vmul.f32 0.3275911, %v612_v46  ;;  %v654_v23 = vsub.f32 0.0, %v612_v46 }
 0x337   :  { %v7283_v49 = vadd.f32 %v601_v16, %v593_v48  ;;  %v618_v50 = vadd.f32 1.0, %v615_v2  ;;  %v657_v61 = vmul.f32 %v654_v23, %v612_v46  ;;  %v934_v46 = vld [vmem:[%s9727_s16 + $0x38] sm:$0xff] }
 0x338   :  { %v6644_v51 = vpop.eup %6643  ;;  %5964 = vmatpush3.msra.mxu1 %v934_v46 }
 0x339   :  { %v583_v52 = vmul.f32 %v6644_v51, %v574_v38  ;;  %v7286_v54 = vmul.f32 0.70710677, %v7283_v49  ;;  %6645 = vrcp.f32 %v618_v50  ;;  %v660_v41 = vmul.f32 1.442695, %v657_v61  ;;  %v949_v50 = vld [vmem:[%s9727_s16 + $0xb0] sm:$0xff]  ;;  %v947_v61 = vld [vmem:[%s9727_s16 + $0xa0] sm:$0xff] }
 0x33a   :  { %5965 = vmatprep.subr.mxu1 %v949_v50  ;;  %v933_v51 = vld [vmem:[%s9727_s16 + $0x30] sm:$0xff]  ;;  %v970_v50 = vld [vmem:[%s9727_s16 + $0x158] sm:$0xff] }
 0x33b   :  { %v594_v9 = vmul.f32 %v590_v32, %v583_v52  ;;  %v613_v30 = vand.u32 2147483647, %v7286_v54  ;;  %5966 = vmatpush3.msra.mxu1 %v933_v51  ;;  %vm673_vm9 = vcmp.ge.f32.partialorder %v7286_v54, 0.0 }
 0x33d   :  { %v7289_v56 = vadd.f32 %v601_v16, %v594_v9  ;;  %v616_v57 = vmul.f32 0.3275911, %v613_v30  ;;  %v655_v63 = vsub.f32 0.0, %v613_v30 }
 0x33f   :  { %v7292_v58 = vmul.f32 0.70710677, %v7289_v56  ;;  %v619_v37 = vadd.f32 1.0, %v616_v57  ;;  %v658_v4 = vmul.f32 %v655_v63, %v613_v30  ;;  %v948_v57 = vld [vmem:[%s9727_s16 + $0xa8] sm:$0xff] }
 0x340   :  { %5967 = vmatprep.subr.mxu1 %v948_v57 }
 0x341   :  { %v614_v59 = vand.u32 2147483647, %v7292_v58  ;;  %6647 = vrcp.f32 %v619_v37  ;;  %v662_v15 = vmul.f32 1.442695, %v658_v4  ;;  %v932_v37 = vld [vmem:[%s9727_s16 + $0x28] sm:$0xff]  ;;  %v606_v4 = vmul.f32 0.5, %v7275_v36 }
 0x342   :  { %5968 = vmatpush3.msra.mxu1 %v932_v37  ;;  %v929_v36 = vld [vmem:[%s9727_s16 + $0x10] sm:$0xff]  ;;  %vm674_vm10 = vcmp.ge.f32.partialorder %v7292_v58, 0.0 }
 0x343   :  { %v617_v34 = vmul.f32 0.3275911, %v614_v59  ;;  %v656_v6 = vsub.f32 0.0, %v614_v59  ;;  %5969 = vmatprep.subr.mxu1 %v947_v61  ;;  %v967_v61 = vld [vmem:[%s9727_s16 + $0x140] sm:$0xff] }
 0x345   :  { %v620_v22 = vadd.f32 1.0, %v617_v34  ;;  %v659_v7 = vmul.f32 %v656_v6, %v614_v59 }
 0x346   :  { %v6646_v62 = vpop.eup %6645 }
 0x347   :  { %6649 = vrcp.f32 %v620_v22  ;;  %v627_v1 = vmul.f32 1.0614054, %v6646_v62  ;;  %v664_v29 = vmul.f32 1.442695, %v659_v7  ;;  %v931_v22 = vld [vmem:[%s9727_s16 + $0x20] sm:$0xff]  ;;  %v944_v7 = vld [vmem:[%s9727_s16 + $0x88] sm:$0xff] }
 0x348   :  { %6651 = vpow2.f32 %v660_v41  ;;  %5970 = vmatpush3.msra.mxu1 %v931_v22 }
 0x349   :  { %v630_v3 = vadd.f32 -1.4531521, %v627_v1  ;;  %6653 = vpow2.f32 %v662_v15  ;;  %v946_v1 = vld [vmem:[%s9727_s16 + $0x98] sm:$0xff] }
 0x34a   :  { %6655 = vpow2.f32 %v664_v29  ;;  %5971 = vmatprep.subr.mxu1 %v946_v1  ;;  %v964_v1 = vld [vmem:[%s9727_s16 + $0x128] sm:$0xff] }
 0x34b   :  { %v633_v5 = vmul.f32 %v6646_v62, %v630_v3  ;;  %5972 = vmatpush3.msra.mxu1 %v930_v40  ;;  %v961_v40 = vld [vmem:[%s9727_s16 + $0x110] sm:$0xff] }
 0x34d   :  { %v636_v8 = vadd.f32 1.4214138, %v633_v5 }
 0x34e   :  { %v6648_v18 = vpop.eup %6647 }
 0x34f   :  { %v639_v19 = vmul.f32 %v6646_v62, %v636_v8  ;;  %v628_v20 = vmul.f32 1.0614054, %v6648_v18 }
 0x351   :  { %v642_v10 = vadd.f32 -0.28449672, %v639_v19  ;;  %v631_v24 = vadd.f32 -1.4531521, %v628_v20 }
 0x353   :  { %v645_v25 = vmul.f32 %v6646_v62, %v642_v10  ;;  %v634_v21 = vmul.f32 %v6648_v18, %v631_v24  ;;  %v928_v10 = vld [vmem:[%s9727_s16 + $0x8] sm:$0xff] }
 0x354   :  { %v6650_v26 = vpop.eup %6649 }
 0x355   :  { %v648_v31 = vadd.f32 0.2548296, %v645_v25  ;;  %v637_v32 = vadd.f32 1.4214138, %v634_v21  ;;  %v629_v33 = vmul.f32 1.0614054, %v6650_v26  ;;  %v6652_v43 = vpop.eup %6651 }
 0x356   :  { %v6654_v3 = vpop.eup %6653  ;;  %v943_v21 = vld [vmem:[%s9727_s16 + $0x80] sm:$0xff] }
 0x357   :  { %v651_v16 = vmul.f32 %v6646_v62, %v648_v31  ;;  %v640_v35 = vmul.f32 %v6648_v18, %v637_v32  ;;  %v632_v39 = vadd.f32 -1.4531521, %v629_v33  ;;  %v6656_v29 = vpop.eup %6655  ;;  %v927_v31 = vld [vmem:[%s9727_s16] sm:$0xff] }
 0x359   :  { %v666_v48 = vmul.f32 %v6652_v43, %v651_v16  ;;  %v643_v2 = vadd.f32 -0.28449672, %v640_v35  ;;  %v635_v38 = vmul.f32 %v6650_v26, %v632_v39  ;;  %v607_v16 = vmul.f32 0.5, %v7283_v49  ;;  %v974_v49 = vld [vmem:[%s9727_s16 + $0x178] sm:$0xff] }
 0x35a   :  { %v608_v43 = vmul.f32 0.5, %v7289_v56  ;;  %v973_v56 = vld [vmem:[%s9727_s16 + $0x170] sm:$0xff] }
 0x35b   :  { %v669_v52 = vsub.f32 1.0, %v666_v48  ;;  %v646_v9 = vmul.f32 %v6648_v18, %v643_v2  ;;  %v638_v30 = vadd.f32 1.4214138, %v635_v38  ;;  %v972_v2 = vld [vmem:[%s9727_s16 + $0x168] sm:$0xff]  ;;  %v971_v38 = vld [vmem:[%s9727_s16 + $0x160] sm:$0xff] }
 0x35d   :  { %v675_v23 = vsub.f32 0.0, %v669_v52  ;;  %v649_v59 = vadd.f32 0.2548296, %v646_v9  ;;  %v641_v34 = vmul.f32 %v6650_v26, %v638_v30  ;;  %v968_v30 = vld [vmem:[%s9727_s16 + $0x148] sm:$0xff] }
 0x35f   :  { %v678_v62 = vsel %vm672_vm8, %v669_v52, %v675_v23  ;;  %v652_v63 = vmul.f32 %v6648_v18, %v649_v59  ;;  %v644_v41 = vadd.f32 -0.28449672, %v641_v34  ;;  %v945_v18 = vld [vmem:[%s9727_s16 + $0x90] sm:$0xff]  ;;  %vm5629_vm8 = vcmask 15360  }
 0x360   :  { %v681_v5 = vadd.f32 1.0, %v678_v62  ;;  %5973 = vmatprep.subr.mxu1 %v945_v18  ;;  %v969_v52 = vld [vmem:[%s9727_s16 + $0x150] sm:$0xff]  ;;  %v959_v18 = vld [vmem:[%s9727_s16 + $0x100] sm:$0xff] }
 0x361   :  { %v667_v6 = vmul.f32 %v6654_v3, %v652_v63  ;;  %v647_v8 = vmul.f32 %v6650_v26, %v644_v41  ;;  %5974 = vmatpush3.msra.mxu1 %v929_v36  ;;  %v965_v41 = vld [vmem:[%s9727_s16 + $0x130] sm:$0xff]  ;;  %v963_v3 = vld [vmem:[%s9727_s16 + $0x120] sm:$0xff] }
 0x362   :  { %v7330_v15 = vmul.f32 %v681_v5, %v606_v4  ;;  %5975 = vmatprep.subr.mxu1 %v944_v7  ;;  %v962_v4 = vld [vmem:[%s9727_s16 + $0x118] sm:$0xff] }
 0x363   :  { %v670_v19 = vsub.f32 1.0, %v667_v6  ;;  %v650_v20 = vadd.f32 0.2548296, %v647_v8  ;;  %5976 = vmatpush3.msra.mxu1 %v928_v10  ;;  %v960_v6 = vld [vmem:[%s9727_s16 + $0x108] sm:$0xff] }
 0x364   :  { %803 = vrot.lane.b32.xlu1 %v7330_v15, %s6817_s21  ;;  %5977 = vmatprep.subr.mxu1 %v943_v21 }
 0x365   :  { %v676_v24 = vsub.f32 0.0, %v670_v19  ;;  %v653_v25 = vmul.f32 %v6650_v26, %v650_v20  ;;  %5978 = vmatpush3.msra.mxu1 %v927_v31  ;;  %v7459_v20 = vld [vmem:[%s9714_s3] sm:$0xff] }
 0x367   :  { %v679_v32 = vsel %vm673_vm9, %v670_v19, %v676_v24  ;;  %v668_v33 = vmul.f32 %v6656_v29, %v653_v25  ;;  %vm5648_vm9 = vcmask 23552  }
 0x368   :  { %v682_v35 = vadd.f32 1.0, %v679_v32 }
 0x369   :  { %v671_v26 = vsub.f32 1.0, %v668_v33 }
 0x36a   :  { %v7351_v39 = vmul.f32 %v682_v35, %v607_v16 }
 0x36b   :  { %v677_v42 = vsub.f32 0.0, %v671_v26 }
 0x36c   :  { %805 = vrot.lane.b32.xlu1 %v7351_v39, %s6817_s21 }
 0x36d   :  { %v680_v54 = vsel %vm674_vm10, %v671_v26, %v677_v42  ;;  %vm5650_vm10 = vcmask 220160  }
 0x36e   :  { %v683_v46 = vadd.f32 1.0, %v680_v54 }
 0x370   :  { %900 = vrot.lane.b32.xlu1 %v7268_v0, %s6817_s21  ;;  %v7359_v48 = vmul.f32 %v683_v46, %v608_v43 }
 0x372   :  { %807 = vrot.lane.b32.xlu0 %v7359_v48, %s6817_s21 }
 0x374   :  { %904 = vrot.lane.b32.xlu1 %v7271_v13, %s6817_s21 }
 0x38b   :  { %v897_v9 = vpop.permute.xlu0 %896 }
 0x38c   :  { %v907_v37 = vsel %vm246_vm4, %v7247_v55, %v897_v9  ;;  %v911_v23 = vsel %vm246_vm4, %v897_v9, %v7271_v13  ;;  %v966_v55 = vld [vmem:[%s9727_s16 + $0x138] sm:$0xff]  ;;  %v912_v36 = vsel %vm246_vm4, %v897_v9, %v7268_v0  ;;  %s6818_s16 = smov 124  }
 0x3d6   :  { %v804_v58 = vpop.permute.xlu1 %803 }
 0x3d7   :  { %6334 = vmatmul.mubr.msk.f32.vlgmr.msra.gmra.mxu0 %vm246_vm4, %v804_v58 }
 0x3d8   :  { %6343 = vmatpush3.msra.mxu0 %v974_v49  ;;  %6336 = vmatprep.mubr.msk.f32.mxu0 %vm6816_vm1, %v9733_v14 }
 0x3d9   :  { %6344 = vmatprep.subr.mxu0 %v9733_v14 }
 0x3da   :  { %6345 = vmatpush3.msra.mxu0 %v973_v56 }
 0x3db   :  { %6346 = vmatprep.subr.mxu0 %v9733_v14 }
 0x3dc   :  { %6347 = vmatpush3.msra.mxu0 %v972_v2 }
 0x3dd   :  { %6348 = vmatprep.subr.mxu0 %v9733_v14 }
 0x3de   :  { %6349 = vmatpush3.msra.mxu0 %v971_v38  ;;  %v806_v51 = vpop.permute.xlu1 %805 }
 0x3df   :  { %6350 = vmatprep.subr.mxu0 %v9733_v14  ;;  %6337 = vmatmul.mubr.msk.f32.gmra.mxu0 %vm246_vm4, %v806_v51 }
 0x3e0   :  { %6351 = vmatpush3.msra.mxu0 %v970_v50  ;;  %6339 = vmatprep.mubr.msk.f32.mxu0 %vm6816_vm1, %v9733_v14 }
 0x3e1   :  { %6352 = vmatprep.subr.mxu0 %v9733_v14 }
 0x3e2   :  { %6353 = vmatpush3.msra.mxu0 %v969_v52  ;;  %v901_v57 = vpop.permute.xlu1 %900 }
 0x3e3   :  { %6354 = vmatprep.subr.mxu0 %v9733_v14  ;;  %v908_v59 = vsel %vm246_vm4, %v7268_v0, %v901_v57  ;;  %v910_v34 = vsel %vm246_vm4, %v901_v57, %v7271_v13  ;;  %v1158_v57 = vld [vmem:[%s9728_s17 + $0x38] sm:$0xff] }
 0x3e4   :  { %v924_v22 = vmul.f32 %v910_v34, %v907_v37  ;;  %v925_v62 = vmul.f32 %v911_v23, %v908_v59  ;;  %6355 = vmatpush3.msra.mxu0 %v968_v30  ;;  %v808_v63 = vpop.permute.xlu0 %807  ;;  %1190 = vmatprep.subr.mxu1 %v1158_v57  ;;  %v1157_v37 = vld [vmem:[%s9728_s17 + $0x30] sm:$0xff]  ;;  %v1159_v23 = vld [vmem:[%s9728_s17 + $0x40] sm:$0xff]  ;;  %v1154_v34 = vld [vmem:[%s9728_s17 + $0x18] sm:$0xff] }
 0x3e5   :  { %6356 = vmatprep.subr.mxu0 %v9733_v14  ;;  %6340 = vmatmul.mubr.msk.f32.gmra.mxu0 %vm246_vm4, %v808_v63  ;;  %v1155_v59 = vld [vmem:[%s9728_s17 + $0x20] sm:$0xff]  ;;  %v1153_v63 = vld [vmem:[%s9728_s17 + $0x10] sm:$0xff] }
 0x3e6   :  { %6357 = vmatpush3.msra.mxu0 %v967_v61  ;;  %1039 = vmatprep.mubr.f32.mxu1 %v925_v62  ;;  %v905_v5 = vpop.permute.xlu1 %904  ;;  %v1156_v61 = vld [vmem:[%s9728_s17 + $0x28] sm:$0xff]  ;;  %v1151_v62 = vld [vmem:[%s9728_s17] sm:$0xff] }
 0x3e7   :  { %6358 = vmatprep.subr.mxu0 %v9733_v14  ;;  %1040 = vmatmul.mubr.f32.vlgmr.msra.gmra.mxu1 %v924_v22  ;;  %v909_v8 = vsel %vm246_vm4, %v7271_v13, %v905_v5  ;;  %v7454_v13 = vsub.s32 6, %v6980_v44  ;;  %v1152_v22 = vld [vmem:[%s9728_s17 + $0x8] sm:$0xff] }
 0x3e8   :  { %6359 = vmatpush3.msra.mxu0 %v966_v55  ;;  %6374 = vmatprep.mubr.msk.f32.mxu0 %vm6816_vm1, %v9733_v14  ;;  %v926_v19 = vmul.f32 %v912_v36, %v909_v8 }
 0x3e9   :  { %6360 = vmatprep.subr.mxu0 %v9733_v14  ;;  %1228 = vmatprep.mubr.f32.mxu1 %v9733_v14  ;;  %v799_v0 = vrot.slane %v7459_v20, %v7454_v13 }
 0x3ea   :  { %6361 = vmatpush3.msra.mxu0 %v965_v41  ;;  %1191 = vmatpush1.msra.mxu1 %v1157_v37 }
 0x3eb   :  { %6362 = vmatprep.subr.mxu0 %v9733_v14  ;;  %1192 = vmatprep.subr.mxu1 %v1155_v59 }
 0x3ec   :  { %6363 = vmatpush3.msra.mxu0 %v964_v1  ;;  %1193 = vmatpush1.msra.mxu1 %v1154_v34 }
 0x3ed   :  { %6364 = vmatprep.subr.mxu0 %v9733_v14  ;;  %1194 = vmatprep.subr.mxu1 %v1152_v22 }
 0x3ee   :  { %6365 = vmatpush3.msra.mxu0 %v963_v3  ;;  %1195 = vmatpush1.msra.mxu1 %v1151_v62  ;;  %v67_v62 = vld [vmem:[%s9714_s3 + $0x8] sm:$0xff] }
 0x3ef   :  { %6366 = vmatprep.subr.mxu0 %v9733_v14 }
 0x3f0   :  { %6367 = vmatpush3.msra.mxu0 %v962_v4 }
 0x3f1   :  { %6368 = vmatprep.subr.mxu0 %v9733_v14 }
 0x3f2   :  { %6369 = vmatpush3.msra.mxu0 %v961_v40 }
 0x3f3   :  { %6370 = vmatprep.subr.mxu0 %v9733_v14 }
 0x3f4   :  { %6371 = vmatpush3.msra.mxu0 %v960_v6 }
 0x3f5   :  { %6372 = vmatprep.subr.mxu0 %v9733_v14 }
 0x3f6   :  { %6373 = vmatpush3.msra.mxu0 %v959_v18 }
 0x3f7   :  { %6375 = vmatmul.mubr.f32.vlgmr.msra.gmra.mxu0 %v926_v19  ;;  %6377 = vmatprep.subr.mxu0 %v9733_v14 }
 0x3f8   :  { %6383 = vmatprep.mubr.msk.f32.mxu0 %vm6816_vm1, %v9733_v14  ;;  %6378 = vmatpush3.msra.mxu0 %v1159_v23 }
 0x3f9   :  { %6379 = vmatprep.subr.mxu0 %v9733_v14 }
 0x3fa   :  { %6380 = vmatpush3.msra.mxu0 %v1156_v61 }
 0x3fb   :  { %6381 = vmatprep.subr.mxu0 %v9733_v14 }
 0x3fc   :  { %6382 = vmatpush3.msra.mxu0 %v1153_v63  ;;  %v1424_v63 = vrot.slane %v67_v62, %v6983_v45 }
 0x497   :  { %v881_v7 = vpop.f32.mrf.mxu0 }
 0x498   :  { %v7463_v10 = vadd.f32 %v881_v7, %v799_v0 }
 0x499   :  { %v6335_v24 = vpop.f32.mrf.mxu0 }
 0x49f   :  { %v886_v25 = vpop.f32.mrf.mxu0 }
 0x4a0   :  { %v7465_v21 = vadd.f32 %v886_v25, %v799_v0 }
 0x4a1   :  { %v6338_v29 = vpop.f32.mrf.mxu0 }
 0x4a5   :  { %v891_v31 = vpop.f32.mrf.mxu0 }
 0x4a6   :  { %v892_v38 = vadd.f32 %v891_v31, %v799_v0 }
 0x4a7   :  { %v6341_v32 = vpop.f32.mrf.mxu0  ;;  %v5979_v33 = vpop.f32.mrf.mxu1 }
 0x4a9   :  { %v5980_v16 = vpop.f32.mrf.mxu1 }
 0x4aa   :  { %v5981_v35 = vadd.f32 %v5980_v16, %v5979_v33 }
 0x4b7   :  { %v1111_v26 = vpop.f32.mrf.mxu0 }
 0x4b8   :  { %v7467_v42 = vadd.f32 %v5981_v35, %v1111_v26 }
 0x4b9   :  { %v6376_v54 = vpop.f32.mrf.mxu0 }
 0x4ba   :  { %9806 = vst [vmem:[#allocation15_spill] sm:$0xff] %v7467_v42  ;;  %1116 = vrot.lane.b32.xlu0 %v7467_v42, %s6818_s16 }
 0x52c   :  { %v1117_v43 = vpop.permute.xlu0 %1116 }
 0x52d   :  { %v1119_v46 = vmax.f32 %v7467_v42, %v1117_v43 }
 0x52f   :  { %1124 = vrot.lane.b32.xlu1 %v1119_v46, %s6819_s29  ;;  %v1120_v50 = vsub.f32 %v7467_v42, %v1119_v46 }
 0x531   :  { %v1121_v51 = vmul.f32 1.442695, %v1120_v50 }
 0x5a1   :  { %v1125_v49 = vpop.permute.xlu1 %1124 }
 0x5a2   :  { %v1127_v58 = vsub.f32 %v7467_v42, %v1125_v49 }
 0x5a4   :  { %v1128_v56 = vmul.f32 1.442695, %v1127_v58 }
 0x5a6   :  { %6657 = vpow2.f32 %v1128_v56 }
 0x5a7   :  { %6659 = vpow2.f32 %v1121_v51 }
 0x5b3   :  { %v6658_v2 = vpop.eup %6657 }
 0x5b4   :  { %1131 = vrot.lane.b32.xlu0 %v6658_v2, %s6818_s16  ;;  %v6660_v52 = vpop.eup %6659 }
 0x5b8   :  { %914 = vrot.lane.b32.xlu0 %v892_v38, %s6817_s21 }
 0x626   :  { %v1132_v9 = vpop.permute.xlu0 %1131 }
 0x627   :  { %v1134_v30 = vadd.f32 %v6660_v52, %v1132_v9 }
 0x629   :  { %6661 = vrcp.f32 %v1134_v30 }
 0x62a   :  { %v915_v18 = vpop.permute.xlu0 %914 }
 0x62b   :  { %v921_v36 = vsel %vm246_vm4, %v7465_v21, %v915_v18  ;;  %v922_v25 = vsel %vm246_vm4, %v7463_v10, %v915_v18  ;;  %v1466_v18 = vld [vmem:[%s9721_s10 + $0x100] sm:$0xff] }
 0x636   :  { %v6662_v55 = vpop.eup %6661 }
 0x637   :  { %v7504_v41 = vmul.f32 %v6662_v55, %v6660_v52  ;;  %1138 = vrot.lane.b32.xlu1 %v6662_v55, %s6819_s29  ;;  %v9732_v55 = vsub.s32 7, %v6980_v44 }
 0x639   :  { %9807 = vst [vmem:[#allocation16_spill] sm:$0xff] %v7504_v41 }
 0x63b   :  { %918 = vrot.lane.b32.xlu1 %v7465_v21, %s6817_s21 }
 0x6a9   :  { %v1139_v1 = vpop.permute.xlu1 %1138 }
 0x6aa   :  { %v7509_v3 = vmul.f32 %v6658_v2, %v1139_v1  ;;  %v1413_v1 = vrot.slane %v7459_v20, %v9732_v55  ;;  %v1491_v20 = vld [vmem:[%s9721_s10 + $0x1c8] sm:$0xff] }
 0x6ac   :  { %9808 = vst [vmem:[#allocation17_spill] sm:$0xff] %v7509_v3  ;;  %v1143_v4 = vsel %vm1142_vm11, %v7504_v41, %v7509_v3  ;;  %vm5652_vm11 = vcmask 252928  }
 0x6ad   :  { %v1145_v5 = vsel %vm1144_vm12, %v1143_v4, %v7504_v41  ;;  %v919_v7 = vpop.permute.xlu1 %918  ;;  %v1482_v4 = vld [vmem:[%s9721_s10 + $0x180] sm:$0xff]  ;;  %vm5654_vm12 = vcmask 285696  }
 0x6ae   :  { %v1147_v40 = vsel %vm1146_vm13, %v1145_v5, %v7509_v3  ;;  %v923_v33 = vsel %vm246_vm4, %v7463_v10, %v919_v7  ;;  %v1490_v5 = vld [vmem:[%s9721_s10 + $0x1c0] sm:$0xff]  ;;  %vm5656_vm13 = vcmask 318464  }
 0x6af   :  { %v1148_v6 = vsel %vm84_vm0, %v1147_v40, %v7504_v41  ;;  %v1483_v40 = vld [vmem:[%s9721_s10 + $0x188] sm:$0xff] }
 0x6b0   :  { %v1150_v8 = vsel %vm1149_vm14, %v1148_v6, %v7509_v3  ;;  %v5748_v6 = vcombine.low %v1482_v4, %v1490_v5  ;;  %v5751_v7 = vcombine.high %v1483_v40, %v1491_v20  ;;  %vm5658_vm14 = vcmask 351232  }
 0x6b1   :  { %5698 = vmatmul.mubr.msk.f32.vlgmr.msra.gmra.mxu1 %vm1160_vm15, %v1150_v8  ;;  %6384 = vmatmul.mubr.msk.f32.vlgmr.msra.gmra.mxu0 %vm1160_vm15, %v1150_v8  ;;  %v5749_v8 = vcombine.high %v1482_v4, %v1490_v5  ;;  %vm5660_vm15 = vcmask 384000  }
 0x6b2   :  { %2041 = vmatprep.subr.bf16.mxu0 %v5751_v7 }
 0x6b3   :  { %1990 = vmatprep.subr.bf16.mxu1 %v5749_v8 }
 0x6b4   :  { %1991 = vmatpush1.bf16.msra.mxu1 %v5748_v6 }
 0x771   :  { %v1230_v19 = vpop.f32.mrf.mxu1  ;;  %v1301_v0 = vpop.f32.mrf.mxu0 }
 0x772   :  { %v1305_v24 = vmul.f32 %v1230_v19, %v921_v36  ;;  %v1307_v16 = vmul.f32 %v1301_v0, %v923_v33  ;;  %v1474_v36 = vld [vmem:[%s9721_s10 + $0x140] sm:$0xff]  ;;  %v6820_v19 = vmov 0   ;;  %v5750_v0 = vcombine.low %v1483_v40, %v1491_v20 }
 0x773   :  { %v1232_v29 = vpop.f32.mrf.mxu1  ;;  %v6385_v31 = vpop.f32.mrf.mxu0  ;;  %2014 = vmatprep.mubr.bf16.mxu1 %v6820_v19  ;;  %2065 = vmatprep.mubr.bf16.mxu0 %v6820_v19  ;;  %v1458_v33 = vld [vmem:[%s9721_s10 + $0xc0] sm:$0xff] }
 0x774   :  { %v1306_v32 = vmul.f32 %v1232_v29, %v922_v25  ;;  %1309 = vrot.lane.b32.xlu0 %v1305_v24, %s6817_s21  ;;  %v1467_v25 = vld [vmem:[%s9721_s10 + $0x108] sm:$0xff]  ;;  %v1450_v31 = vld [vmem:[%s9721_s10 + $0x80] sm:$0xff]  ;;  %2042 = vmatpush1.bf16.msra.mxu0 %v5750_v0 }
 0x775   :  { %v1475_v29 = vld [vmem:[%s9721_s10 + $0x148] sm:$0xff] }
 0x776   :  { %1314 = vrot.lane.b32.xlu1 %v1306_v32, %s6817_s21 }
 0x778   :  { %1319 = vrot.lane.b32.xlu0 %v1307_v16, %s6817_s21 }
 0x7e6   :  { %v1310_v21 = vpop.permute.xlu0 %1309 }
 0x7e7   :  { %v1312_v35 = vadd.f32 %v1310_v21, %v1305_v24  ;;  %v5733_v24 = vcombine.high %v1466_v18, %v1474_v36  ;;  %v1459_v21 = vld [vmem:[%s9721_s10 + $0xc8] sm:$0xff] }
 0x7e8   :  { %v1315_v26 = vpop.permute.xlu1 %1314 }
 0x7e9   :  { %v1317_v54 = vadd.f32 %v1315_v26, %v1306_v32  ;;  %1326 = vrot.lane.b32.xlu1 %v1312_v35, %s6817_s21  ;;  %v5735_v32 = vcombine.high %v1467_v25, %v1475_v29  ;;  %v5732_v35 = vcombine.low %v1466_v18, %v1474_v36  ;;  %1992 = vmatprep.subr.bf16.mxu1 %v5733_v24 }
 0x7ea   :  { %v1320_v43 = vpop.permute.xlu0 %1319  ;;  %v5734_v26 = vcombine.low %v1467_v25, %v1475_v29 }
 0x7eb   :  { %v1322_v46 = vadd.f32 %v1320_v43, %v1307_v16  ;;  %1328 = vrot.lane.b32.xlu0 %v1317_v54, %s6817_s21  ;;  %v1451_v16 = vld [vmem:[%s9721_s10 + $0x88] sm:$0xff]  ;;  %v5717_v54 = vcombine.high %v1450_v31, %v1458_v33  ;;  %v7611_v43 = vld [vmem:[%s9721_s10 + $0x190] sm:$0xff]  ;;  %2043 = vmatprep.subr.bf16.mxu0 %v5735_v32 }
 0x7ec   :  { %1993 = vmatpush1.bf16.msra.mxu1 %v5732_v35  ;;  %2044 = vmatpush1.bf16.msra.mxu0 %v5734_v26 }
 0x7ed   :  { %1330 = vrot.lane.b32.xlu1 %v1322_v46, %s6817_s21  ;;  %v7616_v46 = vld [vmem:[%s9721_s10 + $0x1d0] sm:$0xff]  ;;  %1994 = vmatprep.subr.bf16.mxu1 %v5717_v54 }
 0x85b   :  { %v1327_v49 = vpop.permute.xlu1 %1326 }
 0x85c   :  { %v7531_v10 = vadd.f32 %v1327_v49, %v7330_v15  ;;  %v5719_v49 = vcombine.high %v1451_v16, %v1459_v21 }
 0x85d   :  { %v1329_v58 = vpop.permute.xlu0 %1328 }
 0x85e   :  { %v7534_v56 = vadd.f32 %v1329_v58, %v7351_v39  ;;  %1341 = vrot.lane.b32.xlu0 %v7531_v10, %s6817_s21  ;;  %v1362_v38 = vmul.f32 %v7531_v10, %v7531_v10  ;;  %v1434_v58 = vld [vmem:[%s9721_s10] sm:$0xff]  ;;  %2045 = vmatprep.subr.bf16.mxu0 %v5719_v49 }
 0x85f   :  { %v1331_v2 = vpop.permute.xlu1 %1330 }
 0x860   :  { %1343 = vrot.lane.b32.xlu1 %v7534_v56, %s6817_s21  ;;  %v7543_v50 = vadd.f32 %v1331_v2, %v7359_v48  ;;  %v1363_v15 = vmul.f32 %v7534_v56, %v7534_v56  ;;  %v1442_v2 = vld [vmem:[%s9721_s10 + $0x40] sm:$0xff] }
 0x862   :  { %1368 = vrot.lane.b32.xlu0 %v1362_v38, %s6817_s21  ;;  %v1364_v39 = vmul.f32 %v7543_v50, %v7543_v50  ;;  %v5752_v38 = vcombine.low %v7611_v43, %v7616_v46 }
 0x864   :  { %1370 = vrot.lane.b32.xlu1 %v1363_v15, %s6817_s21  ;;  %v1435_v15 = vld [vmem:[%s9721_s10 + $0x8] sm:$0xff] }
 0x866   :  { %1345 = vrot.lane.b32.xlu0 %v7543_v50, %s6817_s21 }
 0x868   :  { %1372 = vrot.lane.b32.xlu1 %v1364_v39, %s6817_s21  ;;  %v1443_v39 = vld [vmem:[%s9721_s10 + $0x48] sm:$0xff] }
 0x8d0   :  { %v1342_v51 = vpop.permute.xlu0 %1341 }
 0x8d1   :  { %v1350_v52 = vsel %vm246_vm4, %v1342_v51, 0.0  ;;  %v5716_v51 = vcombine.low %v1450_v31, %v1458_v33 }
 0x8d2   :  { %v1344_v48 = vpop.permute.xlu1 %1343  ;;  %1351 = vadd.xlane.f32.xlu0 %v1350_v52  ;;  %v5718_v52 = vcombine.low %v1451_v16, %v1459_v21  ;;  %v1485_v16 = vld [vmem:[%s9721_s10 + $0x198] sm:$0xff] }
 0x8d3   :  { %v1353_v9 = vsel %vm246_vm4, %v1344_v48, 0.0  ;;  %v5701_v48 = vcombine.high %v1434_v58, %v1442_v2  ;;  %1995 = vmatpush1.bf16.msra.mxu1 %v5716_v51  ;;  %v1493_v21 = vld [vmem:[%s9721_s10 + $0x1d8] sm:$0xff] }
 0x8d4   :  { %1354 = vadd.xlane.f32.xlu1 %v1353_v9  ;;  %v1369_v30 = vpop.permute.xlu0 %1368  ;;  %v5703_v9 = vcombine.high %v1435_v15, %v1443_v39  ;;  %2046 = vmatpush1.bf16.msra.mxu0 %v5718_v52  ;;  %v5755_v35 = vcombine.high %v1485_v16, %v1493_v21  ;;  %v5754_v54 = vcombine.low %v1485_v16, %v1493_v21  ;;  %v1494_v21 = vld [vmem:[%s9721_s10 + $0x1e0] sm:$0xff] }
 0x8d5   :  { %v1377_v57 = vsel %vm246_vm4, %v1369_v30, 0.0  ;;  %v5700_v30 = vcombine.low %v1434_v58, %v1442_v2  ;;  %1996 = vmatprep.subr.bf16.mxu1 %v5701_v48 }
 0x8d6   :  { %v1371_v37 = vpop.permute.xlu1 %1370  ;;  %1378 = vadd.xlane.f32.xlu0 %v1377_v57  ;;  %v5702_v57 = vcombine.low %v1435_v15, %v1443_v39  ;;  %2047 = vmatprep.subr.bf16.mxu0 %v5703_v9 }
 0x8d7   :  { %v1380_v23 = vsel %vm246_vm4, %v1371_v37, 0.0  ;;  %v5753_v37 = vcombine.high %v7611_v43, %v7616_v46  ;;  %1997 = vmatpush1.bf16.msra.mxu1 %v5700_v30  ;;  %v1444_v43 = vld [vmem:[%s9721_s10 + $0x50] sm:$0xff]  ;;  %v1437_v46 = vld [vmem:[%s9721_s10 + $0x18] sm:$0xff] }
 0x8d8   :  { %v1346_v59 = vpop.permute.xlu0 %1345  ;;  %2048 = vmatpush1.bf16.msra.mxu0 %v5702_v57 }
 0x8d9   :  { %v1356_v22 = vsel %vm246_vm4, %v1346_v59, 0.0  ;;  %2092 = vmatprep.subr.bf16.mxu1 %v5753_v37  ;;  %2143 = vmatprep.subr.bf16.mxu0 %v5755_v35  ;;  %v1487_v35 = vld [vmem:[%s9721_s10 + $0x1a8] sm:$0xff] }
 0x8da   :  { %v1373_v34 = vpop.permute.xlu1 %1372  ;;  %1381 = vadd.xlane.f32.xlu0 %v1380_v23 }
 0x8db   :  { %v1383_v61 = vsel %vm246_vm4, %v1373_v34, 0.0 }
 0x8dc   :  { %1384 = vadd.xlane.f32.xlu1 %v1383_v61 }
 0x8de   :  { %1357 = vadd.xlane.f32.xlu0 %v1356_v22 }
 0x8ed   :  { %1426 = vrot.lane.b32.xlu1 %v1424_v63, %s6817_s21 }
 0x8f4   :  { %1415 = vrot.lane.b32.xlu0 %v1413_v1, %s6817_s21 }
 0x95b   :  { %v1352_v23 = vpop.xlane.xlu0 %1351 }
 0x95c   :  { %v1359_v59 = vmul.f32 0.015625, %v1352_v23 }
 0x95d   :  { %v1355_v34 = vpop.xlane.xlu1 %1354 }
 0x95e   :  { %v1389_v22 = vmul.f32 %v1359_v59, %v1359_v59  ;;  %v1360_v62 = vmul.f32 0.015625, %v1355_v34  ;;  %v1398_v26 = vsub.f32 %v7531_v10, %v1359_v59 }
 0x95f   :  { %v1379_v61 = vpop.xlane.xlu0 %1378 }
 0x960   :  { %v1386_v63 = vmul.f32 0.015625, %v1379_v61  ;;  %v1390_v5 = vmul.f32 %v1360_v62, %v1360_v62  ;;  %v1399_v15 = vsub.f32 %v7534_v56, %v1360_v62  ;;  %v1469_v62 = vld [vmem:[%s9721_s10 + $0x118] sm:$0xff] }
 0x962   :  { %v1392_v1 = vsub.f32 %v1386_v63, %v1389_v22  ;;  %v1476_v22 = vld [vmem:[%s9721_s10 + $0x150] sm:$0xff]  ;;  %v1477_v63 = vld [vmem:[%s9721_s10 + $0x158] sm:$0xff] }
 0x963   :  { %v1382_v4 = vpop.xlane.xlu0 %1381 }
 0x964   :  { %v1395_v40 = vmax.f32 %v1392_v1, 0.0  ;;  %v1387_v6 = vmul.f32 0.015625, %v1382_v4  ;;  %v5739_v4 = vcombine.high %v1469_v62, %v1477_v63 }
 0x965   :  { %v1385_v18 = vpop.xlane.xlu1 %1384 }
 0x966   :  { %v1401_v8 = vadd.f32 1e-05, %v1395_v40  ;;  %v1393_v20 = vsub.f32 %v1387_v6, %v1390_v5  ;;  %v1388_v25 = vmul.f32 0.015625, %v1385_v18  ;;  %v1452_v5 = vld [vmem:[%s9721_s10 + $0x90] sm:$0xff] }
 0x967   :  { %v1358_v36 = vpop.xlane.xlu0 %1357  ;;  %v1460_v6 = vld [vmem:[%s9721_s10 + $0xd0] sm:$0xff] }
 0x968   :  { %6663 = vrsqrt.f32 %v1401_v8  ;;  %v1396_v0 = vmax.f32 %v1393_v20, 0.0  ;;  %v1361_v7 = vmul.f32 0.015625, %v1358_v36  ;;  %v1453_v8 = vld [vmem:[%s9721_s10 + $0x98] sm:$0xff]  ;;  %v5738_v36 = vcombine.low %v1469_v62, %v1477_v63 }
 0x969   :  { %v1427_v48 = vpop.permute.xlu1 %1426  ;;  %v1461_v20 = vld [vmem:[%s9721_s10 + $0xd8] sm:$0xff] }
 0x96a   :  { %v1402_v24 = vadd.f32 1e-05, %v1396_v0  ;;  %v1391_v29 = vmul.f32 %v1361_v7, %v1361_v7  ;;  %v1400_v30 = vsub.f32 %v7543_v50, %v1361_v7  ;;  %v1468_v50 = vld [vmem:[%s9721_s10 + $0x110] sm:$0xff]  ;;  %v5721_v0 = vcombine.high %v1452_v5, %v1460_v6 }
 0x96b   :  { %v1416_v2 = vpop.permute.xlu0 %1415  ;;  %v5737_v1 = vcombine.high %v1468_v50, %v1476_v22  ;;  %v5736_v18 = vcombine.low %v1468_v50, %v1476_v22  ;;  %v5723_v7 = vcombine.high %v1453_v8, %v1461_v20 }
 0x96c   :  { %6665 = vrsqrt.f32 %v1402_v24  ;;  %v1394_v31 = vsub.f32 %v1388_v25, %v1391_v29  ;;  %v1436_v24 = vld [vmem:[%s9721_s10 + $0x10] sm:$0xff]  ;;  %v5720_v25 = vcombine.low %v1452_v5, %v1460_v6  ;;  %v5722_v29 = vcombine.low %v1453_v8, %v1461_v20  ;;  %v1439_v5 = vld [vmem:[%s9721_s10 + $0x28] sm:$0xff] }
 0x96d   :  { %v1447_v6 = vld [vmem:[%s9721_s10 + $0x68] sm:$0xff] }
 0x96e   :  { %v1397_v32 = vmax.f32 %v1394_v31, 0.0  ;;  %v5705_v31 = vcombine.high %v1436_v24, %v1444_v43 }
 0x970   :  { %v1403_v33 = vadd.f32 1e-05, %v1397_v32 }
 0x972   :  { %6667 = vrsqrt.f32 %v1403_v33  ;;  %v1486_v33 = vld [vmem:[%s9721_s10 + $0x1a0] sm:$0xff] }
 0x975   :  { %v6664_v49 = vpop.eup %6663 }
 0x976   :  { %v1407_v58 = vmul.f32 %v6664_v49, %v1398_v26  ;;  %v1495_v26 = vld [vmem:[%s9721_s10 + $0x1e8] sm:$0xff] }
 0x978   :  { %v1418_v52 = vmul.f32 %v1416_v2, %v1407_v58  ;;  %v5757_v58 = vcombine.high %v1486_v33, %v1494_v21 }
 0x979   :  { %v6666_v39 = vpop.eup %6665 }
 0x97a   :  { %v1408_v51 = vmul.f32 %v6666_v39, %v1399_v15  ;;  %v7643_v57 = vadd.f32 %v1427_v48, %v1418_v52  ;;  %v1470_v15 = vld [vmem:[%s9721_s10 + $0x120] sm:$0xff]  ;;  %v1479_v52 = vld [vmem:[%s9721_s10 + $0x168] sm:$0xff] }
 0x97b   :  { %v1478_v39 = vld [vmem:[%s9721_s10 + $0x160] sm:$0xff] }
 0x97c   :  { %v1419_v9 = vmul.f32 %v1416_v2, %v1408_v51  ;;  %9809 = vst [vmem:[#allocation18_spill] sm:$0xff] %v7643_v57  ;;  %v1471_v51 = vld [vmem:[%s9721_s10 + $0x128] sm:$0xff]  ;;  %v5740_v50 = vcombine.low %v1470_v15, %v1478_v39 }
 0x97d   :  { %v5742_v22 = vcombine.low %v1471_v51, %v1479_v52 }
 0x97e   :  { %v7645_v37 = vadd.f32 %v1427_v48, %v1419_v9  ;;  %v5758_v9 = vcombine.low %v1487_v35, %v1495_v26 }
 0x97f   :  { %v6668_v23 = vpop.eup %6667 }
 0x980   :  { %9810 = vst [vmem:[#allocation19_spill] sm:$0xff] %v7645_v37  ;;  %v1409_v10 = vmul.f32 %v6668_v23, %v1400_v30  ;;  %v1432_v59 = vpack.c.bf16 %v7645_v37, %v7643_v57  ;;  %v5741_v30 = vcombine.high %v1470_v15, %v1478_v39  ;;  %v5743_v23 = vcombine.high %v1471_v51, %v1479_v52  ;;  %v1457_v15 = vld [vmem:[%s9721_s10 + $0xb8] sm:$0xff] }
 0x981   :  { %v1465_v39 = vld [vmem:[%s9721_s10 + $0xf8] sm:$0xff] }
 0x982   :  { %v1420_v34 = vmul.f32 %v1416_v2, %v1409_v10  ;;  %1652 = vrot.lane.b32.xlu1 %v1432_v59, %s6817_s21  ;;  %v5759_v2 = vcombine.high %v1487_v35, %v1495_v26  ;;  %v1454_v10 = vld [vmem:[%s9721_s10 + $0xa0] sm:$0xff] }
 0x983   :  { %v1462_v59 = vld [vmem:[%s9721_s10 + $0xe0] sm:$0xff] }
 0x984   :  { %v7650_v56 = vadd.f32 %v1427_v48, %v1420_v34  ;;  %v5756_v48 = vcombine.low %v1486_v33, %v1494_v21  ;;  %v1455_v34 = vld [vmem:[%s9721_s10 + $0xa8] sm:$0xff]  ;;  %v5725_v62 = vcombine.high %v1454_v10, %v1462_v59  ;;  %v5724_v8 = vcombine.low %v1454_v10, %v1462_v59  ;;  %v1473_v33 = vld [vmem:[%s9721_s10 + $0x138] sm:$0xff] }
 0x985   :  { %v1481_v21 = vld [vmem:[%s9721_s10 + $0x178] sm:$0xff] }
 0x986   :  { %9811 = vst [vmem:[#allocation20_spill] sm:$0xff] %v7650_v56  ;;  %v1433_v61 = vpack.c.bf16 %v7650_v56, %v7650_v56  ;;  %v5746_v52 = vcombine.low %v1473_v33, %v1481_v21  ;;  %v1441_v10 = vld [vmem:[%s9721_s10 + $0x38] sm:$0xff] }
 0x987   :  { %v1449_v59 = vld [vmem:[%s9721_s10 + $0x78] sm:$0xff] }
 0x988   :  { %1654 = vrot.lane.b32.xlu1 %v1433_v61, %s6817_s21  ;;  %v1463_v61 = vld [vmem:[%s9721_s10 + $0xe8] sm:$0xff] }
 0x989   :  { %v5727_v63 = vcombine.high %v1455_v34, %v1463_v61  ;;  %v5726_v20 = vcombine.low %v1455_v34, %v1463_v61  ;;  %v5730_v61 = vcombine.low %v1457_v15, %v1465_v39 }
 0x9f4   :  { %v7670_v40 = vpop.permute.xlu1 %1652 }
 0x9f5   :  { %5764 = vmatmul.mubr.msk.bf16.vlgmr.msra.gmra.mxu1 %vm246_vm4, %v7670_v40  ;;  %5766 = vmatmul.mubr.msk.bf16.vlgmr.msra.gmra.mxu0 %vm246_vm4, %v7670_v40 }
 0x9f6   :  { %2093 = vmatpush1.bf16.msra.mxu1 %v5752_v38  ;;  %2144 = vmatpush1.bf16.msra.mxu0 %v5754_v54  ;;  %v1445_v38 = vld [vmem:[%s9721_s10 + $0x58] sm:$0xff]  ;;  %v5704_v54 = vcombine.low %v1436_v24, %v1444_v43 }
 0x9f7   :  { %2094 = vmatprep.subr.bf16.mxu1 %v5737_v1  ;;  %2145 = vmatprep.subr.bf16.mxu0 %v5739_v4  ;;  %v5707_v32 = vcombine.high %v1437_v46, %v1445_v38  ;;  %v5706_v49 = vcombine.low %v1437_v46, %v1445_v38  ;;  %v1438_v1 = vld [vmem:[%s9721_s10 + $0x20] sm:$0xff]  ;;  %v1489_v24 = vld [vmem:[%s9721_s10 + $0x1b8] sm:$0xff]  ;;  %v5710_v38 = vcombine.low %v1439_v5, %v1447_v6 }
 0x9f8   :  { %2024 = vmatprep.mubr.bf16.mxu1 %v6820_v19  ;;  %2075 = vmatprep.mubr.bf16.mxu0 %v6820_v19  ;;  %v1446_v4 = vld [vmem:[%s9721_s10 + $0x60] sm:$0xff]  ;;  %v1497_v43 = vld [vmem:[%s9721_s10 + $0x1f8] sm:$0xff] }
 0x9f9   :  { %v5708_v46 = vcombine.low %v1438_v1, %v1446_v4  ;;  %v5762_v26 = vcombine.low %v1489_v24, %v1497_v43 }
 0x9fa   :  { %2095 = vmatpush1.bf16.msra.mxu1 %v5736_v18  ;;  %2146 = vmatpush1.bf16.msra.mxu0 %v5738_v36  ;;  %v7705_v16 = vpop.permute.xlu1 %1654  ;;  %v5709_v18 = vcombine.high %v1438_v1, %v1446_v4  ;;  %v5711_v36 = vcombine.high %v1439_v5, %v1447_v6  ;;  %v7843_v1 = vld [vmem:[%s9716_s5] sm:$0x77]  ;;  %v7848_v4 = vld [vmem:[%s9716_s5 + $0x8] sm:$0x77] }
 0x9fb   :  { %2096 = vmatprep.subr.bf16.mxu1 %v5721_v0  ;;  %2147 = vmatprep.subr.bf16.mxu0 %v5723_v7  ;;  %v1488_v0 = vld [vmem:[%s9721_s10 + $0x1b0] sm:$0xff]  ;;  %v1517_v5 = vrot.slane %v7848_v4, %v6983_v45 }
 0x9fc   :  { %v1496_v7 = vld [vmem:[%s9721_s10 + $0x1f0] sm:$0xff] }
 0x9fd   :  { %5765 = vmatmul.mubr.msk.bf16.gmra.mxu1 %vm246_vm4, %v7705_v16  ;;  %5767 = vmatmul.mubr.msk.bf16.gmra.mxu0 %vm246_vm4, %v7705_v16  ;;  %v5760_v35 = vcombine.low %v1488_v0, %v1496_v7 }
 0x9fe   :  { %2097 = vmatpush1.bf16.msra.mxu1 %v5720_v25  ;;  %2148 = vmatpush1.bf16.msra.mxu0 %v5722_v29  ;;  %v5761_v25 = vcombine.high %v1488_v0, %v1496_v7  ;;  %v5763_v29 = vcombine.high %v1489_v24, %v1497_v43 }
 0x9ff   :  { %2098 = vmatprep.subr.bf16.mxu1 %v5705_v31  ;;  %2149 = vmatprep.subr.bf16.mxu0 %v5707_v32  ;;  %v1472_v31 = vld [vmem:[%s9721_s10 + $0x130] sm:$0xff] }
 0xa00   :  { %2116 = vmatprep.mubr.bf16.mxu1 %v6820_v19  ;;  %2167 = vmatprep.mubr.bf16.mxu0 %v6820_v19  ;;  %v1480_v32 = vld [vmem:[%s9721_s10 + $0x170] sm:$0xff] }
 0xa01   :  { %v5744_v51 = vcombine.low %v1472_v31, %v1480_v32 }
 0xa02   :  { %2099 = vmatpush1.bf16.msra.mxu1 %v5704_v54  ;;  %2150 = vmatpush1.bf16.msra.mxu0 %v5706_v49  ;;  %v5745_v54 = vcombine.high %v1472_v31, %v1480_v32  ;;  %v5747_v49 = vcombine.high %v1473_v33, %v1481_v21 }
 0xa03   :  { %2194 = vmatprep.subr.bf16.mxu1 %v5757_v58  ;;  %2245 = vmatprep.subr.bf16.mxu0 %v5759_v2  ;;  %v1456_v58 = vld [vmem:[%s9721_s10 + $0xb0] sm:$0xff] }
 0xa04   :  { %v1464_v2 = vld [vmem:[%s9721_s10 + $0xf0] sm:$0xff] }
 0xa05   :  { %5768 = vmatmul.mubr.msk.bf16.vlgmr.msra.gmra.mxu1 %vm246_vm4, %v7670_v40  ;;  %5770 = vmatmul.mubr.msk.bf16.vlgmr.msra.gmra.mxu0 %vm246_vm4, %v7670_v40  ;;  %v5728_v34 = vcombine.low %v1456_v58, %v1464_v2 }
 0xa06   :  { %2195 = vmatpush1.bf16.msra.mxu1 %v5756_v48  ;;  %2246 = vmatpush1.bf16.msra.mxu0 %v5758_v9  ;;  %v5729_v48 = vcombine.high %v1456_v58, %v1464_v2  ;;  %v5731_v9 = vcombine.high %v1457_v15, %v1465_v39 }
 0xa07   :  { %2196 = vmatprep.subr.bf16.mxu1 %v5741_v30  ;;  %2247 = vmatprep.subr.bf16.mxu0 %v5743_v23  ;;  %v1440_v30 = vld [vmem:[%s9721_s10 + $0x30] sm:$0xff] }
 0xa08   :  { %2126 = vmatprep.mubr.bf16.mxu1 %v6820_v19  ;;  %2177 = vmatprep.mubr.bf16.mxu0 %v6820_v19  ;;  %v1448_v23 = vld [vmem:[%s9721_s10 + $0x70] sm:$0xff] }
 0xa0a   :  { %2197 = vmatpush1.bf16.msra.mxu1 %v5740_v50  ;;  %2248 = vmatpush1.bf16.msra.mxu0 %v5742_v22  ;;  %v5713_v50 = vcombine.high %v1440_v30, %v1448_v23  ;;  %v5715_v22 = vcombine.high %v1441_v10, %v1449_v59 }
 0xa0b   :  { %2198 = vmatprep.subr.bf16.mxu1 %v5725_v62  ;;  %2249 = vmatprep.subr.bf16.mxu0 %v5727_v63  ;;  %v5712_v62 = vcombine.low %v1440_v30, %v1448_v23  ;;  %v5714_v63 = vcombine.low %v1441_v10, %v1449_v59  ;;  %v7904_v59 = vld [vmem:[%s9716_s5 + $0x18] sm:$0x77] }
 0xa0d   :  { %5769 = vmatmul.mubr.msk.bf16.gmra.mxu1 %vm246_vm4, %v7705_v16  ;;  %5771 = vmatmul.mubr.msk.bf16.gmra.mxu0 %vm246_vm4, %v7705_v16 }
 0xa0e   :  { %2199 = vmatpush1.bf16.msra.mxu1 %v5724_v8  ;;  %2250 = vmatpush1.bf16.msra.mxu0 %v5726_v20 }
 0xa0f   :  { %2200 = vmatprep.subr.bf16.mxu1 %v5709_v18  ;;  %2251 = vmatprep.subr.bf16.mxu0 %v5711_v36  ;;  %v1521_v18 = vrot.slane %v7848_v4, %v7171_v17  ;;  %v1597_v36 = vrot.slane %v1517_v5, %v6983_v45 }
 0xa10   :  { %2218 = vmatprep.mubr.bf16.mxu1 %v6820_v19  ;;  %2269 = vmatprep.mubr.bf16.mxu0 %v6820_v19 }
 0xa12   :  { %2201 = vmatpush1.bf16.msra.mxu1 %v5708_v46  ;;  %2252 = vmatpush1.bf16.msra.mxu0 %v5710_v38 }
 0xa13   :  { %2296 = vmatprep.subr.bf16.mxu1 %v5761_v25  ;;  %2347 = vmatprep.subr.bf16.mxu0 %v5763_v29  ;;  %v7866_v25 = vrot.slane %v1521_v18, %v6983_v45  ;;  %v1533_v18 = vrot.slane %v7904_v59, %v6983_v45 }
 0xa15   :  { %5772 = vmatmul.mubr.msk.bf16.vlgmr.msra.gmra.mxu1 %vm246_vm4, %v7670_v40  ;;  %5774 = vmatmul.mubr.msk.bf16.vlgmr.msra.gmra.mxu0 %vm246_vm4, %v7670_v40 }
 0xa16   :  { %2297 = vmatpush1.bf16.msra.mxu1 %v5760_v35  ;;  %2348 = vmatpush1.bf16.msra.mxu0 %v5762_v26  ;;  %v7877_v35 = vld [vmem:[%s9716_s5 + $0x10] sm:$0x77] }
 0xa17   :  { %2298 = vmatprep.subr.bf16.mxu1 %v5745_v54  ;;  %2349 = vmatprep.subr.bf16.mxu0 %v5747_v49 }
 0xa18   :  { %2228 = vmatprep.mubr.bf16.mxu1 %v6820_v19  ;;  %2279 = vmatprep.mubr.bf16.mxu0 %v6820_v19 }
 0xa1a   :  { %2299 = vmatpush1.bf16.msra.mxu1 %v5744_v51  ;;  %2350 = vmatpush1.bf16.msra.mxu0 %v5746_v52  ;;  %v1525_v52 = vrot.slane %v7877_v35, %v6983_v45 }
 0xa1b   :  { %2300 = vmatprep.subr.bf16.mxu1 %v5729_v48  ;;  %2351 = vmatprep.subr.bf16.mxu0 %v5731_v9 }
 0xa1d   :  { %5773 = vmatmul.mubr.msk.bf16.gmra.mxu1 %vm246_vm4, %v7705_v16  ;;  %5775 = vmatmul.mubr.msk.bf16.gmra.mxu0 %vm246_vm4, %v7705_v16 }
 0xa1e   :  { %2301 = vmatpush1.bf16.msra.mxu1 %v5728_v34  ;;  %2352 = vmatpush1.bf16.msra.mxu0 %v5730_v61 }
 0xa1f   :  { %2302 = vmatprep.subr.bf16.mxu1 %v5713_v50  ;;  %2353 = vmatprep.subr.bf16.mxu0 %v5715_v22  ;;  %v1529_v50 = vrot.slane %v7877_v35, %v7171_v17 }
 0xa20   :  { %2320 = vmatprep.mubr.bf16.mxu1 %v6820_v19  ;;  %2371 = vmatprep.mubr.bf16.mxu0 %v6820_v19 }
 0xa22   :  { %2303 = vmatpush1.bf16.msra.mxu1 %v5712_v62  ;;  %2354 = vmatpush1.bf16.msra.mxu0 %v5714_v63 }
 0xa25   :  { %5776 = vmatmul.mubr.msk.bf16.vlgmr.msra.gmra.mxu1 %vm246_vm4, %v7670_v40  ;;  %5778 = vmatmul.mubr.msk.bf16.vlgmr.msra.gmra.mxu0 %vm246_vm4, %v7670_v40  ;;  %v1513_v40 = vrot.slane %v7843_v1, %v7171_v17 }
 0xa26   :  { %2330 = vmatprep.mubr.bf16.mxu1 %v6820_v19  ;;  %2381 = vmatprep.mubr.bf16.mxu0 %v6820_v19  ;;  %v1509_v19 = vrot.slane %v7843_v1, %v6983_v45 }
 0xa27   :  { %v1593_v8 = vrot.slane %v1513_v40, %v6983_v45 }
 0xa28   :  { %v1589_v20 = vrot.slane %v1509_v19, %v6983_v45 }
 0xa2d   :  { %5777 = vmatmul.mubr.msk.bf16.gmra.mxu1 %vm246_vm4, %v7705_v16  ;;  %5779 = vmatmul.mubr.msk.bf16.gmra.mxu0 %vm246_vm4, %v7705_v16 }
 0xab5   :  { %v2016_v16 = vpop.f32.mrf.mxu1  ;;  %v2067_v6 = vpop.f32.mrf.mxu0 }
 0xab6   :  { %v7863_v38 = vadd.f32 %v2016_v16, %v1589_v20  ;;  %v7870_v31 = vadd.f32 %v2067_v6, %v1597_v36  ;;  %v1605_v6 = vrot.slane %v1525_v52, %v6983_v45 }
 0xab7   :  { %v2018_v0 = vpop.f32.mrf.mxu1  ;;  %v2069_v7 = vpop.f32.mrf.mxu0 }
 0xab8   :  { %v7861_v24 = vadd.f32 %v2018_v0, %v1593_v8  ;;  %9813 = vst [vmem:[#allocation22_spill] sm:$0xff] %v7863_v38  ;;  %9815 = vst [vmem:[#allocation24_spill] sm:$0xff] %v7870_v31  ;;  %v7891_v51 = vadd.f32 %v2069_v7, %v7866_v25  ;;  %v2445_v48 = vmul.f32 %v7863_v38, %v7863_v38 }
 0xab9   :  { %v2020_v43 = vpop.f32.mrf.mxu1  ;;  %v2071_v46 = vpop.f32.mrf.mxu0  ;;  %v2447_v0 = vmul.f32 %v7870_v31, %v7870_v31 }
 0xaba   :  { %9812 = vst [vmem:[#allocation21_spill] sm:$0xff] %v7861_v24  ;;  %v7868_v29 = vadd.f32 %v2020_v43, %v1589_v20  ;;  %v7872_v32 = vadd.f32 %v2071_v46, %v1597_v36  ;;  %v2446_v54 = vmul.f32 %v7861_v24, %v7861_v24  ;;  %9819 = vst [vmem:[#allocation28_spill] sm:$0xff] %v7891_v51 }
 0xabb   :  { %v2022_v33 = vpop.f32.mrf.mxu1  ;;  %v2073_v21 = vpop.f32.mrf.mxu0  ;;  %v2390_v34 = vadd.f32 %v7861_v24, %v7863_v38 }
 0xabc   :  { %9814 = vst [vmem:[#allocation23_spill] sm:$0xff] %v7868_v29  ;;  %9816 = vst [vmem:[#allocation25_spill] sm:$0xff] %v7872_v32  ;;  %v7885_v58 = vadd.f32 %v2022_v33, %v1593_v8  ;;  %v7888_v2 = vadd.f32 %v2073_v21, %v7866_v25  ;;  %v2493_v22 = vadd.f32 %v2446_v54, %v2445_v48 }
 0xabd   :  { %v2026_v15 = vpop.f32.mrf.mxu1  ;;  %v2077_v39 = vpop.f32.mrf.mxu0  ;;  %v2461_v62 = vmul.f32 %v7868_v29, %v7868_v29  ;;  %v7929_v21 = vrot.slane %v1529_v50, %v6983_v45  ;;  %v7943_v50 = vrot.slane %v1533_v18, %v6983_v45 }
 0xabe   :  { %9817 = vst [vmem:[#allocation26_spill] sm:$0xff] %v7885_v58  ;;  %9818 = vst [vmem:[#allocation27_spill] sm:$0xff] %v7888_v2  ;;  %v2462_v9 = vmul.f32 %v7885_v58, %v7885_v58  ;;  %v7914_v63 = vadd.f32 %v2026_v15, %v1589_v20  ;;  %v2407_v5 = vadd.f32 %v7885_v58, %v7868_v29 }
 0xabf   :  { %v2028_v23 = vpop.f32.mrf.mxu1  ;;  %v2079_v10 = vpop.f32.mrf.mxu0  ;;  %v2391_v20 = vadd.f32 %v2390_v34, %v7870_v31  ;;  %v2494_v54 = vadd.f32 %v2493_v22, %v2447_v0  ;;  %v2463_v15 = vmul.f32 %v7872_v32, %v7872_v32  ;;  %v7937_v48 = vadd.f32 %v2077_v39, %v1597_v36 }
 0xac0   :  { %v7918_v16 = vadd.f32 %v2028_v23, %v1593_v8  ;;  %v2510_v7 = vadd.f32 %v2462_v9, %v2461_v62  ;;  %v1537_v8 = vrot.slane %v7904_v59, %v7171_v17  ;;  %v2477_v52 = vmul.f32 %v7914_v63, %v7914_v63 }
 0xac1   :  { %v2030_v40 = vpop.f32.mrf.mxu1  ;;  %v2081_v19 = vpop.f32.mrf.mxu0  ;;  %v2408_v34 = vadd.f32 %v2407_v5, %v7872_v32  ;;  %v2448_v22 = vmul.f32 %v7891_v51, %v7891_v51  ;;  %v2392_v39 = vadd.f32 %v2391_v20, %v7891_v51  ;;  %v7964_v55 = vadd.f32 %v2079_v10, %v7866_v25 }
 0xac2   :  { %9820 = vst [vmem:[#allocation29_spill] sm:$0xff] %v7918_v16  ;;  %v2478_v33 = vmul.f32 %v7918_v16, %v7918_v16  ;;  %v2511_v40 = vadd.f32 %v2510_v7, %v2463_v15  ;;  %v2424_v19 = vadd.f32 %v7918_v16, %v7914_v63  ;;  %v2479_v7 = vmul.f32 %v7937_v48, %v7937_v48 }
 0xac3   :  { %v2031_v43 = vpop.f32.mrf.mxu1  ;;  %v2082_v46 = vpop.f32.mrf.mxu0  ;;  %v2495_v18 = vadd.f32 %v2494_v54, %v2448_v22  ;;  %v2409_v20 = vadd.f32 %v2408_v34, %v7888_v2  ;;  %9823 = vst [vmem:[#allocation32_spill] sm:$0xff] %v7964_v55  ;;  %v7978_v34 = vld [vmem:[%s9716_s5 + $0x20] sm:$0x77] }
 0xac4   :  { %v2527_v0 = vadd.f32 %v2478_v33, %v2477_v52  ;;  %v7953_v46 = vrot.slane %v1537_v8, %v6983_v45  ;;  %v2425_v22 = vadd.f32 %v2424_v19, %v7937_v48 }
 0xac5   :  { %v2118_v9 = vpop.f32.mrf.mxu1  ;;  %v2169_v23 = vpop.f32.mrf.mxu0 }
 0xac6   :  { %v7940_v62 = vadd.f32 %v2118_v9, %v1605_v6  ;;  %v2464_v9 = vmul.f32 %v7888_v2, %v7888_v2  ;;  %v2528_v49 = vadd.f32 %v2527_v0, %v2479_v7  ;;  %v7973_v26 = vadd.f32 %v2169_v23, %v7943_v50 }
 0xac7   :  { %v2120_v43 = vpop.f32.mrf.mxu1  ;;  %v2171_v36 = vpop.f32.mrf.mxu0 }
 0xac8   :  { %9821 = vst [vmem:[#allocation30_spill] sm:$0xff] %v7940_v62  ;;  %v2449_v5 = vmul.f32 %v7940_v62, %v7940_v62  ;;  %v7960_v15 = vadd.f32 %v2120_v43, %v7929_v21  ;;  %v2512_v54 = vadd.f32 %v2511_v40, %v2464_v9  ;;  %9826 = vst [vmem:[#allocation35_spill] sm:$0xff] %v7973_v26 }
 0xac9   :  { %v2122_v33 = vpop.f32.mrf.mxu1  ;;  %v2173_v52 = vpop.f32.mrf.mxu0  ;;  %v2393_v25 = vadd.f32 %v2392_v39, %v7940_v62  ;;  %v1541_v40 = vrot.slane %v7978_v34, %v6983_v45 }
 0xaca   :  { %9822 = vst [vmem:[#allocation31_spill] sm:$0xff] %v7960_v15  ;;  %v7966_v14 = vadd.f32 %v2122_v33, %v1605_v6  ;;  %v7969_v8 = vadd.f32 %v2173_v52, %v7943_v50  ;;  %v2496_v10 = vadd.f32 %v2495_v18, %v2449_v5  ;;  %v2450_v23 = vmul.f32 %v7960_v15, %v7960_v15 }
 0xacb   :  { %v2124_v43 = vpop.f32.mrf.mxu1  ;;  %v2175_v61 = vpop.f32.mrf.mxu0  ;;  %v7994_v5 = vadd.f32 %v2171_v36, %v7953_v46  ;;  %v8010_v36 = vld [vmem:[%s9716_s5 + $0x28] sm:$0x77] }
 0xacc   :  { %9824 = vst [vmem:[#allocation33_spill] sm:$0xff] %v7966_v14  ;;  %9825 = vst [vmem:[#allocation34_spill] sm:$0xff] %v7969_v8  ;;  %v2465_v33 = vmul.f32 %v7966_v14, %v7966_v14  ;;  %v2410_v19 = vadd.f32 %v2409_v20, %v7966_v14  ;;  %v7991_v9 = vadd.f32 %v2124_v43, %v7929_v21 }
 0xacd   :  { %v2128_v7 = vpop.f32.mrf.mxu1  ;;  %v2179_v39 = vpop.f32.mrf.mxu0  ;;  %9828 = vst [vmem:[#allocation37_spill] sm:$0xff] %v7994_v5  ;;  %v7997_v18 = vadd.f32 %v2175_v61, %v7953_v46  ;;  %v2480_v20 = vmul.f32 %v7964_v55, %v7964_v55  ;;  %v1545_v61 = vrot.slane %v7978_v34, %v7171_v17  ;;  %v2497_v44 = vadd.f32 %v2496_v10, %v2450_v23 }
 0xace   :  { %9827 = vst [vmem:[#allocation36_spill] sm:$0xff] %v7991_v9  ;;  %v7999_v52 = vadd.f32 %v2128_v7, %v1605_v6  ;;  %v2513_v0 = vadd.f32 %v2512_v54, %v2465_v33  ;;  %v2466_v43 = vmul.f32 %v7991_v9, %v7991_v9  ;;  %v2426_v6 = vadd.f32 %v2425_v22, %v7964_v55 }
 0xacf   :  { %9829 = vst [vmem:[#allocation38_spill] sm:$0xff] %v7997_v18  ;;  %v2130_v30 = vpop.f32.mrf.mxu1  ;;  %v2181_v41 = vpop.f32.mrf.mxu0  ;;  %v2394_v7 = vadd.f32 %v2393_v25, %v7960_v15  ;;  %v2529_v3 = vadd.f32 %v2528_v49, %v2480_v20  ;;  %v2411_v42 = vadd.f32 %v2410_v19, %v7991_v9  ;;  %v1621_v22 = vrot.slane %v1541_v40, %v6983_v45 }
 0xad0   :  { %9830 = vst [vmem:[#allocation39_spill] sm:$0xff] %v7999_v52  ;;  %v2481_v28 = vmul.f32 %v7999_v52, %v7999_v52  ;;  %v8024_v57 = vadd.f32 %v2130_v30, %v7929_v21  ;;  %v1549_v25 = vrot.slane %v8010_v36, %v6983_v45  ;;  %v1553_v33 = vrot.slane %v8010_v36, %v7171_v17 }
 0xad1   :  { %v2132_v56 = vpop.f32.mrf.mxu1  ;;  %v2183_v37 = vpop.f32.mrf.mxu0  ;;  %v2451_v49 = vmul.f32 %v7973_v26, %v7973_v26  ;;  %v2514_v10 = vadd.f32 %v2513_v0, %v2466_v43  ;;  %v2427_v23 = vadd.f32 %v2426_v6, %v7999_v52  ;;  %v2395_v30 = vadd.f32 %v2394_v7, %v7973_v26  ;;  %v8049_v43 = vld [vmem:[%s9716_s5 + $0x30] sm:$0x77] }
 0xad2   :  { %9831 = vst [vmem:[#allocation40_spill] sm:$0xff] %v8024_v57  ;;  %v2530_v19 = vadd.f32 %v2529_v3, %v2481_v28  ;;  %v2482_v21 = vmul.f32 %v8024_v57, %v8024_v57  ;;  %v8038_v40 = vrot.slane %v1545_v61, %v6983_v45  ;;  %v2467_v54 = vmul.f32 %v7969_v8, %v7969_v8 }
 0xad3   :  { %v2133_v56 = vpop.f32.mrf.mxu1  ;;  %v2184_v37 = vpop.f32.mrf.mxu0  ;;  %v2498_v20 = vadd.f32 %v2497_v44, %v2451_v49  ;;  %v2412_v60 = vadd.f32 %v2411_v42, %v7969_v8  ;;  %v8044_v0 = vadd.f32 %v2179_v39, %v7943_v50  ;;  %v8054_v61 = vrot.slane %v1549_v25, %v6983_v45 }
 0xad4   :  { %v8057_v44 = vrot.slane %v1553_v33, %v6983_v45  ;;  %v2452_v42 = vmul.f32 %v7994_v5, %v7994_v5  ;;  %v2515_v50 = vadd.f32 %v2514_v10, %v2467_v54  ;;  %v2428_v39 = vadd.f32 %v2427_v23, %v8024_v57 }
 0xad5   :  { %9832 = vst [vmem:[#allocation41_spill] sm:$0xff] %v8044_v0  ;;  %v2220_v28 = vpop.f32.mrf.mxu1  ;;  %v2271_v3 = vpop.f32.mrf.mxu0  ;;  %v2531_v7 = vadd.f32 %v2530_v19, %v2482_v21  ;;  %v2396_v37 = vadd.f32 %v2395_v30, %v7994_v5  ;;  %v1557_v33 = vrot.slane %v8049_v43, %v6983_v45  ;;  %v2413_v53 = vadd.f32 %v2412_v60, %v7997_v18 }
 0xad6   :  { %v8051_v6 = vadd.f32 %v2220_v28, %v1621_v22  ;;  %v2468_v28 = vmul.f32 %v7997_v18, %v7997_v18  ;;  %v2499_v27 = vadd.f32 %v2498_v20, %v2452_v42  ;;  %v2483_v54 = vmul.f32 %v8044_v0, %v8044_v0 }
 0xad7   :  { %v2222_v49 = vpop.f32.mrf.mxu1  ;;  %v2273_v56 = vpop.f32.mrf.mxu0  ;;  %v8076_v30 = vadd.f32 %v2181_v41, %v7953_v46  ;;  %v2429_v60 = vadd.f32 %v2428_v39, %v8044_v0  ;;  %v8086_v62 = vadd.f32 %v2271_v3, %v8054_v61 }
 0xad8   :  { %v2453_v25 = vmul.f32 %v8051_v6, %v8051_v6  ;;  %v8073_v10 = vadd.f32 %v2222_v49, %v8038_v40  ;;  %v2397_v21 = vadd.f32 %v2396_v37, %v8051_v6  ;;  %v2516_v20 = vadd.f32 %v2515_v50, %v2468_v28 }
 0xad9   :  { %v2224_v23 = vpop.f32.mrf.mxu1  ;;  %v2275_v19 = vpop.f32.mrf.mxu0  ;;  %9834 = vst [vmem:[#allocation43_spill] sm:$0xff] %v8076_v30  ;;  %v2532_v42 = vadd.f32 %v2531_v7, %v2483_v54  ;;  %v8095_v50 = vadd.f32 %v2273_v56, %v8057_v44  ;;  %v2484_v56 = vmul.f32 %v8076_v30, %v8076_v30 }
 0xada   :  { %9833 = vst [vmem:[#allocation42_spill] sm:$0xff] %v8073_v10  ;;  %v8079_v26 = vadd.f32 %v2224_v23, %v1621_v22  ;;  %v8082_v8 = vadd.f32 %v2275_v19, %v8054_v61  ;;  %v2500_v5 = vadd.f32 %v2499_v27, %v2453_v25  ;;  %v2454_v41 = vmul.f32 %v8073_v10, %v8073_v10 }
 0xadb   :  { %v2226_v49 = vpop.f32.mrf.mxu1  ;;  %v2277_v14 = vpop.f32.mrf.mxu0  ;;  %9835 = vst [vmem:[#allocation44_spill] sm:$0xff] %v8095_v50  ;;  %v2398_v25 = vadd.f32 %v2397_v21, %v8073_v10  ;;  %v1561_v21 = vrot.slane %v8049_v43, %v7171_v17  ;;  %v2533_v18 = vadd.f32 %v2532_v42, %v2484_v56 }
 0xadc   :  { %v2469_v46 = vmul.f32 %v8079_v26, %v8079_v26  ;;  %v2414_v39 = vadd.f32 %v2413_v53, %v8079_v26  ;;  %v8101_v7 = vadd.f32 %v2226_v49, %v8038_v40  ;;  %v8105_v23 = vadd.f32 %v2277_v14, %v8057_v44 }
 0xadd   :  { %v2230_v27 = vpop.f32.mrf.mxu1  ;;  %v2281_v28 = vpop.f32.mrf.mxu0  ;;  %v8114_v49 = vrot.slane %v1557_v33, %v6983_v45  ;;  %v2501_v14 = vadd.f32 %v2500_v5, %v2454_v41  ;;  %v2455_v41 = vmul.f32 %v8086_v62, %v8086_v62  ;;  %v2471_v42 = vmul.f32 %v8082_v8, %v8082_v8 }
 0xade   :  { %9836 = vst [vmem:[#allocation45_spill] sm:$0xff] %v8101_v7  ;;  %v2517_v54 = vadd.f32 %v2516_v20, %v2469_v46  ;;  %9837 = vst [vmem:[#allocation46_spill] sm:$0xff] %v8105_v23  ;;  %v8107_v19 = vadd.f32 %v2230_v27, %v1621_v22  ;;  %v2470_v53 = vmul.f32 %v8101_v7, %v8101_v7  ;;  %v8126_v27 = vld [vmem:[%s9716_s5 + $0x38] sm:$0x77] }
 0xadf   :  { %v2232_v3 = vpop.f32.mrf.mxu1  ;;  %v2283_v37 = vpop.f32.mrf.mxu0  ;;  %v2430_v20 = vadd.f32 %v2429_v60, %v8076_v30  ;;  %v2415_v33 = vadd.f32 %v2414_v39, %v8101_v7  ;;  %v2399_v22 = vadd.f32 %v2398_v25, %v8086_v62  ;;  %v8145_v25 = vadd.f32 %v2281_v28, %v8054_v61 }
 0xae0   :  { %v2518_v15 = vadd.f32 %v2517_v54, %v2470_v53  ;;  %v2485_v9 = vmul.f32 %v8107_v19, %v8107_v19  ;;  %v8136_v10 = vadd.f32 %v2232_v3, %v8038_v40  ;;  %v1565_v53 = vrot.slane %v8126_v27, %v6983_v45 }
 0xae1   :  { %v2234_v60 = vpop.f32.mrf.mxu1  ;;  %v2285_v5 = vpop.f32.mrf.mxu0  ;;  %v2431_v46 = vadd.f32 %v2430_v20, %v8107_v19  ;;  %v2416_v3 = vadd.f32 %v2415_v33, %v8082_v8  ;;  %v2472_v28 = vmul.f32 %v8105_v23, %v8105_v23 }
 0xae2   :  { %v2534_v39 = vadd.f32 %v2533_v18, %v2485_v9  ;;  %v1569_v60 = vrot.slane %v8126_v27, %v7171_v17  ;;  %v2502_v5 = vadd.f32 %v2501_v14, %v2455_v41  ;;  %v2486_v40 = vmul.f32 %v8136_v10, %v8136_v10 }
 0xae3   :  { %v2235_v54 = vpop.f32.mrf.mxu1  ;;  %v2286_v56 = vpop.f32.mrf.mxu0  ;;  %v2519_v20 = vadd.f32 %v2518_v15, %v2471_v42  ;;  %v1641_v18 = vrot.slane %v1561_v21, %v6983_v45  ;;  %v2432_v14 = vadd.f32 %v2431_v46, %v8136_v10  ;;  %v1645_v15 = vrot.slane %v1565_v53, %v6983_v45 }
 0xae4   :  { %v2400_v54 = vadd.f32 %v2399_v22, %v8095_v50  ;;  %v2456_v56 = vmul.f32 %v8095_v50, %v8095_v50  ;;  %v2535_v41 = vadd.f32 %v2534_v39, %v2486_v40  ;;  %v1649_v42 = vrot.slane %v1569_v60, %v6983_v45 }
 0xae5   :  { %v2322_v7 = vpop.f32.mrf.mxu1  ;;  %v2373_v9 = vpop.f32.mrf.mxu0  ;;  %v2487_v22 = vmul.f32 %v8145_v25, %v8145_v25  ;;  %v2417_v46 = vadd.f32 %v2416_v3, %v8105_v23  ;;  %v2520_v31 = vadd.f32 %v2519_v20, %v2472_v28  ;;  %v8169_v39 = vadd.f32 %v2283_v37, %v8057_v44 }
 0xae6   :  { %v8156_v61 = vadd.f32 %v2322_v7, %v8114_v49  ;;  %v2503_v17 = vadd.f32 %v2502_v5, %v2456_v56  ;;  %v2433_v5 = vadd.f32 %v2432_v14, %v8145_v25  ;;  %v8179_v29 = vadd.f32 %v2373_v9, %v1645_v15 }
 0xae7   :  { %v2324_v33 = vpop.f32.mrf.mxu1  ;;  %v2375_v21 = vpop.f32.mrf.mxu0  ;;  %v2536_v38 = vadd.f32 %v2535_v41, %v2487_v22 }
 0xae8   :  { %v2401_v50 = vadd.f32 %v2400_v54, %v8156_v61  ;;  %v2457_v7 = vmul.f32 %v8156_v61, %v8156_v61  ;;  %v8171_v53 = vadd.f32 %v2324_v33, %v1641_v18  ;;  %v8184_v28 = vadd.f32 %v2375_v21, %v1649_v42 }
 0xae9   :  { %v2326_v40 = vpop.f32.mrf.mxu1  ;;  %v2377_v60 = vpop.f32.mrf.mxu0  ;;  %v2459_v9 = vmul.f32 %v8179_v29, %v8179_v29 }
 0xaea   :  { %v2504_v56 = vadd.f32 %v2503_v17, %v2457_v7  ;;  %v8175_v32 = vadd.f32 %v2326_v40, %v8114_v49  ;;  %v8177_v54 = vadd.f32 %v2377_v60, %v1645_v15  ;;  %v2402_v3 = vadd.f32 %v2401_v50, %v8171_v53 }
 0xaeb   :  { %v2458_v44 = vmul.f32 %v8171_v53, %v8171_v53  ;;  %v2328_v37 = vpop.f32.mrf.mxu1  ;;  %v2379_v20 = vpop.f32.mrf.mxu0  ;;  %v2434_v40 = vadd.f32 %v2433_v5, %v8169_v39 }
 0xaec   :  { %v2418_v14 = vadd.f32 %v2417_v46, %v8175_v32  ;;  %v2473_v17 = vmul.f32 %v8175_v32, %v8175_v32  ;;  %v8193_v41 = vadd.f32 %v2328_v37, %v1641_v18  ;;  %v8195_v50 = vadd.f32 %v2379_v20, %v1649_v42 }
 0xaed   :  { %v2332_v22 = vpop.f32.mrf.mxu1  ;;  %v2383_v7 = vpop.f32.mrf.mxu0  ;;  %v2403_v21 = vadd.f32 %v2402_v3, %v8179_v29  ;;  %v2488_v46 = vmul.f32 %v8169_v39, %v8169_v39  ;;  %v2505_v33 = vadd.f32 %v2504_v56, %v2458_v44 }
 0xaee   :  { %v8202_v60 = vadd.f32 %v2332_v22, %v8114_v49  ;;  %v2419_v37 = vadd.f32 %v2418_v14, %v8193_v41  ;;  %v2521_v2 = vadd.f32 %v2520_v31, %v2473_v17  ;;  %v2474_v49 = vmul.f32 %v8193_v41, %v8193_v41 }
 0xaef   :  { %v2334_v23 = vpop.f32.mrf.mxu1  ;;  %v2385_v5 = vpop.f32.mrf.mxu0  ;;  %v2537_v51 = vadd.f32 %v2536_v38, %v2488_v46  ;;  %v8216_v22 = vadd.f32 %v2383_v7, %v1645_v15  ;;  %v2404_v20 = vadd.f32 %v2403_v21, %v8184_v28  ;;  %v2506_v31 = vadd.f32 %v2505_v33, %v2459_v9 }
 0xaf0   :  { %v2489_v56 = vmul.f32 %v8202_v60, %v8202_v60  ;;  %v2435_v44 = vadd.f32 %v2434_v40, %v8202_v60  ;;  %v8218_v14 = vadd.f32 %v2334_v23, %v1641_v18  ;;  %v2420_v38 = vadd.f32 %v2419_v37, %v8177_v54 }
 0xaf1   :  { %v2336_v24 = vpop.f32.mrf.mxu1  ;;  %v2387_v3 = vpop.f32.mrf.mxu0  ;;  %v8224_v46 = vadd.f32 %v2385_v5, %v1649_v42  ;;  %2405 = vadd.xlane.f32.xlu0 %v2404_v20  ;;  %v2460_v23 = vmul.f32 %v8184_v28, %v8184_v28  ;;  %v2475_v18 = vmul.f32 %v8177_v54, %v8177_v54  ;;  %v2491_v15 = vmul.f32 %v8216_v22, %v8216_v22 }
 0xaf2   :  { %v2538_v58 = vadd.f32 %v2537_v51, %v2489_v56  ;;  %v2490_v17 = vmul.f32 %v8218_v14, %v8218_v14  ;;  %v2421_v24 = vadd.f32 %v2420_v38, %v8195_v50  ;;  %v2522_v51 = vadd.f32 %v2521_v2, %v2474_v49  ;;  %v6488_v49 = vld [vmem:[%s9722_s11 + $0xf8] sm:$0xff]   ;;  %v6491_v38 = vld [vmem:[%s9722_s11 + $0x70] sm:$0xff]  }
 0xaf3   :  { %v2337_v30 = vpop.f32.mrf.mxu1  ;;  %v2388_v40 = vpop.f32.mrf.mxu0  ;;  %v2436_v33 = vadd.f32 %v2435_v44, %v8218_v14  ;;  %v2507_v9 = vadd.f32 %v2506_v31, %v2460_v23  ;;  %v2492_v21 = vmul.f32 %v8224_v46, %v8224_v46  ;;  %v6489_v56 = vld [vmem:[%s9722_s11 + $0x38] sm:$0xff]   ;;  %6031 = vmatprep.subr.bf16.mxu0 %v6488_v49  ;;  %v6492_v31 = vld [vmem:[%s9722_s11 + $0xf0] sm:$0xff]   ;;  %v6495_v23 = vld [vmem:[%s9722_s11 + $0x68] sm:$0xff]  }
 0xaf4   :  { %v2539_v42 = vadd.f32 %v2538_v58, %v2490_v17  ;;  %2422 = vadd.xlane.f32.xlu1 %v2421_v24  ;;  %v2523_v7 = vadd.f32 %v2522_v51, %v2475_v18  ;;  %v2476_v30 = vmul.f32 %v8195_v50, %v8195_v50  ;;  %v6487_v58 = vld [vmem:[%s9722_s11 + $0x78] sm:$0xff]   ;;  %v6493_v17 = vld [vmem:[%s9722_s11 + $0x30] sm:$0xff]   ;;  %v6496_v18 = vld [vmem:[%s9722_s11 + $0xe8] sm:$0xff]  }
 0xaf5   :  { %2508 = vadd.xlane.f32.xlu0 %v2507_v9  ;;  %v2437_v2 = vadd.f32 %v2436_v33, %v8216_v22  ;;  %v6490_v44 = vld [vmem:[%s9722_s11 + $0xb8] sm:$0xff]   ;;  %6003 = vmatprep.subr.bf16.mxu1 %v6487_v58  ;;  %v6494_v40 = vld [vmem:[%s9722_s11 + $0xb0] sm:$0xff]   ;;  %v6497_v24 = vld [vmem:[%s9722_s11 + $0x28] sm:$0xff]  }
 0xaf6   :  { %v2540_v37 = vadd.f32 %v2539_v42, %v2491_v15  ;;  %v2524_v20 = vadd.f32 %v2523_v7, %v2476_v30  ;;  %6004 = vmatpush3.bf16.msra.mxu1 %v6489_v56  ;;  %6032 = vmatpush3.bf16.msra.mxu0 %v6490_v44  ;;  %v6498_v51 = vld [vmem:[%s9722_s11 + $0xa8] sm:$0xff]   ;;  %v6499_v15 = vld [vmem:[%s9722_s11 + $0x60] sm:$0xff]   ;;  %v6503_v7 = vld [vmem:[%s9722_s11 + $0x58] sm:$0xff]  }
 0xaf7   :  { %v2438_v5 = vadd.f32 %v2437_v2, %v8224_v46  ;;  %6005 = vmatprep.subr.bf16.mxu1 %v6491_v38  ;;  %6033 = vmatprep.subr.bf16.mxu0 %v6492_v31  ;;  %v6500_v33 = vld [vmem:[%s9722_s11 + $0xe0] sm:$0xff]   ;;  %v6504_v30 = vld [vmem:[%s9722_s11 + $0xd8] sm:$0xff]   ;;  %v6509_v2 = vld [vmem:[%s9722_s11 + $0x10] sm:$0xff]  }
 0xaf8   :  { %v2541_v3 = vadd.f32 %v2540_v37, %v2492_v21  ;;  %v6501_v9 = vld [vmem:[%s9722_s11 + $0x20] sm:$0xff]   ;;  %v6505_v21 = vld [vmem:[%s9722_s11 + $0x18] sm:$0xff]   ;;  %v6511_v58 = vld [vmem:[%s9722_s11 + $0x48] sm:$0xff]  }
 0xaf9   :  { %2525 = vadd.xlane.f32.xlu0 %v2524_v20  ;;  %v6502_v42 = vld [vmem:[%s9722_s11 + $0xa0] sm:$0xff]   ;;  %v6506_v37 = vld [vmem:[%s9722_s11 + $0x98] sm:$0xff]   ;;  %v6507_v20 = vld [vmem:[%s9722_s11 + $0x50] sm:$0xff]  }
 0xafa   :  { %2542 = vadd.xlane.f32.xlu1 %v2541_v3  ;;  %6006 = vmatpush3.bf16.msra.mxu1 %v6493_v17  ;;  %v6508_v3 = vld [vmem:[%s9722_s11 + $0xd0] sm:$0xff]   ;;  %v6512_v49 = vld [vmem:[%s9722_s11 + $0xc8] sm:$0xff]   ;;  %v6515_v38 = vld [vmem:[%s9722_s11 + $0x40] sm:$0xff]  }
 0xafb   :  { %6034 = vmatpush3.bf16.msra.mxu0 %v6494_v40  ;;  %6007 = vmatprep.subr.bf16.mxu1 %v6495_v23  ;;  %v6513_v56 = vld [vmem:[%s9722_s11 + $0x8] sm:$0xff]   ;;  %v6516_v31 = vld [vmem:[%s9722_s11 + $0xc0] sm:$0xff]   ;;  %v6519_v23 = vld [vmem:[%s9722_s11 + $0x178] sm:$0xff]  }
 0xafc   :  { %6035 = vmatprep.subr.bf16.mxu0 %v6496_v18  ;;  %v6514_v44 = vld [vmem:[%s9722_s11 + $0x88] sm:$0xff]   ;;  %v6517_v17 = vld [vmem:[%s9722_s11] sm:$0xff]   ;;  %v6520_v18 = vld [vmem:[%s9722_s11 + $0x1f8] sm:$0xff]  }
 0xafd   :  { %2439 = vadd.xlane.f32.xlu0 %v2438_v5  ;;  %v6510_v5 = vld [vmem:[%s9722_s11 + $0x90] sm:$0xff]   ;;  %v6518_v40 = vld [vmem:[%s9722_s11 + $0x80] sm:$0xff]  }
 0xafe   :  { %6008 = vmatpush3.bf16.msra.mxu1 %v6497_v24  ;;  %v2665_v24 = vrot.slane %v7843_v1, %v6989_v47 }
 0xaff   :  { %6036 = vmatpush3.bf16.msra.mxu0 %v6498_v51  ;;  %6009 = vmatprep.subr.bf16.mxu1 %v6499_v15  ;;  %v2673_v51 = vrot.slane %v7848_v4, %v6989_v47  ;;  %v2681_v15 = vrot.slane %v7877_v35, %v6989_v47 }
 0xb00   :  { %6037 = vmatprep.subr.bf16.mxu0 %v6500_v33  ;;  %v2921_v33 = vrot.slane %v7843_v1, %v7095_v11 }
 0xb02   :  { %6010 = vmatpush3.bf16.msra.mxu1 %v6501_v9  ;;  %v2689_v9 = vrot.slane %v7904_v59, %v6989_v47 }
 0xb03   :  { %6038 = vmatpush3.bf16.msra.mxu0 %v6502_v42  ;;  %6011 = vmatprep.subr.bf16.mxu1 %v6503_v7  ;;  %v2929_v42 = vrot.slane %v7848_v4, %v7095_v11  ;;  %v2697_v7 = vrot.slane %v7978_v34, %v6989_v47 }
 0xb04   :  { %6039 = vmatprep.subr.bf16.mxu0 %v6504_v30  ;;  %v2705_v30 = vrot.slane %v8010_v36, %v6989_v47 }
 0xb06   :  { %6012 = vmatpush3.bf16.msra.mxu1 %v6505_v21  ;;  %v2742_v21 = vpack.c.bf16 %v2665_v24, %v2665_v24 }
 0xb07   :  { %6040 = vmatpush3.bf16.msra.mxu0 %v6506_v37  ;;  %6013 = vmatprep.subr.bf16.mxu1 %v6507_v20  ;;  %v2744_v37 = vpack.c.bf16 %v2673_v51, %v2673_v51  ;;  %v2746_v20 = vpack.c.bf16 %v2681_v15, %v2681_v15 }
 0xb08   :  { %6041 = vmatprep.subr.bf16.mxu0 %v6508_v3  ;;  %v2937_v3 = vrot.slane %v7877_v35, %v7095_v11 }
 0xb0a   :  { %6014 = vmatpush3.bf16.msra.mxu1 %v6509_v2  ;;  %v2945_v2 = vrot.slane %v7904_v59, %v7095_v11 }
 0xb0b   :  { %6042 = vmatpush3.bf16.msra.mxu0 %v6510_v5  ;;  %6015 = vmatprep.subr.bf16.mxu1 %v6511_v58  ;;  %v2998_v5 = vpack.c.bf16 %v2921_v33, %v2921_v33  ;;  %v2748_v58 = vpack.c.bf16 %v2689_v9, %v2689_v9 }
 0xb0c   :  { %6043 = vmatprep.subr.bf16.mxu0 %v6512_v49  ;;  %v2953_v49 = vrot.slane %v7978_v34, %v7095_v11  ;;  %v3004_v24 = vpack.c.bf16 %v2945_v2, %v2945_v2 }
 0xb0d   :  { %v3015_v51 = vpack.i.b16 %v2998_v5, %v2998_v5  ;;  %v2807_v15 = vshrl.u32 %v2748_v58, 16 }
 0xb0e   :  { %6016 = vmatpush3.bf16.msra.mxu1 %v6513_v56  ;;  %v3000_v56 = vpack.c.bf16 %v2929_v42, %v2929_v42  ;;  %v3006_v57 = vpack.c.bf16 %v2953_v49, %v2953_v49  ;;  %v8368_v42 = vrot.slane %v7843_v1, %v7166_v12 }
 0xb0f   :  { %6044 = vmatpush3.bf16.msra.mxu0 %v6514_v44  ;;  %6017 = vmatprep.subr.bf16.mxu1 %v6515_v38  ;;  %v2750_v44 = vpack.c.bf16 %v2697_v7, %v2697_v7  ;;  %v2752_v38 = vpack.c.bf16 %v2705_v30, %v2705_v30 }
 0xb10   :  { %6045 = vmatprep.subr.bf16.mxu0 %v6516_v31  ;;  %v2961_v31 = vrot.slane %v8010_v36, %v7095_v11  ;;  %v3029_v0 = vpack.i.b16 %v3000_v56, %v3000_v56  ;;  %v3071_v2 = vpack.i.b16 %v3006_v57, %v3006_v57 }
 0xb11   :  { %v2823_v33 = vshrl.u32 %v2750_v44, 16  ;;  %v2839_v9 = vshrl.u32 %v2752_v38, 16 }
 0xb12   :  { %6018 = vmatpush3.bf16.msra.mxu1 %v6517_v17  ;;  %v2759_v17 = vshrl.u32 %v2742_v21, 16  ;;  %v3008_v52 = vpack.c.bf16 %v2961_v31, %v2961_v31  ;;  %v3057_v21 = vpack.i.b16 %v3004_v24, %v3004_v24  ;;  %v8378_v5 = vrot.slane %v3029_v0, %v6989_v47 }
 0xb13   :  { %6046 = vmatpush3.bf16.msra.mxu0 %v6518_v40  ;;  %6059 = vmatprep.subr.bf16.mxu1 %v6519_v23  ;;  %v2775_v40 = vshrl.u32 %v2744_v37, 16  ;;  %v2791_v23 = vshrl.u32 %v2746_v20, 16  ;;  %v8371_v37 = vrot.slane %v3015_v51, %v6989_v47  ;;  %v8375_v20 = vrot.slane %v7848_v4, %v7166_v12 }
 0xb14   :  { %6087 = vmatprep.subr.bf16.mxu0 %v6520_v18  ;;  %v3002_v18 = vpack.c.bf16 %v2937_v3, %v2937_v3  ;;  %v2760_v55 = vpack.i.b16 %v2759_v17, %v2759_v17  ;;  %v2808_v3 = vpack.i.b16 %v2807_v15, %v2807_v15  ;;  %v2824_v58 = vpack.i.b16 %v2823_v33, %v2823_v33 }
 0xb15   :  { %v2776_v16 = vpack.i.b16 %v2775_v40, %v2775_v40  ;;  %v2792_v7 = vpack.i.b16 %v2791_v23, %v2791_v23  ;;  %v2840_v49 = vpack.i.b16 %v2839_v9, %v2839_v9  ;;  %v3085_v56 = vpack.i.b16 %v3008_v52, %v3008_v52 }
 0xb16   :  { %v3043_v30 = vpack.i.b16 %v3002_v18, %v3002_v18  ;;  %v8381_v38 = vrot.slane %v2760_v55, %v6983_v45  ;;  %v8388_v17 = vrot.slane %v7877_v35, %v7166_v12  ;;  %v8398_v52 = vrot.slane %v7904_v59, %v7166_v12 }
 0xb17   :  { %v8384_v31 = vrot.slane %v2776_v16, %v6983_v45  ;;  %v8391_v57 = vrot.slane %v2792_v7, %v6983_v45  ;;  %v8401_v55 = vrot.slane %v3057_v21, %v6989_v47  ;;  %v8404_v16 = vrot.slane %v2808_v3, %v6983_v45 }
 0xb18   :  { %v8394_v0 = vrot.slane %v3043_v30, %v6989_v47  ;;  %v8408_v23 = vrot.slane %v7978_v34, %v7166_v12  ;;  %v8411_v18 = vrot.slane %v3071_v2, %v6989_v47  ;;  %v8415_v24 = vrot.slane %v8010_v36, %v7166_v12 }
 0xb19   :  { %v8418_v15 = vrot.slane %v2824_v58, %v6983_v45  ;;  %v8421_v33 = vrot.slane %v2840_v49, %v6983_v45  ;;  %v8424_v9 = vrot.slane %v3085_v56, %v6989_v47  ;;  %v8428_v21 = vrot.slane %v8049_v43, %v6989_v47 }
 0xb1a   :  { %9838 = vst [vmem:[#allocation47_spill] sm:$0xff] %v8411_v18  ;;  %v8432_v3 = vrot.slane %v8049_v43, %v7166_v12  ;;  %v8436_v58 = vrot.slane %v8049_v43, %v7095_v11  ;;  %v8440_v49 = vrot.slane %v8126_v27, %v6989_v47  ;;  %v8444_v56 = vrot.slane %v8126_v27, %v7166_v12 }
 0xb1b   :  { %9839 = vst [vmem:[#allocation48_spill] sm:$0xff] %v8424_v9  ;;  %9840 = vst [vmem:[#allocation49_spill] sm:$0xff] %v8428_v21  ;;  %v2587_v12 = vpack.c.bf16 %v8136_v10, %v8136_v10  ;;  %v2589_v21 = vpack.c.bf16 %v8169_v39, %v8169_v39  ;;  %v2592_v9 = vpack.c.bf16 %v8216_v22, %v8216_v22 }
 0xb1c   :  { %9841 = vst [vmem:[#allocation50_spill] sm:$0xff] %v8436_v58  ;;  %9842 = vst [vmem:[#allocation51_spill] sm:$0xff] %v8440_v49  ;;  %v2588_v49 = vpack.c.bf16 %v8145_v25, %v8145_v25  ;;  %v2925_v25 = vrot.slane %v7843_v1, %v7454_v13  ;;  %v2745_v10 = vpack.c.bf16 %v8375_v20, %v8375_v20 }
 0xb1d   :  { %v2933_v39 = vrot.slane %v7848_v4, %v7454_v13  ;;  %v2747_v22 = vpack.c.bf16 %v8388_v17, %v8388_v17  ;;  %v9845_v1 = vpack.c.bf16 %v8082_v8, %v8086_v62  ;;  %v9846_v4 = vpack.c.bf16 %v8193_v41, %v8171_v53 }
 0xb1e   :  { %v9850_v17 = vpack.c.bf16 %v8175_v32, %v8156_v61  ;;  %v9852_v53 = vpack.c.bf16 %v8177_v54, %v8179_v29  ;;  %v2749_v61 = vpack.c.bf16 %v8398_v52, %v8398_v52  ;;  %v2783_v29 = vshrl.u32 %v2745_v10, 16 }
 0xb1f   :  { %v3001_v54 = vpack.c.bf16 %v2933_v39, %v2933_v39  ;;  %v2751_v52 = vpack.c.bf16 %v8408_v23, %v8408_v23  ;;  %v2965_v10 = vrot.slane %v8010_v36, %v7454_v13 }
 0xb7a   :  { %v2406_v44 = vpop.xlane.xlu0 %2405 }
 0xb7b   :  { %v2442_v40 = vmul.f32 0.00048828125, %v2406_v44 }
 0xb7d   :  { %v2423_v51 = vpop.xlane.xlu1 %2422  ;;  %v2547_v2 = vmul.f32 %v2442_v40, %v2442_v40 }
 0xb7e   :  { %v2443_v7 = vmul.f32 0.00048828125, %v2423_v51  ;;  %v2509_v30 = vpop.xlane.xlu0 %2508  ;;  %v8448_v51 = vrot.slane %v8126_v27, %v7095_v11  ;;  %v2590_v27 = vpack.c.bf16 %v8202_v60, %v8202_v60 }
 0xb7f   :  { %v2544_v44 = vmul.f32 0.00048828125, %v2509_v30  ;;  %v2586_v30 = vpack.c.bf16 %v8107_v19, %v8107_v19 }
 0xb80   :  { %9843 = vst [vmem:[#allocation52_spill] sm:$0xff] %v8448_v51  ;;  %v8454_v43 = vpack.c.bf16 %v2443_v7, %v2442_v40  ;;  %v2548_v19 = vmul.f32 %v2443_v7, %v2443_v7 }
 0xb81   :  { %v2550_v58 = vsub.f32 %v2544_v44, %v2547_v2  ;;  %v2743_v2 = vpack.c.bf16 %v8368_v42, %v8368_v42 }
 0xb82   :  { %v2526_v11 = vpop.xlane.xlu0 %2525  ;;  %v8486_v20 = vsub.bf16 %v9845_v1, %v8454_v43  ;;  %v8512_v41 = vsub.bf16 %v9852_v53, %v8454_v43  ;;  %v2999_v1 = vpack.c.bf16 %v2925_v25, %v2925_v25  ;;  %v2753_v25 = vpack.c.bf16 %v8415_v24, %v8415_v24  ;;  %v9861_v53 = vld [vmem:[#allocation32_spill] sm:$0xff] }
 0xb83   :  { %v2553_v40 = vmax.f32 %v2550_v58, 0.0  ;;  %v2545_v51 = vmul.f32 0.00048828125, %v2526_v11  ;;  %v9844_v11 = vpack.c.bf16 %v8079_v26, %v8051_v6  ;;  %v2543_v42 = vpop.xlane.xlu1 %2542  ;;  %v9848_v26 = vpack.c.bf16 %v8195_v50, %v8184_v28 }
 0xb84   :  { %9853 = vst [vmem:[#allocation56_spill] sm:$0xff] %v8512_v41  ;;  %v2591_v28 = vpack.c.bf16 %v8218_v14, %v8218_v14  ;;  %v2593_v50 = vpack.c.bf16 %v8224_v46, %v8224_v46  ;;  %v2767_v32 = vshrl.u32 %v2743_v2, 16  ;;  %v2949_v46 = vrot.slane %v7904_v59, %v7454_v13 }
 0xb85   :  { %v2556_v60 = vadd.f32 1e-05, %v2553_v40  ;;  %v2551_v44 = vsub.f32 %v2545_v51, %v2548_v19  ;;  %v8480_v7 = vsub.bf16 %v9844_v11, %v8454_v43  ;;  %v8492_v51 = vsub.bf16 %v9846_v4, %v8454_v43 }
 0xb86   :  { %v2440_v58 = vpop.xlane.xlu0 %2439  ;;  %v8498_v6 = vsub.bf16 %v9848_v26, %v8454_v43  ;;  %v8504_v19 = vsub.bf16 %v9850_v17, %v8454_v43  ;;  %v2941_v40 = vrot.slane %v7877_v35, %v7454_v13  ;;  %v2546_v11 = vmul.f32 0.00048828125, %v2543_v42 }
 0xb87   :  { %9847 = vst [vmem:[#allocation53_spill] sm:$0xff] %v8492_v51  ;;  %v2554_v62 = vmax.f32 %v2551_v44, 0.0  ;;  %v2444_v8 = vmul.f32 0.00048828125, %v2440_v58  ;;  %6669 = vrsqrt.f32 %v2556_v60  ;;  %v2799_v26 = vshrl.u32 %v2747_v22, 16  ;;  %v9888_v51 = vld [vmem:[#allocation35_spill] sm:$0xff] }
 0xb88   :  { %9849 = vst [vmem:[#allocation54_spill] sm:$0xff] %v8498_v6  ;;  %9851 = vst [vmem:[#allocation55_spill] sm:$0xff] %v8504_v19  ;;  %v3003_v14 = vpack.c.bf16 %v2941_v40, %v2941_v40  ;;  %v2815_v17 = vshrl.u32 %v2749_v61, 16  ;;  %v2957_v2 = vrot.slane %v7978_v34, %v7454_v13  ;;  %v3022_v61 = vpack.i.b16 %v2999_v1, %v2999_v1  ;;  %v9865_v1 = vld [vmem:[#allocation43_spill] sm:$0xff] }
 0xb89   :  { %v2557_v44 = vadd.f32 1e-05, %v2554_v62  ;;  %v2549_v58 = vmul.f32 %v2444_v8, %v2444_v8  ;;  %v8520_v35 = vpack.c.bf16 %v2444_v8, %v2444_v8  ;;  %v2831_v62 = vshrl.u32 %v2751_v52, 16  ;;  %v9860_v8 = vld [vmem:[#allocation29_spill] sm:$0xff]  ;;  %v9879_v19 = vld [vmem:[#allocation31_spill] sm:$0xff] }
 0xb8a   :  { %v2579_v40 = vpack.c.bf16 %v9860_v8, %v9860_v8  ;;  %v9863_v8 = vld [vmem:[#allocation41_spill] sm:$0xff] }
 0xb8b   :  { %6671 = vrsqrt.f32 %v2557_v44  ;;  %v2552_v4 = vsub.f32 %v2546_v11, %v2549_v58  ;;  %v8533_v39 = vsub.bf16 %v2587_v12, %v8520_v35  ;;  %v8536_v60 = vsub.bf16 %v2589_v21, %v8520_v35  ;;  %v9862_v21 = vld [vmem:[#allocation39_spill] sm:$0xff] }
 0xb8c   :  { %v8539_v59 = vsub.bf16 %v2586_v30, %v8520_v35  ;;  %v8542_v23 = vsub.bf16 %v2588_v49, %v8520_v35  ;;  %v8545_v34 = vsub.bf16 %v2591_v28, %v8520_v35  ;;  %v8548_v24 = vsub.bf16 %v2593_v50, %v8520_v35  ;;  %v9864_v28 = vld [vmem:[#allocation40_spill] sm:$0xff] }
 0xb8d   :  { %v2555_v42 = vmax.f32 %v2552_v4, 0.0  ;;  %v8551_v36 = vsub.bf16 %v2590_v27, %v8520_v35  ;;  %v8554_v12 = vsub.bf16 %v2592_v9, %v8520_v35  ;;  %v3005_v30 = vpack.c.bf16 %v2949_v46, %v2949_v46  ;;  %v9870_v46 = vld [vmem:[#allocation28_spill] sm:$0xff] }
 0xb8e   :  { %9854 = vst [vmem:[#allocation57_spill] sm:$0xff] %v8539_v59  ;;  %9855 = vst [vmem:[#allocation58_spill] sm:$0xff] %v8542_v23  ;;  %v3007_v49 = vpack.c.bf16 %v2957_v2, %v2957_v2  ;;  %v2768_v50 = vpack.i.b16 %v2767_v32, %v2767_v32  ;;  %v2784_v27 = vpack.i.b16 %v2783_v29, %v2783_v29  ;;  %v2847_v44 = vshrl.u32 %v2753_v25, 16 }
 0xb8f   :  { %9856 = vst [vmem:[#allocation59_spill] sm:$0xff] %v8545_v34  ;;  %v2558_v22 = vadd.f32 1e-05, %v2555_v42  ;;  %9857 = vst [vmem:[#allocation60_spill] sm:$0xff] %v8548_v24  ;;  %v3009_v11 = vpack.c.bf16 %v2965_v10, %v2965_v10  ;;  %v3036_v9 = vpack.i.b16 %v3001_v54, %v3001_v54  ;;  %v2800_v58 = vpack.i.b16 %v2799_v26, %v2799_v26  ;;  %v9872_v24 = vld [vmem:[#allocation23_spill] sm:$0xff]  ;;  %v9876_v34 = vld [vmem:[#allocation24_spill] sm:$0xff] }
 0xb90   :  { %9858 = vst [vmem:[#allocation61_spill] sm:$0xff] %v8551_v36  ;;  %9859 = vst [vmem:[#allocation62_spill] sm:$0xff] %v8554_v12  ;;  %v3050_v4 = vpack.i.b16 %v3003_v14, %v3003_v14  ;;  %v2816_v42 = vpack.i.b16 %v2815_v17, %v2815_v17  ;;  %v3064_v52 = vpack.i.b16 %v3005_v30, %v3005_v30  ;;  %v9867_v36 = vld [vmem:[#allocation21_spill] sm:$0xff] }
 0xb91   :  { %6673 = vrsqrt.f32 %v2558_v22  ;;  %v2832_v2 = vpack.i.b16 %v2831_v62, %v2831_v62  ;;  %v3078_v12 = vpack.i.b16 %v3007_v49, %v3007_v49  ;;  %v2773_v54 = vrot.slane %v2768_v50, %v6983_v45 }
 0xb92   :  { %v8572_v26 = vrot.slane %v3022_v61, %v6989_v47  ;;  %v2789_v14 = vrot.slane %v2784_v27, %v6983_v45  ;;  %v2848_v17 = vpack.i.b16 %v2847_v44, %v2847_v44  ;;  %v3092_v25 = vpack.i.b16 %v3009_v11, %v3009_v11  ;;  %v9866_v61 = vld [vmem:[#allocation26_spill] sm:$0xff] }
 0xb93   :  { %v8576_v22 = vrot.slane %v3036_v9, %v6989_v47  ;;  %v8579_v30 = vrot.slane %v2800_v58, %v6983_v45  ;;  %v8582_v62 = vrot.slane %v3050_v4, %v6989_v47  ;;  %v8585_v49 = vrot.slane %v2816_v42, %v6983_v45  ;;  %v9869_v42 = vld [vmem:[#allocation27_spill] sm:$0xff] }
 0xb94   :  { %v6670_v10 = vpop.eup %6669  ;;  %v9868_v27 = vpack.c.bf16 %v9866_v61, %v9867_v36  ;;  %v8592_v11 = vrot.slane %v3064_v52, %v6989_v47  ;;  %v8595_v9 = vrot.slane %v2832_v2, %v6983_v45  ;;  %v8598_v58 = vrot.slane %v3078_v12, %v6989_v47  ;;  %v9873_v36 = vld [vmem:[#allocation22_spill] sm:$0xff]  ;;  %v9875_v52 = vld [vmem:[#allocation25_spill] sm:$0xff]  ;;  %v9878_v12 = vld [vmem:[#allocation36_spill] sm:$0xff] }
 0xb95   :  { %v9871_v29 = vpack.c.bf16 %v9869_v42, %v9870_v46  ;;  %v9874_v61 = vpack.c.bf16 %v9872_v24, %v9873_v36  ;;  %v9877_v2 = vpack.c.bf16 %v9875_v52, %v9876_v34  ;;  %v8619_v6 = vrot.slane %v2848_v17, %v6983_v45  ;;  %v9887_v24 = vld [vmem:[#allocation34_spill] sm:$0xff] }
 0xb96   :  { %v2597_v44 = vsub.bf16 %v9868_v27, %v8454_v43  ;;  %v8622_v46 = vrot.slane %v3092_v25, %v6989_v47  ;;  %v9885_v25 = vld [vmem:[#allocation30_spill] sm:$0xff] }
 0xb97   :  { %v2599_v32 = vsub.bf16 %v9871_v29, %v8454_v43  ;;  %v2596_v27 = vsub.bf16 %v9874_v61, %v8454_v43  ;;  %v2598_v41 = vsub.bf16 %v9877_v2, %v8454_v43  ;;  %v9882_v61 = vld [vmem:[#allocation37_spill] sm:$0xff] }
 0xb98   :  { %v6672_v50 = vpop.eup %6671  ;;  %v9884_v2 = vld [vmem:[#allocation33_spill] sm:$0xff] }
 0xb99   :  { %v8600_v4 = vpack.c.bf16 %v6672_v50, %v6670_v10  ;;  %v9880_v10 = vpack.c.bf16 %v9878_v12, %v9879_v19  ;;  %v9881_v19 = vld [vmem:[#allocation38_spill] sm:$0xff]  ;;  %v9886_v12 = vpack.c.bf16 %v9884_v2, %v9885_v25  ;;  %v2613_v25 = vsub.bf16 %v2579_v40, %v8520_v35 }
 0xb9a   :  { %v9883_v52 = vpack.c.bf16 %v9881_v19, %v9882_v61 }
 0xb9b   :  { %v2601_v50 = vsub.bf16 %v9880_v10, %v8454_v43  ;;  %v2631_v29 = vmul.bf16 %v8600_v4, %v2597_v44  ;;  %v2633_v42 = vmul.bf16 %v8600_v4, %v2599_v32  ;;  %v2630_v34 = vmul.bf16 %v8600_v4, %v2596_v27  ;;  %v9890_v32 = vld [vmem:[#allocation45_spill] sm:$0xff]  ;;  %v9891_v27 = vld [vmem:[#allocation42_spill] sm:$0xff] }
 0xb9c   :  { %v2632_v36 = vmul.bf16 %v8600_v4, %v2598_v41  ;;  %v2603_v17 = vsub.bf16 %v9883_v52, %v8454_v43  ;;  %v2600_v10 = vsub.bf16 %v9886_v12, %v8454_v43  ;;  %v9889_v44 = vpack.c.bf16 %v9887_v24, %v9888_v51  ;;  %v9893_v24 = vld [vmem:[#allocation46_spill] sm:$0xff] }
 0xb9d   :  { %v9892_v41 = vpack.c.bf16 %v9890_v32, %v9891_v27  ;;  %v2887_v23 = vmul.bf16 %v2773_v54, %v2631_v29  ;;  %v2889_v19 = vmul.bf16 %v2789_v14, %v2633_v42  ;;  %v2886_v61 = vmul.bf16 %v8381_v38, %v2630_v34 }
 0xb9e   :  { %v8642_v47 = vsub.bf16 %v9889_v44, %v8454_v43  ;;  %v2888_v52 = vmul.bf16 %v8384_v31, %v2632_v36  ;;  %v6674_v2 = vpop.eup %6673  ;;  %v2635_v12 = vmul.bf16 %v8600_v4, %v2601_v50  ;;  %v2637_v51 = vmul.bf16 %v8600_v4, %v2603_v17  ;;  %v9894_v44 = vld [vmem:[#allocation44_spill] sm:$0xff] }
 0xb9f   :  { %v8648_v45 = vsub.bf16 %v9892_v41, %v8454_v43  ;;  %v9895_v59 = vpack.c.bf16 %v9893_v24, %v9894_v44  ;;  %v8661_v27 = vpack.c.bf16 %v6674_v2, %v6674_v2  ;;  %v8664_v29 = vadd.bf16 %v8572_v26, %v2887_v23 }
 0xba0   :  { %v8667_v42 = vadd.bf16 %v8576_v22, %v2889_v19  ;;  %v8670_v40 = vadd.bf16 %v8371_v37, %v2886_v61  ;;  %v8673_v50 = vadd.bf16 %v8378_v5, %v2888_v52  ;;  %v9896_v34 = vpack.c.bf16 %v9861_v53, %v9861_v53 }
 0xba1   :  { %v8659_v32 = vsub.bf16 %v9895_v59, %v8454_v43  ;;  %v9897_v59 = vpack.c.bf16 %v7914_v63, %v7914_v63  ;;  %v9898_v36 = vpack.c.bf16 %v7937_v48, %v7937_v48  ;;  %v3191_v41 = vmul.bf16 1027030327, %v8664_v29 }
 0xba2   :  { %v2615_v43 = vsub.bf16 %v9896_v34, %v8520_v35  ;;  %v2647_v19 = vmul.bf16 %v8661_v27, %v2613_v25  ;;  %v2634_v61 = vmul.bf16 %v8600_v4, %v2600_v10  ;;  %v2636_v53 = vmul.bf16 %v8600_v4, %v8642_v47 }
 0xba3   :  { %v2612_v23 = vsub.bf16 %v9897_v59, %v8520_v35  ;;  %v2614_v17 = vsub.bf16 %v9898_v36, %v8520_v35  ;;  %v3193_v52 = vmul.bf16 1027030327, %v8667_v42  ;;  %v3190_v2 = vmul.bf16 1027030327, %v8670_v40 }
 0xba4   :  { %v2649_v63 = vmul.bf16 %v8661_v27, %v2615_v43  ;;  %v2891_v24 = vmul.bf16 %v8579_v30, %v2635_v12  ;;  %v3223_v48 = vmul.bf16 %v3191_v41, %v8664_v29  ;;  %v3192_v44 = vmul.bf16 1027030327, %v8673_v50 }
 0xba5   :  { %v2903_v34 = vmul.bf16 %v2773_v54, %v2647_v19  ;;  %v2893_v25 = vmul.bf16 %v8585_v49, %v2637_v51  ;;  %v3225_v10 = vmul.bf16 %v3193_v52, %v8667_v42  ;;  %v3222_v59 = vmul.bf16 %v3190_v2, %v8670_v40 }
 0xba6   :  { %v2905_v47 = vmul.bf16 %v2789_v14, %v2649_v63  ;;  %v2646_v36 = vmul.bf16 %v8661_v27, %v2612_v23  ;;  %v3255_v18 = vmul.bf16 %v3223_v48, %v8664_v29  ;;  %v3224_v43 = vmul.bf16 %v3192_v44, %v8673_v50 }
 0xba7   :  { %v8705_v12 = vadd.bf16 %v8572_v26, %v2903_v34  ;;  %v2648_v41 = vmul.bf16 %v8661_v27, %v2614_v17  ;;  %v3257_v54 = vmul.bf16 %v3225_v10, %v8667_v42  ;;  %v3254_v51 = vmul.bf16 %v3222_v59, %v8670_v40 }
 0xba8   :  { %v8711_v19 = vadd.bf16 %v8576_v22, %v2905_v47  ;;  %v2902_v14 = vmul.bf16 %v8381_v38, %v2646_v36  ;;  %v3287_v23 = vadd.bf16 %v3255_v18, %v8664_v29  ;;  %v3256_v52 = vmul.bf16 %v3224_v43, %v8673_v50 }
 0xba9   :  { %v3207_v2 = vmul.bf16 1027030327, %v8705_v12  ;;  %v2890_v26 = vmul.bf16 %v8391_v57, %v2634_v61  ;;  %v3289_v63 = vadd.bf16 %v3257_v54, %v8667_v42  ;;  %v3286_v17 = vadd.bf16 %v3254_v51, %v8670_v40 }
 0xbaa   :  { %v3209_v48 = vmul.bf16 1027030327, %v8711_v19  ;;  %v8722_v44 = vadd.bf16 %v8582_v62, %v2891_v24  ;;  %v3319_v22 = vmul.bf16 1061961548, %v3287_v23  ;;  %v3288_v38 = vadd.bf16 %v3256_v52, %v8673_v50 }
 0xbab   :  { %v3239_v18 = vmul.bf16 %v3207_v2, %v8705_v12  ;;  %v8727_v34 = vadd.bf16 %v8371_v37, %v2902_v14  ;;  %v3321_v10 = vmul.bf16 1061961548, %v3289_v63  ;;  %v3318_v59 = vmul.bf16 1061961548, %v3286_v17 }
 0xbac   :  { %v3241_v61 = vmul.bf16 %v3209_v48, %v8711_v19  ;;  %v2904_v47 = vmul.bf16 %v8384_v31, %v2648_v41  ;;  %6675 = vtanh.bf16 %v3319_v22  ;;  %v3320_v36 = vmul.bf16 1061961548, %v3288_v38 }
 0xbad   :  { %v3271_v43 = vmul.bf16 %v3239_v18, %v8705_v12  ;;  %v8733_v24 = vadd.bf16 %v8592_v11, %v2893_v25  ;;  %6677 = vtanh.bf16 %v3321_v10  ;;  %v3206_v51 = vmul.bf16 1027030327, %v8727_v34 }
 0xbae   :  { %v3273_v54 = vmul.bf16 %v3241_v61, %v8711_v19  ;;  %v8738_v37 = vadd.bf16 %v8378_v5, %v2904_v47  ;;  %6679 = vtanh.bf16 %v3318_v59  ;;  %v3195_v31 = vmul.bf16 1027030327, %v8722_v44 }
 0xbaf   :  { %v3303_v14 = vadd.bf16 %v3271_v43, %v8705_v12  ;;  %v8743_v41 = vadd.bf16 %v8394_v0, %v2890_v26  ;;  %6681 = vtanh.bf16 %v3320_v36  ;;  %v3238_v23 = vmul.bf16 %v3206_v51, %v8727_v34 }
 0xbb0   :  { %v3305_v25 = vadd.bf16 %v3273_v54, %v8711_v19  ;;  %v2892_v52 = vmul.bf16 %v8404_v16, %v2636_v53  ;;  %v3208_v63 = vmul.bf16 1027030327, %v8738_v37  ;;  %v3227_v5 = vmul.bf16 %v3195_v31, %v8722_v44 }
 0xbb1   :  { %v3335_v2 = vmul.bf16 1061961548, %v3303_v14  ;;  %v9899_v17 = vpack.c.bf16 %v9864_v28, %v9864_v28  ;;  %v3270_v26 = vmul.bf16 %v3238_v23, %v8727_v34  ;;  %v3197_v38 = vmul.bf16 1027030327, %v8733_v24 }
 0xbb2   :  { %v3337_v22 = vmul.bf16 1061961548, %v3305_v25  ;;  %v9900_v18 = vpack.c.bf16 %v9865_v1, %v9865_v1  ;;  %v3240_v10 = vmul.bf16 %v3208_v63, %v8738_v37  ;;  %v3259_v59 = vmul.bf16 %v3227_v5, %v8722_v44 }
 0xbb3   :  { %v2617_v48 = vsub.bf16 %v9899_v17, %v8520_v35  ;;  %6683 = vtanh.bf16 %v3335_v2  ;;  %v3194_v61 = vmul.bf16 1027030327, %v8743_v41  ;;  %v3302_v28 = vadd.bf16 %v3270_v26, %v8727_v34 }
 0xbb4   :  { %v2619_v53 = vsub.bf16 %v9900_v18, %v8520_v35  ;;  %6685 = vtanh.bf16 %v3337_v22  ;;  %v3229_v47 = vmul.bf16 %v3197_v38, %v8733_v24  ;;  %v8766_v36 = vadd.bf16 %v8401_v55, %v2892_v52 }
 0xbb5   :  { %v3272_v43 = vmul.bf16 %v3240_v10, %v8738_v37  ;;  %v3291_v1 = vadd.bf16 %v3259_v59, %v8722_v44  ;;  %v2651_v54 = vmul.bf16 %v8661_v27, %v2617_v48  ;;  %v9901_v51 = vpack.c.bf16 %v9862_v21, %v9862_v21 }
 0xbb6   :  { %v3334_v31 = vmul.bf16 1061961548, %v3302_v28  ;;  %v3261_v25 = vmul.bf16 %v3229_v47, %v8733_v24  ;;  %v3226_v23 = vmul.bf16 %v3194_v61, %v8743_v41  ;;  %v3196_v2 = vmul.bf16 1027030327, %v8766_v36 }
 0xbb7   :  { %v2616_v14 = vsub.bf16 %v9901_v51, %v8520_v35  ;;  %v3304_v52 = vadd.bf16 %v3272_v43, %v8738_v37  ;;  %v3323_v63 = vmul.bf16 1061961548, %v3291_v1  ;;  %v2907_v5 = vmul.bf16 %v8579_v30, %v2651_v54 }
 0xbb8   :  { %v9902_v17 = vpack.c.bf16 %v9863_v8, %v9863_v8  ;;  %v3159_v21 = vmul.bf16 1056980736, %v8664_v29  ;;  %6687 = vtanh.bf16 %v3334_v31  ;;  %v3293_v22 = vadd.bf16 %v3261_v25, %v8733_v24 }
 0xbb9   :  { %v2653_v26 = vmul.bf16 %v8661_v27, %v2619_v53  ;;  %v3336_v38 = vmul.bf16 1061961548, %v3304_v52  ;;  %6689 = vtanh.bf16 %v3323_v63  ;;  %v3228_v18 = vmul.bf16 %v3196_v2, %v8766_v36 }
 0xbba   :  { %v2618_v48 = vsub.bf16 %v9902_v17, %v8520_v35  ;;  %v8789_v10 = vadd.bf16 %v8582_v62, %v2907_v5  ;;  %v3325_v30 = vmul.bf16 1061961548, %v3293_v22  ;;  %v3258_v59 = vmul.bf16 %v3226_v23, %v8743_v41  ;;  %v6676_v29 = vpop.eup %6675 }
 0xbbb   :  { %v2909_v8 = vmul.bf16 %v8585_v49, %v2653_v26  ;;  %v2650_v35 = vmul.bf16 %v8661_v27, %v2616_v14  ;;  %v3161_v61 = vmul.bf16 1056980736, %v8667_v42  ;;  %v3158_v28 = vmul.bf16 1056980736, %v8670_v40  ;;  %v6678_v47 = vpop.eup %6677 }
 0xbbc   :  { %6691 = vtanh.bf16 %v3336_v38  ;;  %v3211_v53 = vmul.bf16 1027030327, %v8789_v10  ;;  %v3383_v43 = vadd.bf16 1065369472, %v6676_v29  ;;  %v3160_v62 = vmul.bf16 1056980736, %v8673_v50  ;;  %v6680_v54 = vpop.eup %6679 }
 0xbbd   :  { %6693 = vtanh.bf16 %v3325_v30  ;;  %v8799_v1 = vadd.bf16 %v8592_v11, %v2909_v8  ;;  %v3385_v49 = vadd.bf16 1065369472, %v6678_v47  ;;  %v3260_v51 = vmul.bf16 %v3228_v18, %v8766_v36  ;;  %v6682_v40 = vpop.eup %6681  ;;  %v6521_v11 = vld [vmem:[%s9722_s11 + $0x138] sm:$0xff]   ;;  %v6524_v30 = vld [vmem:[%s9722_s11 + $0x1f0] sm:$0xff]  }
 0xbbe   :  { %v3243_v14 = vmul.bf16 %v3211_v53, %v8789_v10  ;;  %v2906_v42 = vmul.bf16 %v8391_v57, %v2650_v35  ;;  %v3415_v31 = vmul.bf16 %v3383_v43, %v3159_v21  ;;  %v3382_v25 = vadd.bf16 1065369472, %v6680_v54  ;;  %v6522_v57 = vld [vmem:[%s9722_s11 + $0x1b8] sm:$0xff]   ;;  %v6527_v54 = vld [vmem:[%s9722_s11 + $0x168] sm:$0xff]  }
 0xbbf   :  { %v3175_v23 = vmul.bf16 1056980736, %v8705_v12  ;;  %v3290_v2 = vadd.bf16 %v3258_v59, %v8743_v41  ;;  %v3417_v50 = vmul.bf16 %v3385_v49, %v3161_v61  ;;  %v3384_v52 = vadd.bf16 1065369472, %v6682_v40  ;;  %v6523_v12 = vld [vmem:[%s9722_s11 + $0x170] sm:$0xff]   ;;  %v6528_v40 = vld [vmem:[%s9722_s11 + $0x1e8] sm:$0xff]  }
 0xbc0   :  { %v3275_v63 = vmul.bf16 %v3243_v14, %v8789_v10  ;;  %v3213_v5 = vmul.bf16 1027030327, %v8799_v1  ;;  %4506 = vmatprep.mubr.bf16.mxu1 %v3415_v31  ;;  %v3414_v17 = vmul.bf16 %v3382_v25, %v3158_v28  ;;  %v3177_v21 = vmul.bf16 1056980736, %v8711_v19  ;;  %v6525_v28 = vld [vmem:[%s9722_s11 + $0x130] sm:$0xff]  }
 0xbc1   :  { %v8819_v22 = vadd.bf16 %v8394_v0, %v2906_v42  ;;  %v2652_v26 = vmul.bf16 %v8661_v27, %v2618_v48  ;;  %v6684_v38 = vpop.eup %6683  ;;  %4554 = vmatprep.mubr.bf16.mxu0 %v3417_v50  ;;  %v3416_v18 = vmul.bf16 %v3384_v52, %v3160_v62  ;;  %v3292_v59 = vadd.bf16 %v3260_v51, %v8766_v36  ;;  %v6526_v62 = vld [vmem:[%s9722_s11 + $0x1b0] sm:$0xff]  }
 0xbc2   :  { %v3245_v8 = vmul.bf16 %v3213_v5, %v8799_v1  ;;  %v2639_v35 = vmul.bf16 %v8600_v4, %v8648_v45  ;;  %v6686_v19 = vpop.eup %6685  ;;  %4507 = vmatmul.mubr.bf16.vlgmr.msra.gmra.mxu1 %v3414_v17  ;;  %v3399_v0 = vadd.bf16 1065369472, %v6684_v38  ;;  %v3322_v29 = vmul.bf16 1061961548, %v3290_v2 }
 0xbc3   :  { %v3210_v48 = vmul.bf16 1027030327, %v8819_v22  ;;  %v2908_v61 = vmul.bf16 %v8404_v16, %v2652_v26  ;;  %4555 = vmatmul.mubr.bf16.vlgmr.msra.gmra.mxu0 %v3416_v18  ;;  %6060 = vmatpush3.bf16.msra.mxu1 %v6521_v11  ;;  %v3401_v53 = vadd.bf16 1065369472, %v6686_v19  ;;  %v3307_v47 = vadd.bf16 %v3275_v63, %v8789_v10 }
 0xbc4   :  { %v3277_v43 = vmul.bf16 %v3245_v8, %v8799_v1  ;;  %v2895_v45 = vmul.bf16 %v8595_v9, %v2639_v35  ;;  %6088 = vmatpush3.bf16.msra.mxu0 %v6522_v57  ;;  %6061 = vmatprep.subr.bf16.mxu1 %v6523_v12  ;;  %v3431_v16 = vmul.bf16 %v3399_v0, %v3175_v23  ;;  %v3174_v49 = vmul.bf16 1056980736, %v8727_v34  ;;  %v6529_v34 = vld [vmem:[%s9722_s11 + $0x128] sm:$0xff]   ;;  %v6532_v35 = vld [vmem:[%s9722_s11 + $0x1e0] sm:$0xff]  }
 0xbc5   :  { %v3242_v51 = vmul.bf16 %v3210_v48, %v8819_v22  ;;  %v8846_v14 = vadd.bf16 %v8401_v55, %v2908_v61  ;;  %6089 = vmatprep.subr.bf16.mxu0 %v6524_v30  ;;  %v3433_v42 = vmul.bf16 %v3401_v53, %v3177_v21  ;;  %v3324_v31 = vmul.bf16 1061961548, %v3292_v59  ;;  %v6530_v55 = vld [vmem:[%s9722_s11 + $0x1a8] sm:$0xff]   ;;  %v6531_v30 = vld [vmem:[%s9722_s11 + $0x160] sm:$0xff]  }
 0xbc6   :  { %v3309_v25 = vadd.bf16 %v3277_v43, %v8799_v1  ;;  %v8853_v23 = vadd.bf16 %v8598_v58, %v2895_v45  ;;  %v6688_v2 = vpop.eup %6687  ;;  %4514 = vmatprep.mubr.bf16.mxu1 %v3431_v16  ;;  %v3163_v50 = vmul.bf16 1056980736, %v8722_v44  ;;  %v2641_v63 = vmul.bf16 %v8600_v4, %v8659_v32  ;;  %v6533_v43 = vld [vmem:[%s9722_s11 + $0x120] sm:$0xff]  }
 0xbc7   :  { %v3274_v52 = vmul.bf16 %v3242_v51, %v8819_v22  ;;  %v3212_v11 = vmul.bf16 1027030327, %v8846_v14  ;;  %v6690_v5 = vpop.eup %6689  ;;  %6062 = vmatpush3.bf16.msra.mxu1 %v6525_v28  ;;  %4562 = vmatprep.mubr.bf16.mxu0 %v3433_v42  ;;  %v3398_v17 = vadd.bf16 1065369472, %v6688_v2  ;;  %v3176_v57 = vmul.bf16 1056980736, %v8738_v37 }
 0xbc8   :  { %v3165_v12 = vmul.bf16 1056980736, %v8733_v24  ;;  %6695 = vtanh.bf16 %v3322_v29  ;;  %6090 = vmatpush3.bf16.msra.mxu0 %v6526_v62  ;;  %6063 = vmatprep.subr.bf16.mxu1 %v6527_v54  ;;  %v3387_v21 = vadd.bf16 1065369472, %v6690_v5  ;;  %v3339_v44 = vmul.bf16 1061961548, %v3307_v47 }
 0xbc9   :  { %v3244_v26 = vmul.bf16 %v3212_v11, %v8846_v14  ;;  %v3199_v38 = vmul.bf16 1027030327, %v8853_v23  ;;  %6091 = vmatprep.subr.bf16.mxu0 %v6528_v40  ;;  %v3430_v32 = vmul.bf16 %v3398_v17, %v3174_v49  ;;  %6697 = vtanh.bf16 %v3324_v31  ;;  %v6534_v45 = vld [vmem:[%s9722_s11 + $0x1a0] sm:$0xff]   ;;  %v6788_v62 = vld [vmem:[%s9716_s5 + $0x30] sm:$0x77]  ;;  %v6535_v49 = vld [vmem:[%s9722_s11 + $0x158] sm:$0xff]  }
 0xbca   :  { %v6692_v18 = vpop.eup %6691  ;;  %v3341_v37 = vmul.bf16 1061961548, %v3309_v25  ;;  %v2897_v24 = vmul.bf16 %v8619_v6, %v2641_v63  ;;  %v3306_v19 = vadd.bf16 %v3274_v52, %v8819_v22  ;;  %v2638_v29 = vmul.bf16 %v8600_v4, %v8480_v7  ;;  %v6536_v51 = vld [vmem:[%s9722_s11 + $0x1d8] sm:$0xff]  }
 0xbcb   :  { %v6694_v59 = vpop.eup %6693  ;;  %v3400_v8 = vadd.bf16 1065369472, %v6692_v18  ;;  %v3276_v0 = vmul.bf16 %v3244_v26, %v8846_v14  ;;  %4515 = vmatmul.mubr.bf16.gmra.mxu1 %v3430_v32  ;;  %v3419_v48 = vmul.bf16 %v3387_v21, %v3163_v50  ;;  %v3231_v28 = vmul.bf16 %v3199_v38, %v8853_v23  ;;  %v6789_v2 = vld [vmem:[%s9716_s5 + $0x38] sm:$0x77]  ;;  %v6539_v21 = vld [vmem:[%s9722_s11 + $0x150] sm:$0xff]  }
 0xbcc   :  { %v3389_v61 = vadd.bf16 1065369472, %v6694_v59  ;;  %v8883_v53 = vadd.bf16 %v8622_v46, %v2897_v24  ;;  %6064 = vmatpush3.bf16.msra.mxu1 %v6529_v34  ;;  %6092 = vmatpush3.bf16.msra.mxu0 %v6530_v55  ;;  %6699 = vtanh.bf16 %v3339_v44  ;;  %v2973_v16 = vrot.slane %v6788_v62, %v7454_v13  ;;  %v6538_v63 = vld [vmem:[%s9722_s11 + $0x198] sm:$0xff]   ;;  %v6540_v44 = vld [vmem:[%s9722_s11 + $0x1d0] sm:$0xff]  }
 0xbcd   :  { %v3432_v47 = vmul.bf16 %v3400_v8, %v3176_v57  ;;  %v3308_v7 = vadd.bf16 %v3276_v0, %v8846_v14  ;;  %4602 = vmatprep.mubr.bf16.mxu1 %v3419_v48  ;;  %6065 = vmatprep.subr.bf16.mxu1 %v6531_v30  ;;  %6701 = vtanh.bf16 %v3341_v37  ;;  %v3263_v42 = vmul.bf16 %v3231_v28, %v8853_v23  ;;  %v9904_v24 = vld [vmem:[#allocation47_spill] sm:$0xff]  ;;  %v9905_v8 = vld [vmem:[#allocation57_spill] sm:$0xff] }
 0xbce   :  { %v3421_v54 = vmul.bf16 %v3389_v61, %v3165_v12  ;;  %v3201_v40 = vmul.bf16 1027030327, %v8883_v53  ;;  %6093 = vmatprep.subr.bf16.mxu0 %v6532_v35  ;;  %v2894_v31 = vmul.bf16 %v8418_v15, %v2638_v29  ;;  %v2757_v25 = vpack.c.bf16 %v8444_v56, %v8444_v56  ;;  %v6537_v56 = vld [vmem:[%s9722_s11 + $0x118] sm:$0xff]   ;;  %v9908_v61 = vld [vmem:[#allocation48_spill] sm:$0xff] }
 0xbcf   :  { %4563 = vmatmul.mubr.bf16.gmra.mxu0 %v3432_v47  ;;  %v2981_v34 = vrot.slane %v6789_v2, %v7454_v13  ;;  %v3338_v55 = vmul.bf16 1061961548, %v3306_v19  ;;  %v3295_v50 = vadd.bf16 %v3263_v42, %v8853_v23  ;;  %v2640_v11 = vmul.bf16 %v8600_v4, %v8486_v20  ;;  %v9906_v19 = vld [vmem:[#allocation49_spill] sm:$0xff]  ;;  %v9907_v29 = vld [vmem:[#allocation51_spill] sm:$0xff] }
 0xbd0   :  { %4650 = vmatprep.mubr.bf16.mxu0 %v3421_v54  ;;  %v3233_v52 = vmul.bf16 %v3201_v40, %v8883_v53  ;;  %6066 = vmatpush3.bf16.msra.mxu1 %v6533_v43  ;;  %v3340_v5 = vmul.bf16 1061961548, %v3308_v7  ;;  %v2655_v17 = vmul.bf16 %v8661_v27, %v8533_v39  ;;  %v2657_v57 = vmul.bf16 %v8661_v27, %v8536_v60  ;;  %v6543_v43 = vld [vmem:[%s9722_s11 + $0x148] sm:$0xff]  }
 0xbd1   :  { %6094 = vmatpush3.bf16.msra.mxu0 %v6534_v45  ;;  %v9903_v20 = vpack.c.bf16 %v8432_v3, %v8432_v3  ;;  %6067 = vmatprep.subr.bf16.mxu1 %v6535_v49  ;;  %v3327_v26 = vmul.bf16 1061961548, %v3295_v50  ;;  %v2896_v38 = vmul.bf16 %v8421_v33, %v2640_v11  ;;  %v3011_v60 = vpack.c.bf16 %v2973_v16, %v2973_v16  ;;  %v6544_v45 = vld [vmem:[%s9722_s11 + $0x1c8] sm:$0xff]   ;;  %v9909_v16 = vld [vmem:[#allocation58_spill] sm:$0xff]  ;;  %v9911_v50 = vld [vmem:[#allocation52_spill] sm:$0xff] }
 0xbd2   :  { %6095 = vmatprep.subr.bf16.mxu0 %v6536_v51  ;;  %v3265_v39 = vmul.bf16 %v3233_v52, %v8883_v53  ;;  %v2911_v18 = vmul.bf16 %v8595_v9, %v2655_v17  ;;  %v2913_v3 = vmul.bf16 %v8619_v6, %v2657_v57  ;;  %v2879_v32 = vshrl.u32 %v2757_v25, 16  ;;  %v6541_v6 = vld [vmem:[%s9722_s11 + $0x110] sm:$0xff]   ;;  %v6546_v11 = vld [vmem:[%s9722_s11 + $0x188] sm:$0xff]   ;;  %v6548_v17 = vld [vmem:[%s9722_s11 + $0x1c0] sm:$0xff]  }
 0xbd3   :  { %v2863_v12 = vshrl.u32 %v9903_v20, 16  ;;  %v3013_v30 = vpack.c.bf16 %v2981_v34, %v2981_v34  ;;  %6703 = vtanh.bf16 %v3338_v55  ;;  %v8940_v59 = vadd.bf16 %v9904_v24, %v2894_v31  ;;  %v6542_v9 = vld [vmem:[%s9722_s11 + $0x190] sm:$0xff]  }
 0xbd4   :  { %v3297_v37 = vadd.bf16 %v3265_v39, %v8883_v53  ;;  %v2654_v35 = vmul.bf16 %v8661_v27, %v9905_v8  ;;  %v2754_v0 = vpack.c.bf16 %v9906_v19, %v9906_v19  ;;  %v2756_v48 = vpack.c.bf16 %v9907_v29, %v9907_v29  ;;  %6068 = vmatpush3.bf16.msra.mxu1 %v6537_v56  ;;  %v9910_v55 = vld [vmem:[#allocation50_spill] sm:$0xff]  ;;  %v9913_v39 = vld [vmem:[#allocation7_spill] sm:$0xff]  ;;  %v6550_v8 = vld [vmem:[%s9722_s11 + $0x180] sm:$0xff]  }
 0xbd5   :  { %6096 = vmatpush3.bf16.msra.mxu0 %v6538_v63  ;;  %6705 = vtanh.bf16 %v3340_v5  ;;  %v8955_v28 = vadd.bf16 %v9908_v61, %v2896_v38  ;;  %6069 = vmatprep.subr.bf16.mxu1 %v6539_v21  ;;  %v8966_v62 = vadd.bf16 %v8598_v58, %v2911_v18  ;;  %v2656_v54 = vmul.bf16 %v8661_v27, %v9909_v16  ;;  %v6547_v5 = vld [vmem:[%s9722_s11 + $0x140] sm:$0xff]   ;;  %v9914_v29 = vld [vmem:[#allocation53_spill] sm:$0xff] }
 0xbd6   :  { %v8957_v47 = vpop.eup %6695  ;;  %6097 = vmatprep.subr.bf16.mxu0 %v6540_v44  ;;  %6707 = vtanh.bf16 %v3327_v26  ;;  %v3329_v7 = vmul.bf16 1061961548, %v3297_v37  ;;  %v8971_v49 = vadd.bf16 %v8622_v46, %v2913_v3  ;;  %v2864_v51 = vpack.i.b16 %v2863_v12, %v2863_v12  ;;  %v6545_v46 = vld [vmem:[%s9722_s11 + $0x108] sm:$0xff]   ;;  %v9912_v44 = vld [vmem:[#allocation6_spill] sm:$0xff]  ;;  %v6549_v3 = vld [vmem:[%s9722_s11 + $0x100] sm:$0xff]  }
 0xbd7   :  { %v3106_v42 = vpack.i.b16 %v3011_v60, %v3011_v60  ;;  %v2880_v40 = vpack.i.b16 %v2879_v32, %v2879_v32  ;;  %v6698_v31 = vpop.eup %6697  ;;  %v3198_v25 = vmul.bf16 1027030327, %v8940_v59  ;;  %v2910_v2 = vmul.bf16 %v8418_v15, %v2654_v35 }
 0xbd8   :  { %6709 = vtanh.bf16 %v3329_v7  ;;  %v3120_v34 = vpack.i.b16 %v3013_v30, %v3013_v30  ;;  %v8977_v58 = vpack.c.bf16 %v9910_v55, %v9910_v55  ;;  %v8981_v52 = vpack.c.bf16 %v9911_v50, %v9911_v50  ;;  %6070 = vmatpush3.bf16.msra.mxu1 %v6541_v6  ;;  %v6554_v50 = vld [vmem:[%s9722_s11 + $0x2b8] sm:$0xff]  }
 0xbd9   :  { %6098 = vmatpush3.bf16.msra.mxu0 %v6542_v9  ;;  %v3200_v15 = vmul.bf16 1027030327, %v8955_v28  ;;  %v8990_v56 = vshrl.u32 %v2754_v0, 16  ;;  %v8992_v63 = vshrl.u32 %v2756_v48, 16  ;;  %6071 = vmatprep.subr.bf16.mxu1 %v6543_v43  ;;  %v3215_v57 = vmul.bf16 1027030327, %v8966_v62 }
 0xbda   :  { %6099 = vmatprep.subr.bf16.mxu0 %v6544_v45  ;;  %v2912_v20 = vmul.bf16 %v8421_v33, %v2656_v54  ;;  %v6700_v12 = vpop.eup %6699  ;;  %v3217_v21 = vmul.bf16 1027030327, %v8971_v49  ;;  %v9004_v26 = vrot.slane %v2864_v51, %v9912_v44  ;;  %v9007_v38 = vrot.slane %v3106_v42, %v9913_v39 }
 0xbdb   :  { %v9010_v60 = vrot.slane %v2880_v40, %v9912_v44  ;;  %v6702_v18 = vpop.eup %6701  ;;  %v3162_v32 = vmul.bf16 1056980736, %v8743_v41  ;;  %v3230_v33 = vmul.bf16 %v3198_v25, %v8940_v59  ;;  %v9018_v30 = vadd.bf16 %v9904_v24, %v2910_v2  ;;  %v6551_v41 = vld [vmem:[%s9722_s11 + $0x278] sm:$0xff]   ;;  %v9915_v40 = vld [vmem:[#allocation54_spill] sm:$0xff] }
 0xbdc   :  { %v9021_v37 = vrot.slane %v3120_v34, %v9913_v39  ;;  %6072 = vmatpush3.bf16.msra.mxu1 %v6545_v46  ;;  %v3386_v35 = vadd.bf16 1065369472, %v8957_v47  ;;  %v6552_v24 = vld [vmem:[%s9722_s11 + $0x2f8] sm:$0xff]   ;;  %v3232_v19 = vmul.bf16 %v3200_v15, %v8955_v28  ;;  %v9035_v0 = vadd.bf16 %v9908_v61, %v2912_v20  ;;  %v6555_v20 = vld [vmem:[%s9722_s11 + $0x270] sm:$0xff]  }
 0xbdd   :  { %6100 = vmatpush3.bf16.msra.mxu0 %v6546_v11  ;;  %v2643_v48 = vmul.bf16 %v8600_v4, %v9914_v29  ;;  %6073 = vmatprep.subr.bf16.mxu1 %v6547_v5  ;;  %v3164_v6 = vmul.bf16 1056980736, %v8766_v36  ;;  %v3388_v9 = vadd.bf16 1065369472, %v6698_v31  ;;  %v3179_v47 = vmul.bf16 1056980736, %v8789_v10 }
 0xbde   :  { %6101 = vmatprep.subr.bf16.mxu0 %v6548_v17  ;;  %v3247_v43 = vmul.bf16 %v3215_v57, %v8966_v62  ;;  %v3403_v45 = vadd.bf16 1065369472, %v6700_v12  ;;  %v3405_v7 = vadd.bf16 1065369472, %v6702_v18  ;;  %v3249_v16 = vmul.bf16 %v3217_v21, %v8971_v49  ;;  %v6556_v12 = vld [vmem:[%s9722_s11 + $0x2f0] sm:$0xff]  }
 0xbdf   :  { %v2899_v54 = vmul.bf16 %v9004_v26, %v2643_v48  ;;  %v3181_v61 = vmul.bf16 1056980736, %v8799_v1  ;;  %v3262_v51 = vmul.bf16 %v3230_v33, %v8940_v59  ;;  %v3214_v42 = vmul.bf16 1027030327, %v9018_v30  ;;  %v6553_v1 = vld [vmem:[%s9722_s11 + $0x238] sm:$0xff]  }
 0xbe0   :  { %v2645_v36 = vmul.bf16 %v8600_v4, %v9915_v40  ;;  %6074 = vmatpush3.bf16.msra.mxu1 %v6549_v3  ;;  %v3418_v10 = vmul.bf16 %v3386_v35, %v3162_v32  ;;  %v3264_v31 = vmul.bf16 %v3232_v19, %v8955_v28  ;;  %v3216_v25 = vmul.bf16 1027030327, %v9035_v0 }
 0xbe1   :  { %6102 = vmatpush3.bf16.msra.mxu0 %v6550_v8  ;;  %v9052_v2 = vadd.bf16 %v9007_v38, %v2899_v54  ;;  %v6704_v34 = vpop.eup %6703  ;;  %v3420_v55 = vmul.bf16 %v3388_v9, %v3164_v6  ;;  %6115 = vmatprep.subr.bf16.mxu1 %v6551_v41  ;;  %v3279_v46 = vmul.bf16 %v3247_v43, %v8966_v62  ;;  %v6557_v41 = vld [vmem:[%s9722_s11 + $0x230] sm:$0xff]  }
 0xbe2   :  { %6143 = vmatprep.subr.bf16.mxu0 %v6552_v24  ;;  %v2901_v11 = vmul.bf16 %v9010_v60, %v2645_v36  ;;  %v2856_v5 = vpack.i.b16 %v8990_v56, %v8990_v56  ;;  %v3435_v17 = vmul.bf16 %v3403_v45, %v3179_v47  ;;  %v3437_v57 = vmul.bf16 %v3405_v7, %v3181_v61  ;;  %v6558_v24 = vld [vmem:[%s9722_s11 + $0x2b0] sm:$0xff]   ;;  %v6560_v47 = vld [vmem:[%s9722_s11 + $0x2e8] sm:$0xff]   ;;  %v6566_v56 = vld [vmem:[%s9722_s11 + $0x2a0] sm:$0xff]  }
 0xbe3   :  { %v6706_v15 = vpop.eup %6705  ;;  %v3281_v21 = vmul.bf16 %v3249_v16, %v8971_v49  ;;  %4603 = vmatmul.mubr.bf16.vlgmr.msra.gmra.mxu1 %v3418_v10  ;;  %v3294_v3 = vadd.bf16 %v3262_v51, %v8940_v59  ;;  %v3246_v32 = vmul.bf16 %v3214_v42, %v9018_v30  ;;  %v3203_v33 = vmul.bf16 1027030327, %v9052_v2 }
 0xbe4   :  { %v6708_v18 = vpop.eup %6707  ;;  %4651 = vmatmul.mubr.bf16.vlgmr.msra.gmra.mxu0 %v3420_v55  ;;  %v9075_v8 = vadd.bf16 %v9021_v37, %v2901_v11  ;;  %v2872_v35 = vpack.i.b16 %v8992_v63, %v8992_v63  ;;  %4610 = vmatprep.mubr.bf16.mxu1 %v3435_v17  ;;  %v3402_v19 = vadd.bf16 1065369472, %v6704_v34  ;;  %v3296_v29 = vadd.bf16 %v3264_v31, %v8955_v28  ;;  %v6559_v63 = vld [vmem:[%s9722_s11 + $0x268] sm:$0xff]   ;;  %v6564_v17 = vld [vmem:[%s9722_s11 + $0x2e0] sm:$0xff]  }
 0xbe5   :  { %4658 = vmatprep.mubr.bf16.mxu0 %v3437_v57  ;;  %v3248_v48 = vmul.bf16 %v3216_v25, %v9035_v0  ;;  %6116 = vmatpush3.bf16.msra.mxu1 %v6553_v1  ;;  %v3404_v9 = vadd.bf16 1065369472, %v6706_v15  ;;  %v3311_v43 = vadd.bf16 %v3279_v46, %v8966_v62  ;;  %v3235_v45 = vmul.bf16 %v3203_v33, %v9052_v2  ;;  %v6563_v15 = vld [vmem:[%s9722_s11 + $0x260] sm:$0xff]  }
 0xbe6   :  { %v6710_v6 = vpop.eup %6709  ;;  %6144 = vmatpush3.bf16.msra.mxu0 %v6554_v50  ;;  %v3205_v7 = vmul.bf16 1027030327, %v9075_v8  ;;  %6117 = vmatprep.subr.bf16.mxu1 %v6555_v20  ;;  %v3178_v16 = vmul.bf16 1056980736, %v8819_v22  ;;  %v3391_v54 = vadd.bf16 1065369472, %v6708_v18  ;;  %v3313_v51 = vadd.bf16 %v3281_v21, %v8971_v49 }
 0xbe7   :  { %6145 = vmatprep.subr.bf16.mxu0 %v6556_v12  ;;  %v3393_v61 = vadd.bf16 1065369472, %v6710_v6  ;;  %v3180_v42 = vmul.bf16 1056980736, %v8846_v14  ;;  %v3326_v40 = vmul.bf16 1061961548, %v3294_v3  ;;  %v3278_v36 = vmul.bf16 %v3246_v32, %v9018_v30 }
 0xbe8   :  { %v3237_v10 = vmul.bf16 %v3205_v7, %v9075_v8  ;;  %v3167_v31 = vmul.bf16 1056980736, %v8853_v23  ;;  %v3169_v25 = vmul.bf16 1056980736, %v8883_v53  ;;  %v3328_v34 = vmul.bf16 1061961548, %v3296_v29 }
 0xbe9   :  { %v3280_v55 = vmul.bf16 %v3248_v48, %v9035_v0  ;;  %6118 = vmatpush3.bf16.msra.mxu1 %v6557_v41  ;;  %v3434_v22 = vmul.bf16 %v3402_v19, %v3178_v16  ;;  %v3436_v1 = vmul.bf16 %v3404_v9, %v3180_v42  ;;  %v6561_v14 = vld [vmem:[%s9722_s11 + $0x228] sm:$0xff]   ;;  %v3343_v46 = vmul.bf16 1061961548, %v3311_v43  ;;  %v6565_v41 = vld [vmem:[%s9722_s11 + $0x220] sm:$0xff]   ;;  %v9918_v48 = vld [vmem:[#allocation59_spill] sm:$0xff] }
 0xbea   :  { %6146 = vmatpush3.bf16.msra.mxu0 %v6558_v24  ;;  %v6562_v50 = vld [vmem:[%s9722_s11 + $0x2a8] sm:$0xff]   ;;  %v3267_v23 = vmul.bf16 %v3235_v45, %v9052_v2  ;;  %6119 = vmatprep.subr.bf16.mxu1 %v6559_v63  ;;  %v3423_v53 = vmul.bf16 %v3391_v54, %v3167_v31  ;;  %v3425_v11 = vmul.bf16 %v3393_v61, %v3169_v25  ;;  %v3345_v57 = vmul.bf16 1061961548, %v3313_v51  ;;  %v9917_v24 = vld [vmem:[#allocation56_spill] sm:$0xff]  ;;  %v6569_v16 = vld [vmem:[%s9722_s11 + $0x218] sm:$0xff]  }
 0xbeb   :  { %6147 = vmatprep.subr.bf16.mxu0 %v6560_v47  ;;  %v3269_v20 = vmul.bf16 %v3237_v10, %v9075_v8  ;;  %v3099_v12 = vpack.i.b16 %v8977_v58, %v8977_v58  ;;  %v3113_v21 = vpack.i.b16 %v8981_v52, %v8981_v52  ;;  %4611 = vmatmul.mubr.bf16.gmra.mxu1 %v3434_v22  ;;  %6711 = vtanh.bf16 %v3326_v40  ;;  %v9916_v58 = vld [vmem:[#allocation55_spill] sm:$0xff]  ;;  %v9919_v63 = vld [vmem:[#allocation60_spill] sm:$0xff]  ;;  %v6571_v42 = vld [vmem:[%s9722_s11 + $0x250] sm:$0xff]  }
 0xbec   :  { %4659 = vmatmul.mubr.bf16.gmra.mxu0 %v3436_v1  ;;  %v3310_v18 = vadd.bf16 %v3278_v36, %v9018_v30  ;;  %v9127_v3 = vrot.slane %v2856_v5, %v9912_v44  ;;  %4698 = vmatprep.mubr.bf16.mxu1 %v3423_v53  ;;  %6713 = vtanh.bf16 %v3328_v34  ;;  %v3312_v32 = vadd.bf16 %v3280_v55, %v9035_v0  ;;  %v6570_v54 = vld [vmem:[%s9722_s11 + $0x298] sm:$0xff]   ;;  %v6572_v40 = vld [vmem:[%s9722_s11 + $0x2d0] sm:$0xff]   ;;  %v6576_v22 = vld [vmem:[%s9722_s11 + $0x2c8] sm:$0xff]  }
 0xbed   :  { %4746 = vmatprep.mubr.bf16.mxu0 %v3425_v11  ;;  %v2642_v33 = vmul.bf16 %v8600_v4, %v9916_v58  ;;  %v9133_v52 = vrot.slane %v2872_v35, %v9912_v44  ;;  %6120 = vmatpush3.bf16.msra.mxu1 %v6561_v14  ;;  %6715 = vtanh.bf16 %v3343_v46  ;;  %v3299_v5 = vadd.bf16 %v3267_v23, %v9052_v2  ;;  %v6567_v44 = vld [vmem:[%s9722_s11 + $0x258] sm:$0xff]   ;;  %v6573_v34 = vld [vmem:[%s9722_s11 + $0x210] sm:$0xff]   ;;  %v9920_v14 = vld [vmem:[#allocation61_spill] sm:$0xff] }
 0xbee   :  { %6148 = vmatpush3.bf16.msra.mxu0 %v6562_v50  ;;  %v2644_v19 = vmul.bf16 %v8600_v4, %v9917_v24  ;;  %6121 = vmatprep.subr.bf16.mxu1 %v6563_v15  ;;  %v6568_v35 = vld [vmem:[%s9722_s11 + $0x2d8] sm:$0xff]   ;;  %6717 = vtanh.bf16 %v3345_v57  ;;  %v3301_v29 = vadd.bf16 %v3269_v20, %v9075_v8  ;;  %v2659_v6 = vmul.bf16 %v8661_v27, %v9918_v48  ;;  %v6574_v55 = vld [vmem:[%s9722_s11 + $0x290] sm:$0xff]   ;;  %v6580_v20 = vld [vmem:[%s9722_s11 + $0x2c0] sm:$0xff]  }
 0xbef   :  { %6149 = vmatprep.subr.bf16.mxu0 %v6564_v17  ;;  %v3342_v9 = vmul.bf16 1061961548, %v3310_v18  ;;  %v2661_v4 = vmul.bf16 %v8661_v27, %v9919_v63  ;;  %v9156_v47 = vrot.slane %v3099_v12, %v9913_v39  ;;  %v3344_v43 = vmul.bf16 1061961548, %v3312_v32  ;;  %v9921_v23 = vld [vmem:[#allocation62_spill] sm:$0xff]  ;;  %v6577_v17 = vld [vmem:[%s9722_s11 + $0x208] sm:$0xff]  }
 0xbf0   :  { %v2898_v45 = vmul.bf16 %v9127_v3, %v2642_v33  ;;  %v9160_v7 = vrot.slane %v3113_v21, %v9913_v39  ;;  %v3331_v61 = vmul.bf16 1061961548, %v3299_v5  ;;  %v2900_v51 = vmul.bf16 %v9133_v52, %v2644_v19  ;;  %v6582_v5 = vld [vmem:[%s9722_s11 + $0x280] sm:$0xff]  }
 0xbf1   :  { %6122 = vmatpush3.bf16.msra.mxu1 %v6565_v41  ;;  %v3333_v36 = vmul.bf16 1061961548, %v3301_v29  ;;  %v2915_v10 = vmul.bf16 %v9004_v26, %v2659_v6  ;;  %6719 = vtanh.bf16 %v3342_v9  ;;  %v2917_v31 = vmul.bf16 %v9010_v60, %v2661_v4  ;;  %v6575_v60 = vld [vmem:[%s9722_s11 + $0x248] sm:$0xff]  }
 0xbf2   :  { %6150 = vmatpush3.bf16.msra.mxu0 %v6566_v56  ;;  %6123 = vmatprep.subr.bf16.mxu1 %v6567_v44  ;;  %6721 = vtanh.bf16 %v3344_v43  ;;  %v9178_v25 = vadd.bf16 %v9156_v47, %v2898_v45  ;;  %v9187_v26 = vadd.bf16 %v9160_v7, %v2900_v51  ;;  %v2658_v50 = vmul.bf16 %v8661_v27, %v9920_v14  ;;  %v6581_v56 = vld [vmem:[%s9722_s11 + $0x200] sm:$0xff]   ;;  %v6584_v44 = vld [vmem:[%s9722_s11 + $0x3f8] sm:$0xff]  }
 0xbf3   :  { %6151 = vmatprep.subr.bf16.mxu0 %v6568_v35  ;;  %6723 = vtanh.bf16 %v3331_v61  ;;  %v9196_v1 = vadd.bf16 %v9007_v38, %v2915_v10  ;;  %v9201_v46 = vadd.bf16 %v9021_v37, %v2917_v31  ;;  %v2660_v53 = vmul.bf16 %v8661_v27, %v9921_v23  ;;  %v6578_v38 = vld [vmem:[%s9722_s11 + $0x288] sm:$0xff]   ;;  %v6579_v27 = vld [vmem:[%s9722_s11 + $0x240] sm:$0xff]   ;;  %v6587_v31 = vld [vmem:[%s9722_s11 + $0x370] sm:$0xff]  }
 0xbf4   :  { %6725 = vtanh.bf16 %v3333_v36  ;;  %v3202_v11 = vmul.bf16 1027030327, %v9178_v25  ;;  %v3204_v57 = vmul.bf16 1027030327, %v9187_v26  ;;  %v2914_v21 = vmul.bf16 %v9127_v3, %v2658_v50  ;;  %v6589_v23 = vld [vmem:[%s9722_s11 + $0x330] sm:$0xff]  }
 0xbf5   :  { %6124 = vmatpush3.bf16.msra.mxu1 %v6569_v16  ;;  %v3219_v12 = vmul.bf16 1027030327, %v9196_v1  ;;  %v3221_v32 = vmul.bf16 1027030327, %v9201_v46  ;;  %v2916_v58 = vmul.bf16 %v9133_v52, %v2660_v53  ;;  %v6583_v52 = vld [vmem:[%s9722_s11 + $0x378] sm:$0xff]   ;;  %v6590_v53 = vld [vmem:[%s9722_s11 + $0x3b0] sm:$0xff]  }
 0xbf6   :  { %6152 = vmatpush3.bf16.msra.mxu0 %v6570_v54  ;;  %6125 = vmatprep.subr.bf16.mxu1 %v6571_v42  ;;  %v3234_v41 = vmul.bf16 %v3202_v11, %v9178_v25  ;;  %v3236_v3 = vmul.bf16 %v3204_v57, %v9187_v26  ;;  %v9239_v29 = vadd.bf16 %v9156_v47, %v2914_v21  ;;  %v3166_v4 = vmul.bf16 1056980736, %v8940_v59  ;;  %v6585_v59 = vld [vmem:[%s9722_s11 + $0x338] sm:$0xff]   ;;  %v6591_v57 = vld [vmem:[%s9722_s11 + $0x368] sm:$0xff]  }
 0xbf7   :  { %6153 = vmatprep.subr.bf16.mxu0 %v6572_v40  ;;  %v3251_v35 = vmul.bf16 %v3219_v12, %v9196_v1  ;;  %v3253_v9 = vmul.bf16 %v3221_v32, %v9201_v46  ;;  %v9243_v63 = vadd.bf16 %v9160_v7, %v2916_v58  ;;  %v3168_v43 = vmul.bf16 1056980736, %v8955_v28  ;;  %v6586_v28 = vld [vmem:[%s9722_s11 + $0x3b8] sm:$0xff]  }
 0xbf8   :  { %v3266_v45 = vmul.bf16 %v3234_v41, %v9178_v25  ;;  %v3183_v54 = vmul.bf16 1056980736, %v8966_v62  ;;  %v3185_v47 = vmul.bf16 1056980736, %v8971_v49  ;;  %v3268_v61 = vmul.bf16 %v3236_v3, %v9187_v26 }
 0xbf9   :  { %v6712_v15 = vpop.eup %6711  ;;  %6126 = vmatpush3.bf16.msra.mxu1 %v6573_v34  ;;  %v3283_v7 = vmul.bf16 %v3251_v35, %v9196_v1  ;;  %v3218_v62 = vmul.bf16 1027030327, %v9239_v29  ;;  %v6588_v34 = vld [vmem:[%s9722_s11 + $0x3f0] sm:$0xff]   ;;  %v3184_v32 = vmul.bf16 1056980736, %v9035_v0 }
 0xbfa   :  { %6154 = vmatpush3.bf16.msra.mxu0 %v6574_v55  ;;  %v6714_v37 = vpop.eup %6713  ;;  %6127 = vmatprep.subr.bf16.mxu1 %v6575_v60  ;;  %v3390_v24 = vadd.bf16 1065369472, %v6712_v15  ;;  %v3285_v55 = vmul.bf16 %v3253_v9, %v9201_v46  ;;  %v3220_v60 = vmul.bf16 1027030327, %v9243_v63  ;;  %v3298_v14 = vadd.bf16 %v3266_v45, %v9178_v25  ;;  %v6598_v9 = vld [vmem:[%s9722_s11 + $0x3a0] sm:$0xff]   ;;  %v6600_v45 = vld [vmem:[%s9722_s11 + $0x3d8] sm:$0xff]  }
 0xbfb   :  { %6155 = vmatprep.subr.bf16.mxu0 %v6576_v22  ;;  %v6716_v18 = vpop.eup %6715  ;;  %v3392_v19 = vadd.bf16 1065369472, %v6714_v37  ;;  %v3300_v50 = vadd.bf16 %v3268_v61, %v9187_v26  ;;  %v6592_v37 = vld [vmem:[%s9722_s11 + $0x3e8] sm:$0xff]   ;;  %v3173_v41 = vmul.bf16 1056980736, %v9075_v8 }
 0xbfc   :  { %v6718_v33 = vpop.eup %6717  ;;  %v3407_v48 = vadd.bf16 1065369472, %v6716_v18  ;;  %v3422_v42 = vmul.bf16 %v3390_v24, %v3166_v4  ;;  %v3317_v12 = vadd.bf16 %v3285_v55, %v9201_v46  ;;  %v3252_v21 = vmul.bf16 %v3220_v60, %v9243_v63  ;;  %v6593_v24 = vld [vmem:[%s9722_s11 + $0x328] sm:$0xff]   ;;  %v6612_v55 = vld [vmem:[%s9722_s11 + $0x3c0] sm:$0xff]  }
 0xbfd   :  { %6128 = vmatpush3.bf16.msra.mxu1 %v6577_v17  ;;  %v3409_v6 = vadd.bf16 1065369472, %v6718_v33  ;;  %v3424_v40 = vmul.bf16 %v3392_v19, %v3168_v43  ;;  %v3315_v17 = vadd.bf16 %v3283_v7, %v9196_v1  ;;  %v3182_v18 = vmul.bf16 1056980736, %v9018_v30  ;;  %v6594_v30 = vld [vmem:[%s9722_s11 + $0x3a8] sm:$0xff]   ;;  %v6599_v43 = vld [vmem:[%s9722_s11 + $0x358] sm:$0xff]  }
 0xbfe   :  { %6156 = vmatpush3.bf16.msra.mxu0 %v6578_v38  ;;  %6129 = vmatprep.subr.bf16.mxu1 %v6579_v27  ;;  %v3439_v36 = vmul.bf16 %v3407_v48, %v3183_v54  ;;  %v3250_v38 = vmul.bf16 %v3218_v62, %v9239_v29  ;;  %v3330_v58 = vmul.bf16 1061961548, %v3298_v14  ;;  %v3171_v33 = vmul.bf16 1056980736, %v9052_v2  ;;  %v6601_v54 = vld [vmem:[%s9722_s11 + $0x318] sm:$0xff]   ;;  %v6607_v7 = vld [vmem:[%s9722_s11 + $0x348] sm:$0xff]  }
 0xbff   :  { %6157 = vmatprep.subr.bf16.mxu0 %v6580_v20  ;;  %v6720_v16 = vpop.eup %6719  ;;  %v3441_v10 = vmul.bf16 %v3409_v6, %v3185_v47  ;;  %v3347_v19 = vmul.bf16 1061961548, %v3315_v17  ;;  %v3349_v35 = vmul.bf16 1061961548, %v3317_v12  ;;  %v3284_v48 = vmul.bf16 %v3252_v21, %v9243_v63  ;;  %v6597_v6 = vld [vmem:[%s9722_s11 + $0x320] sm:$0xff]   ;;  %v6602_v47 = vld [vmem:[%s9722_s11 + $0x398] sm:$0xff]  }
 0xc00   :  { %v6722_v51 = vpop.eup %6721  ;;  %v3406_v11 = vadd.bf16 1065369472, %v6720_v16  ;;  %v3282_v0 = vmul.bf16 %v3250_v38, %v9239_v29  ;;  %6727 = vtanh.bf16 %v3330_v58  ;;  %v6608_v62 = vld [vmem:[%s9722_s11 + $0x3c8] sm:$0xff]   ;;  %v6613_v14 = vld [vmem:[%s9722_s11 + $0x300] sm:$0xff]   ;;  %v3170_v17 = vmul.bf16 1056980736, %v9178_v25 }
 0xc01   :  { %6130 = vmatpush3.bf16.msra.mxu1 %v6581_v56  ;;  %v6724_v49 = vpop.eup %6723  ;;  %v3408_v15 = vadd.bf16 1065369472, %v6722_v51  ;;  %v3332_v56 = vmul.bf16 1061961548, %v3300_v50  ;;  %v3316_v16 = vadd.bf16 %v3284_v48, %v9243_v63  ;;  %v6603_v51 = vld [vmem:[%s9722_s11 + $0x350] sm:$0xff]   ;;  %v6614_v50 = vld [vmem:[%s9722_s11 + $0x380] sm:$0xff]  }
 0xc02   :  { %6158 = vmatpush3.bf16.msra.mxu0 %v6582_v5  ;;  %6171 = vmatprep.subr.bf16.mxu1 %v6583_v52  ;;  %v6726_v22 = vpop.eup %6725  ;;  %v3395_v27 = vadd.bf16 1065369472, %v6724_v49  ;;  %v3438_v5 = vmul.bf16 %v3406_v11, %v3182_v18  ;;  %v6595_v52 = vld [vmem:[%s9722_s11 + $0x360] sm:$0xff]   ;;  %v3314_v4 = vadd.bf16 %v3282_v0, %v9239_v29  ;;  %v3172_v38 = vmul.bf16 1056980736, %v9187_v26  ;;  %v4974_v25 = vld [vmem:[%s9723_s12 + $0x38] sm:$0xff] }
 0xc03   :  { %6199 = vmatprep.subr.bf16.mxu0 %v6584_v44  ;;  %v3397_v20 = vadd.bf16 1065369472, %v6726_v22  ;;  %v3440_v3 = vmul.bf16 %v3408_v15, %v3184_v32  ;;  %v6596_v44 = vld [vmem:[%s9722_s11 + $0x3e0] sm:$0xff]   ;;  %6729 = vtanh.bf16 %v3332_v56  ;;  %v9922_v12 = vmov 0.0   ;;  %v4972_v58 = vld [vmem:[%s9723_s12 + $0x28] sm:$0xff]  ;;  %v9923_v0 = vld [vmem:[#allocation10_spill] sm:$0xff] }
 0xc04   :  { %4699 = vmatmul.mubr.bf16.vlgmr.msra.gmra.mxu1 %v3422_v42  ;;  %v3427_v2 = vmul.bf16 %v3395_v27, %v3171_v33  ;;  %6731 = vtanh.bf16 %v3347_v19  ;;  %v3346_v61 = vmul.bf16 1061961548, %v3314_v4  ;;  %v6604_v42 = vld [vmem:[%s9722_s11 + $0x3d0] sm:$0xff]   ;;  %v4971_v56 = vld [vmem:[%s9723_s12 + $0x20] sm:$0xff] }
 0xc05   :  { %4747 = vmatmul.mubr.bf16.vlgmr.msra.gmra.mxu0 %v3424_v40  ;;  %4706 = vmatprep.mubr.bf16.mxu1 %v3439_v36  ;;  %v3429_v8 = vmul.bf16 %v3397_v20, %v3173_v41  ;;  %6733 = vtanh.bf16 %v3349_v35  ;;  %v3348_v40 = vmul.bf16 1061961548, %v3316_v16  ;;  %v6609_v36 = vld [vmem:[%s9722_s11 + $0x308] sm:$0xff]   ;;  %v3186_v41 = vmul.bf16 1056980736, %v9239_v29  ;;  %v4969_v29 = vld [vmem:[%s9723_s12 + $0x10] sm:$0xff] }
 0xc06   :  { %4754 = vmatprep.mubr.bf16.mxu0 %v3441_v10  ;;  %6172 = vmatpush3.bf16.msra.mxu1 %v6585_v59  ;;  %v6605_v59 = vld [vmem:[%s9722_s11 + $0x310] sm:$0xff]   ;;  %6735 = vtanh.bf16 %v3346_v61  ;;  %v6610_v10 = vld [vmem:[%s9722_s11 + $0x388] sm:$0xff]   ;;  %v4967_v19 = vld [vmem:[%s9723_s12] sm:$0xff] }
 0xc07   :  { %6200 = vmatpush3.bf16.msra.mxu0 %v6586_v28  ;;  %6173 = vmatprep.subr.bf16.mxu1 %v6587_v31  ;;  %v6606_v28 = vld [vmem:[%s9722_s11 + $0x390] sm:$0xff]   ;;  %6737 = vtanh.bf16 %v3348_v40  ;;  %v9415_v35 = vld [vmem:[%s9714_s3 + $0x8] sm:$0xff] }
 0xc08   :  { %6201 = vmatprep.subr.bf16.mxu0 %v6588_v34  ;;  %v6611_v34 = vld [vmem:[%s9722_s11 + $0x340] sm:$0xff]   ;;  %v3705_v48 = vrot.slane %v9415_v35, %v9913_v39 }
 0xc0a   :  { %6174 = vmatpush3.bf16.msra.mxu1 %v6589_v23 }
 0xc0b   :  { %6202 = vmatpush3.bf16.msra.mxu0 %v6590_v53  ;;  %6175 = vmatprep.subr.bf16.mxu1 %v6591_v57  ;;  %v3187_v57 = vmul.bf16 1056980736, %v9196_v1  ;;  %v4973_v1 = vld [vmem:[%s9723_s12 + $0x30] sm:$0xff] }
 0xc0c   :  { %6203 = vmatprep.subr.bf16.mxu0 %v6592_v37  ;;  %4707 = vmatmul.mubr.bf16.gmra.mxu1 %v3438_v5  ;;  %v3189_v37 = vmul.bf16 1056980736, %v9201_v46  ;;  %v3188_v5 = vmul.bf16 1056980736, %v9243_v63  ;;  %v4968_v63 = vld [vmem:[%s9723_s12 + $0x8] sm:$0xff] }
 0xc0d   :  { %4755 = vmatmul.mubr.bf16.gmra.mxu0 %v3440_v3  ;;  %4794 = vmatprep.mubr.bf16.mxu1 %v3427_v2  ;;  %v9924_v2 = vld [vmem:[#allocation11_spill] sm:$0xff] }
 0xc0e   :  { %4842 = vmatprep.mubr.bf16.mxu0 %v3429_v8  ;;  %6176 = vmatpush3.bf16.msra.mxu1 %v6593_v24  ;;  %v6728_v49 = vpop.eup %6727  ;;  %v9925_v8 = vld [vmem:[#allocation12_spill] sm:$0xff] }
 0xc0f   :  { %6204 = vmatpush3.bf16.msra.mxu0 %v6594_v30  ;;  %6177 = vmatprep.subr.bf16.mxu1 %v6595_v52  ;;  %v3394_v23 = vadd.bf16 1065369472, %v6728_v49  ;;  %v4970_v30 = vld [vmem:[%s9723_s12 + $0x18] sm:$0xff] }
 0xc10   :  { %6205 = vmatprep.subr.bf16.mxu0 %v6596_v44 }
 0xc11   :  { %v6730_v31 = vpop.eup %6729  ;;  %v3426_v27 = vmul.bf16 %v3394_v23, %v3170_v17 }
 0xc12   :  { %6178 = vmatpush3.bf16.msra.mxu1 %v6597_v6  ;;  %v6732_v60 = vpop.eup %6731  ;;  %v3396_v53 = vadd.bf16 1065369472, %v6730_v31 }
 0xc13   :  { %6206 = vmatpush3.bf16.msra.mxu0 %v6598_v9  ;;  %6179 = vmatprep.subr.bf16.mxu1 %v6599_v43  ;;  %v6734_v22 = vpop.eup %6733  ;;  %v3411_v11 = vadd.bf16 1065369472, %v6732_v60 }
 0xc14   :  { %6207 = vmatprep.subr.bf16.mxu0 %v6600_v45  ;;  %v3413_v15 = vadd.bf16 1065369472, %v6734_v22  ;;  %v3428_v20 = vmul.bf16 %v3396_v53, %v3172_v38  ;;  %v6736_v21 = vpop.eup %6735 }
 0xc15   :  { %v3443_v18 = vmul.bf16 %v3411_v11, %v3187_v57  ;;  %v6738_v26 = vpop.eup %6737  ;;  %v3410_v46 = vadd.bf16 1065369472, %v6736_v21 }
 0xc16   :  { %6180 = vmatpush3.bf16.msra.mxu1 %v6601_v54  ;;  %v3445_v32 = vmul.bf16 %v3413_v15, %v3189_v37  ;;  %v3412_v33 = vadd.bf16 1065369472, %v6738_v26 }
 0xc17   :  { %6208 = vmatpush3.bf16.msra.mxu0 %v6602_v47  ;;  %6181 = vmatprep.subr.bf16.mxu1 %v6603_v51  ;;  %v3442_v3 = vmul.bf16 %v3410_v46, %v3186_v41 }
 0xc18   :  { %6209 = vmatprep.subr.bf16.mxu0 %v6604_v42  ;;  %v3444_v24 = vmul.bf16 %v3412_v33, %v3188_v5 }
 0xc1a   :  { %6182 = vmatpush3.bf16.msra.mxu1 %v6605_v59 }
 0xc1b   :  { %6210 = vmatpush3.bf16.msra.mxu0 %v6606_v28  ;;  %6183 = vmatprep.subr.bf16.mxu1 %v6607_v7 }
 0xc1c   :  { %6211 = vmatprep.subr.bf16.mxu0 %v6608_v62 }
 0xc1e   :  { %6184 = vmatpush3.bf16.msra.mxu1 %v6609_v36 }
 0xc1f   :  { %6212 = vmatpush3.bf16.msra.mxu0 %v6610_v10  ;;  %6185 = vmatprep.subr.bf16.mxu1 %v6611_v34 }
 0xc20   :  { %6213 = vmatprep.subr.bf16.mxu0 %v6612_v55 }
 0xc22   :  { %6186 = vmatpush3.bf16.msra.mxu1 %v6613_v14 }
 0xc23   :  { %6214 = vmatpush3.bf16.msra.mxu0 %v6614_v50  ;;  %6386 = vmatprep.subr.mxu1 %v9922_v12 }
 0xc24   :  { %6411 = vmatprep.subr.mxu0 %v9922_v12 }
 0xc25   :  { %4795 = vmatmul.mubr.bf16.vlgmr.msra.gmra.mxu1 %v3426_v27 }
 0xc26   :  { %4843 = vmatmul.mubr.bf16.vlgmr.msra.gmra.mxu0 %v3428_v20  ;;  %4802 = vmatprep.mubr.bf16.mxu1 %v3443_v18 }
 0xc27   :  { %4850 = vmatprep.mubr.bf16.mxu0 %v3445_v32  ;;  %6412 = vmatpush3.msra.mxu0 %v4974_v25 }
 0xc28   :  { %6413 = vmatprep.subr.mxu0 %v9922_v12 }
 0xc29   :  { %6414 = vmatpush3.msra.mxu0 %v4973_v1 }
 0xc2a   :  { %6415 = vmatprep.subr.mxu0 %v9922_v12 }
 0xc2b   :  { %6416 = vmatpush3.msra.mxu0 %v4972_v58 }
 0xc2c   :  { %6417 = vmatprep.subr.mxu0 %v9922_v12 }
 0xc2d   :  { %6418 = vmatpush3.msra.mxu0 %v4971_v56  ;;  %4803 = vmatmul.mubr.bf16.gmra.mxu1 %v3442_v3 }
 0xc2e   :  { %4851 = vmatmul.mubr.bf16.gmra.mxu0 %v3444_v24  ;;  %6419 = vmatprep.subr.mxu0 %v9922_v12 }
 0xc2f   :  { %6420 = vmatpush3.msra.mxu0 %v4970_v30  ;;  %6427 = vmatprep.mubr.msk.f32.mxu0 %vm6816_vm1, %v9922_v12 }
 0xc30   :  { %6421 = vmatprep.subr.mxu0 %v9922_v12  ;;  %6402 = vmatprep.mubr.msk.f32.mxu1 %vm6816_vm1, %v9922_v12 }
 0xc31   :  { %6422 = vmatpush3.msra.mxu0 %v4969_v29 }
 0xc32   :  { %6423 = vmatprep.subr.mxu0 %v9922_v12 }
 0xc33   :  { %6424 = vmatpush3.msra.mxu0 %v4968_v63 }
 0xc34   :  { %6425 = vmatprep.subr.mxu0 %v9922_v12 }
 0xc35   :  { %6426 = vmatpush3.msra.mxu0 %v4967_v19 }
 0xc36   :  { %6428 = vmatmul.mubr.msk.f32.vlgmr.msra.gmra.mxu0 %vm246_vm4, %v9923_v0 }
 0xc37   :  { %6430 = vmatprep.mubr.msk.f32.mxu0 %vm6816_vm1, %v9922_v12 }
 0xc3a   :  { %6431 = vmatmul.mubr.msk.f32.gmra.mxu0 %vm246_vm4, %v9924_v2 }
 0xc3b   :  { %6433 = vmatprep.mubr.msk.f32.mxu0 %vm6816_vm1, %v9922_v12 }
 0xc3e   :  { %6434 = vmatmul.mubr.msk.f32.gmra.mxu0 %vm246_vm4, %v9925_v8 }
 0xc82   :  { %v6019_v52 = vpop.f32.mrf.mxu1 }
 0xc83   :  { %v6047_v44 = vpop.f32.mrf.mxu0 }
 0xc84   :  { %v6020_v6 = vpop.f32.mrf.mxu1 }
 0xc85   :  { %v6021_v9 = vadd.f32 %v6020_v6, %v6019_v52  ;;  %v6048_v4 = vpop.f32.mrf.mxu0 }
 0xc86   :  { %v6049_v43 = vadd.f32 %v6048_v4, %v6047_v44  ;;  %v6022_v45 = vpop.f32.mrf.mxu1 }
 0xc87   :  { %v4509_v16 = vadd.f32 %v6021_v9, %v3705_v48  ;;  %v6050_v54 = vpop.f32.mrf.mxu0 }
 0xc88   :  { %v6023_v47 = vpop.f32.mrf.mxu1 }
 0xc89   :  { %v4557_v61 = vadd.f32 %v6049_v43, %v4509_v16  ;;  %v6024_v51 = vadd.f32 %v6023_v47, %v6022_v45  ;;  %v6051_v42 = vpop.f32.mrf.mxu0 }
 0xc8a   :  { %v6052_v40 = vadd.f32 %v6051_v42, %v6050_v54 }
 0xc8b   :  { %v4512_v59 = vadd.f32 %v6024_v51, %v3705_v48  ;;  %v6025_v28 = vpop.f32.mrf.mxu1 }
 0xc8d   :  { %v4560_v7 = vadd.f32 %v6052_v40, %v4512_v59  ;;  %v6026_v62 = vpop.f32.mrf.mxu1 }
 0xc8e   :  { %v6027_v36 = vadd.f32 %v6026_v62, %v6025_v28 }
 0xc8f   :  { %v6053_v49 = vpop.f32.mrf.mxu0  ;;  %v6028_v10 = vpop.f32.mrf.mxu1 }
 0xc90   :  { %v4517_v31 = vadd.f32 %v6027_v36, %v3705_v48 }
 0xc91   :  { %v6054_v34 = vpop.f32.mrf.mxu0  ;;  %v6029_v60 = vpop.f32.mrf.mxu1 }
 0xc92   :  { %v6055_v55 = vadd.f32 %v6054_v34, %v6053_v49 }
 0xc93   :  { %v6056_v22 = vpop.f32.mrf.mxu0 }
 0xc94   :  { %v4565_v14 = vadd.f32 %v6055_v55, %v4517_v31 }
 0xc95   :  { %v6057_v50 = vpop.f32.mrf.mxu0 }
 0xca3   :  { %v6075_v23 = vpop.f32.mrf.mxu1 }
 0xca4   :  { %v6103_v53 = vpop.f32.mrf.mxu0 }
 0xca5   :  { %v6076_v11 = vpop.f32.mrf.mxu1 }
 0xca6   :  { %v6104_v15 = vpop.f32.mrf.mxu0  ;;  %v6077_v44 = vadd.f32 %v6076_v11, %v6075_v23 }
 0xca7   :  { %v6078_v17 = vpop.f32.mrf.mxu1  ;;  %v6105_v9 = vadd.f32 %v6104_v15, %v6103_v53 }
 0xca8   :  { %v6106_v38 = vpop.f32.mrf.mxu0  ;;  %v4605_v48 = vadd.f32 %v6077_v44, %v4557_v61 }
 0xca9   :  { %v6079_v57 = vpop.f32.mrf.mxu1 }
 0xcaa   :  { %v6107_v37 = vpop.f32.mrf.mxu0  ;;  %v6080_v6 = vadd.f32 %v6079_v57, %v6078_v17  ;;  %v4653_v43 = vadd.f32 %v6105_v9, %v4605_v48  ;;  %v9927_v9 = vld [vmem:[#allocation19_spill] sm:$0xff] }
 0xcab   :  { %v6081_v27 = vpop.f32.mrf.mxu1  ;;  %v6108_v54 = vadd.f32 %v6107_v37, %v6106_v38 }
 0xcac   :  { %v6109_v20 = vpop.f32.mrf.mxu0  ;;  %v4608_v45 = vadd.f32 %v6080_v6, %v4560_v7 }
 0xcad   :  { %v6082_v21 = vpop.f32.mrf.mxu1 }
 0xcae   :  { %v6110_v18 = vpop.f32.mrf.mxu0  ;;  %v6083_v16 = vadd.f32 %v6082_v21, %v6081_v27  ;;  %v4656_v59 = vadd.f32 %v6108_v54, %v4608_v45 }
 0xcaf   :  { %v6084_v32 = vpop.f32.mrf.mxu1  ;;  %v6111_v49 = vadd.f32 %v6110_v18, %v6109_v20 }
 0xcb0   :  { %v6112_v25 = vpop.f32.mrf.mxu0  ;;  %v4613_v28 = vadd.f32 %v6083_v16, %v4565_v14  ;;  %v9928_v16 = vld [vmem:[#allocation20_spill] sm:$0xff] }
 0xcb1   :  { %v6085_v26 = vpop.f32.mrf.mxu1 }
 0xcb2   :  { %v6113_v1 = vpop.f32.mrf.mxu0  ;;  %v4661_v50 = vadd.f32 %v6111_v49, %v4613_v28 }
 0xcc4   :  { %v6131_v46 = vpop.f32.mrf.mxu1 }
 0xcc5   :  { %v6159_v58 = vpop.f32.mrf.mxu0 }
 0xcc6   :  { %v6132_v33 = vpop.f32.mrf.mxu1 }
 0xcc7   :  { %v6160_v41 = vpop.f32.mrf.mxu0  ;;  %v6133_v4 = vadd.f32 %v6132_v33, %v6131_v46 }
 0xcc8   :  { %v6134_v56 = vpop.f32.mrf.mxu1  ;;  %v6161_v62 = vadd.f32 %v6160_v41, %v6159_v58 }
 0xcc9   :  { %v6162_v5 = vpop.f32.mrf.mxu0  ;;  %v4701_v47 = vadd.f32 %v6133_v4, %v4653_v43 }
 0xcca   :  { %v6135_v3 = vpop.f32.mrf.mxu1 }
 0xccb   :  { %v6163_v24 = vpop.f32.mrf.mxu0  ;;  %v6136_v51 = vadd.f32 %v6135_v3, %v6134_v56  ;;  %v4749_v31 = vadd.f32 %v6161_v62, %v4701_v47 }
 0xccc   :  { %v6137_v30 = vpop.f32.mrf.mxu1  ;;  %v6164_v7 = vadd.f32 %v6163_v24, %v6162_v5 }
 0xccd   :  { %v6165_v29 = vpop.f32.mrf.mxu0  ;;  %v4704_v34 = vadd.f32 %v6136_v51, %v4656_v59 }
 0xcce   :  { %v6138_v63 = vpop.f32.mrf.mxu1 }
 0xccf   :  { %v6166_v19 = vpop.f32.mrf.mxu0  ;;  %v6139_v61 = vadd.f32 %v6138_v63, %v6137_v30  ;;  %v4752_v17 = vadd.f32 %v6164_v7, %v4704_v34  ;;  %v4982_v7 = vld [vmem:[%s9724_s13 + $0x38] sm:$0xff] }
 0xcd0   :  { %v6140_v0 = vpop.f32.mrf.mxu1  ;;  %v6167_v27 = vadd.f32 %v6166_v19, %v6165_v29  ;;  %6387 = vmatpush3.msra.mxu1 %v4982_v7 }
 0xcd1   :  { %v6168_v2 = vpop.f32.mrf.mxu0  ;;  %v4709_v38 = vadd.f32 %v6139_v61, %v4661_v50  ;;  %6388 = vmatprep.subr.mxu1 %v9922_v12 }
 0xcd2   :  { %v6141_v8 = vpop.f32.mrf.mxu1 }
 0xcd3   :  { %v6169_v52 = vpop.f32.mrf.mxu0  ;;  %v4757_v25 = vadd.f32 %v6167_v27, %v4709_v38  ;;  %v4976_v38 = vld [vmem:[%s9724_s13 + $0x8] sm:$0xff] }
 0xcd4   :  { %v9926_v52 = vld [vmem:[#allocation18_spill] sm:$0xff] }
 0xce5   :  { %v6187_v42 = vpop.f32.mrf.mxu1 }
 0xce6   :  { %v6215_v40 = vpop.f32.mrf.mxu0 }
 0xce7   :  { %v6188_v36 = vpop.f32.mrf.mxu1 }
 0xce8   :  { %v6216_v10 = vpop.f32.mrf.mxu0  ;;  %v6189_v55 = vadd.f32 %v6188_v36, %v6187_v42 }
 0xce9   :  { %v6190_v60 = vpop.f32.mrf.mxu1  ;;  %v6217_v53 = vadd.f32 %v6216_v10, %v6215_v40 }
 0xcea   :  { %v6218_v22 = vpop.f32.mrf.mxu0  ;;  %v4797_v23 = vadd.f32 %v6189_v55, %v4749_v31  ;;  %v9929_v55 = vld [vmem:[#allocation9_spill] sm:$0xff] }
 0xceb   :  { %v6191_v11 = vpop.f32.mrf.mxu1 }
 0xcec   :  { %v6219_v15 = vpop.f32.mrf.mxu0  ;;  %v4845_v57 = vadd.f32 %v6217_v53, %v4797_v23  ;;  %v6192_v14 = vadd.f32 %v6191_v11, %v6190_v60  ;;  %v4948_v60 = vrot.slane %v9415_v35, %v9929_v55  ;;  %v4981_v23 = vld [vmem:[%s9724_s13 + $0x30] sm:$0xff]  ;;  %v4980_v53 = vld [vmem:[%s9724_s13 + $0x28] sm:$0xff]  ;;  %v4979_v11 = vld [vmem:[%s9724_s13 + $0x20] sm:$0xff] }
 0xced   :  { %v6193_v37 = vpop.f32.mrf.mxu1  ;;  %v6220_v21 = vadd.f32 %v6219_v15, %v6218_v22  ;;  %v9930_v22 = vld [vmem:[#allocation8_spill] sm:$0xff]  ;;  %6389 = vmatpush3.msra.mxu1 %v4981_v23  ;;  %v4978_v15 = vld [vmem:[%s9724_s13 + $0x18] sm:$0xff] }
 0xcee   :  { %v4800_v20 = vadd.f32 %v6192_v14, %v4752_v17  ;;  %v6221_v18 = vpop.f32.mrf.mxu0  ;;  %4861 = vrot.lane.b32.xlu0 %v4845_v57, %s6817_s21  ;;  %v4959_v50 = vrot.slane %v9415_v35, %v9930_v22  ;;  %6390 = vmatprep.subr.mxu1 %v9922_v12  ;;  %v4977_v17 = vld [vmem:[%s9724_s13 + $0x10] sm:$0xff]  ;;  %v4975_v57 = vld [vmem:[%s9724_s13] sm:$0xff] }
 0xcef   :  { %v6194_v32 = vpop.f32.mrf.mxu1  ;;  %6391 = vmatpush3.msra.mxu1 %v4980_v53 }
 0xcf0   :  { %v4848_v26 = vadd.f32 %v6220_v21, %v4800_v20  ;;  %v6195_v1 = vadd.f32 %v6194_v32, %v6193_v37  ;;  %v6222_v46 = vpop.f32.mrf.mxu0  ;;  %6392 = vmatprep.subr.mxu1 %v9922_v12 }
 0xcf1   :  { %v6196_v58 = vpop.f32.mrf.mxu1  ;;  %v6223_v41 = vadd.f32 %v6222_v46, %v6221_v18  ;;  %6393 = vmatpush3.msra.mxu1 %v4979_v11 }
 0xcf2   :  { %v4805_v33 = vadd.f32 %v6195_v1, %v4757_v25  ;;  %v6224_v56 = vpop.f32.mrf.mxu0  ;;  %4863 = vrot.lane.b32.xlu1 %v4848_v26, %s6817_s21  ;;  %6394 = vmatprep.subr.mxu1 %v9922_v12 }
 0xcf3   :  { %v6197_v5 = vpop.f32.mrf.mxu1  ;;  %6395 = vmatpush3.msra.mxu1 %v4978_v15 }
 0xcf4   :  { %v4853_v3 = vadd.f32 %v6223_v41, %v4805_v33  ;;  %v6225_v24 = vpop.f32.mrf.mxu0  ;;  %6396 = vmatprep.subr.mxu1 %v9922_v12 }
 0xcf5   :  { %6397 = vmatpush3.msra.mxu1 %v4977_v17 }
 0xcf6   :  { %v9421_v30 = vpop.f32.mrf.mxu0  ;;  %4865 = vrot.lane.b32.xlu1 %v4853_v3, %s6817_s21  ;;  %6398 = vmatprep.subr.mxu1 %v9922_v12 }
 0xcf7   :  { %6399 = vmatpush3.msra.mxu1 %v4976_v38 }
 0xcf8   :  { %v6429_v29 = vpop.f32.mrf.mxu0  ;;  %6400 = vmatprep.subr.mxu1 %v9922_v12 }
 0xcf9   :  { %6401 = vmatpush3.msra.mxu1 %v4975_v57 }
 0xcfa   :  { %v9424_v63 = vpop.f32.mrf.mxu0  ;;  %6436 = vmatprep.subr.mxu1 %v9922_v12 }
 0xcfc   :  { %v6432_v19 = vpop.f32.mrf.mxu0 }
 0xcfe   :  { %v9426_v0 = vpop.f32.mrf.mxu0 }
 0xd00   :  { %v6435_v2 = vpop.f32.mrf.mxu0 }
 0xd60   :  { %v4862_v8 = vpop.permute.xlu0 %4861 }
 0xd61   :  { %v9429_v44 = vadd.f32 %v4862_v8, %v9926_v52 }
 0xd63   :  { %4876 = vrot.lane.b32.xlu1 %v9429_v44, %s6817_s21  ;;  %v4897_v48 = vmul.f32 %v9429_v44, %v9429_v44 }
 0xd64   :  { %v4864_v6 = vpop.permute.xlu1 %4863 }
 0xd65   :  { %v9436_v4 = vadd.f32 %v4864_v6, %v9927_v9  ;;  %4903 = vrot.lane.b32.xlu0 %v4897_v48, %s6817_s21 }
 0xd67   :  { %4878 = vrot.lane.b32.xlu1 %v9436_v4, %s6817_s21  ;;  %v4898_v43 = vmul.f32 %v9436_v4, %v9436_v4 }
 0xd68   :  { %v4866_v45 = vpop.permute.xlu1 %4865 }
 0xd69   :  { %v9444_v54 = vadd.f32 %v4866_v45, %v9928_v16  ;;  %4905 = vrot.lane.b32.xlu0 %v4898_v43, %s6817_s21 }
 0xd6b   :  { %4880 = vrot.lane.b32.xlu1 %v9444_v54, %s6817_s21  ;;  %v4899_v47 = vmul.f32 %v9444_v54, %v9444_v54 }
 0xd6d   :  { %4907 = vrot.lane.b32.xlu0 %v4899_v47, %s6817_s21 }
 0xdd5   :  { %v4877_v51 = vpop.permute.xlu1 %4876 }
 0xdd6   :  { %v4885_v42 = vsel %vm246_vm4, %v4877_v51, 0.0 }
 0xdd7   :  { %v4904_v40 = vpop.permute.xlu0 %4903  ;;  %4886 = vadd.xlane.f32.xlu1 %v4885_v42 }
 0xdd8   :  { %v4912_v59 = vsel %vm246_vm4, %v4904_v40, 0.0 }
 0xdd9   :  { %4913 = vadd.xlane.f32.xlu0 %v4912_v59  ;;  %v4879_v28 = vpop.permute.xlu1 %4878 }
 0xdda   :  { %v4888_v49 = vsel %vm246_vm4, %v4879_v28, 0.0 }
 0xddb   :  { %v4906_v62 = vpop.permute.xlu0 %4905 }
 0xddc   :  { %v4915_v31 = vsel %vm246_vm4, %v4906_v62, 0.0 }
 0xddd   :  { %4889 = vadd.xlane.f32.xlu0 %v4888_v49  ;;  %v4881_v36 = vpop.permute.xlu1 %4880 }
 0xdde   :  { %v4891_v10 = vsel %vm246_vm4, %v4881_v36, 0.0 }
 0xddf   :  { %4892 = vadd.xlane.f32.xlu1 %v4891_v10  ;;  %v4908_v34 = vpop.permute.xlu0 %4907 }
 0xde0   :  { %v4918_v61 = vsel %vm246_vm4, %v4908_v34, 0.0 }
 0xde1   :  { %4916 = vadd.xlane.f32.xlu0 %v4915_v31 }
 0xde5   :  { %4919 = vadd.xlane.f32.xlu0 %v4918_v61  ;;  %v9514_v61 = vld [vmem:[%s9715_s4] sm:$0xf] }
 0xdf0   :  { %4950 = vrot.lane.b32.xlu1 %v4948_v60, %s6817_s21  ;;  %v5161_v60 = vrot.slane %v9514_v61, %v9913_v39 }
 0xdfb   :  { %4961 = vrot.lane.b32.xlu0 %v4959_v50, %s6817_s21 }
 0xe60   :  { %v4887_v14 = vpop.xlane.xlu1 %4886 }
 0xe61   :  { %v4894_v37 = vmul.f32 0.015625, %v4887_v14 }
 0xe62   :  { %v4914_v27 = vpop.xlane.xlu0 %4913 }
 0xe63   :  { %v4924_v20 = vmul.f32 %v4894_v37, %v4894_v37  ;;  %v4921_v21 = vmul.f32 0.015625, %v4914_v27  ;;  %v4933_v6 = vsub.f32 %v9429_v44, %v4894_v37 }
 0xe65   :  { %v4927_v18 = vsub.f32 %v4921_v21, %v4924_v20  ;;  %v5316_v21 = vld [vmem:[%s9725_s14 + $0x68] sm:$0xff] }
 0xe66   :  { %v4890_v32 = vpop.xlane.xlu0 %4889 }
 0xe67   :  { %v4930_v25 = vmax.f32 %v4927_v18, 0.0  ;;  %v4895_v26 = vmul.f32 0.015625, %v4890_v32  ;;  %v5315_v18 = vld [vmem:[%s9725_s14 + $0x60] sm:$0xff]  ;;  %v5314_v32 = vld [vmem:[%s9725_s14 + $0x58] sm:$0xff] }
 0xe68   :  { %v4893_v1 = vpop.xlane.xlu1 %4892 }
 0xe69   :  { %v4936_v46 = vadd.f32 1e-05, %v4930_v25  ;;  %v4925_v33 = vmul.f32 %v4895_v26, %v4895_v26  ;;  %v4896_v41 = vmul.f32 0.015625, %v4893_v1  ;;  %v4934_v42 = vsub.f32 %v9436_v4, %v4895_v26  ;;  %v5313_v25 = vld [vmem:[%s9725_s14 + $0x50] sm:$0xff]  ;;  %v5312_v26 = vld [vmem:[%s9725_s14 + $0x48] sm:$0xff]  ;;  %v5311_v1 = vld [vmem:[%s9725_s14 + $0x40] sm:$0xff] }
 0xe6a   :  { %v4917_v58 = vpop.xlane.xlu0 %4916 }
 0xe6b   :  { %6739 = vrsqrt.f32 %v4936_v46  ;;  %v4922_v56 = vmul.f32 0.015625, %v4917_v58  ;;  %v4926_v24 = vmul.f32 %v4896_v41, %v4896_v41  ;;  %v4935_v28 = vsub.f32 %v9444_v54, %v4896_v41  ;;  %v5310_v46 = vld [vmem:[%s9725_s14 + $0x38] sm:$0xff]  ;;  %v5309_v58 = vld [vmem:[%s9725_s14 + $0x30] sm:$0xff]  ;;  %v5307_v41 = vld [vmem:[%s9725_s14 + $0x20] sm:$0xff] }
 0xe6c   :  { %v4951_v43 = vpop.permute.xlu1 %4950 }
 0xe6d   :  { %v4928_v5 = vsub.f32 %v4922_v56, %v4925_v33  ;;  %v5308_v33 = vld [vmem:[%s9725_s14 + $0x28] sm:$0xff]  ;;  %v5306_v56 = vld [vmem:[%s9725_s14 + $0x18] sm:$0xff] }
 0xe6e   :  { %v4920_v3 = vpop.xlane.xlu0 %4919 }
 0xe6f   :  { %v4931_v29 = vmax.f32 %v4928_v5, 0.0  ;;  %v4923_v19 = vmul.f32 0.015625, %v4920_v3  ;;  %v5305_v5 = vld [vmem:[%s9725_s14 + $0x10] sm:$0xff]  ;;  %v5304_v3 = vld [vmem:[%s9725_s14 + $0x8] sm:$0xff] }
 0xe71   :  { %v4937_v2 = vadd.f32 1e-05, %v4931_v29  ;;  %v4929_v8 = vsub.f32 %v4923_v19, %v4926_v24  ;;  %v5303_v24 = vld [vmem:[%s9725_s14] sm:$0xff] }
 0xe72   :  { %v4962_v16 = vpop.permute.xlu0 %4961 }
 0xe73   :  { %6741 = vrsqrt.f32 %v4937_v2  ;;  %v4932_v52 = vmax.f32 %v4929_v8, 0.0 }
 0xe75   :  { %v4938_v48 = vadd.f32 1e-05, %v4932_v52 }
 0xe77   :  { %6743 = vrsqrt.f32 %v4938_v48 }
 0xe78   :  { %v6740_v9 = vpop.eup %6739 }
 0xe79   :  { %v4942_v45 = vmul.f32 %v6740_v9, %v4933_v6 }
 0xe7b   :  { %v4953_v47 = vmul.f32 %v4951_v43, %v4942_v45 }
 0xe7d   :  { %v4964_v51 = vadd.f32 %v4962_v16, %v4953_v47 }
 0xe7f   :  { %4986 = vrot.lane.b32.xlu1 %v4964_v51, %s6817_s21 }
 0xe80   :  { %v6742_v40 = vpop.eup %6741 }
 0xe81   :  { %v4943_v59 = vmul.f32 %v6742_v40, %v4934_v42 }
 0xe83   :  { %v4954_v62 = vmul.f32 %v4951_v43, %v4943_v59 }
 0xe84   :  { %v6744_v49 = vpop.eup %6743 }
 0xe85   :  { %v4944_v36 = vmul.f32 %v6744_v49, %v4935_v28  ;;  %v4965_v10 = vadd.f32 %v4962_v16, %v4954_v62 }
 0xe87   :  { %v4955_v44 = vmul.f32 %v4951_v43, %v4944_v36  ;;  %4988 = vrot.lane.b32.xlu1 %v4965_v10, %s6817_s21 }
 0xe89   :  { %v4966_v31 = vadd.f32 %v4962_v16, %v4955_v44 }
 0xe8b   :  { %4990 = vrot.lane.b32.xlu1 %v4966_v31, %s6817_s21 }
 0xef1   :  { %v4987_v34 = vpop.permute.xlu1 %4986 }
 0xef2   :  { %6403 = vmatmul.mubr.msk.f32.vlgmr.msra.gmra.mxu1 %vm246_vm4, %v4987_v34  ;;  %v5211_v34 = vrot.slane %v9514_v61, %v9929_v55 }
 0xef3   :  { %6405 = vmatprep.mubr.msk.f32.mxu1 %vm6816_vm1, %v9922_v12 }
 0xef9   :  { %v4989_v4 = vpop.permute.xlu1 %4988 }
 0xefa   :  { %6406 = vmatmul.mubr.msk.f32.gmra.mxu1 %vm246_vm4, %v4989_v4 }
 0xefb   :  { %6408 = vmatprep.mubr.msk.f32.mxu1 %vm6816_vm1, %v9922_v12 }
 0xefd   :  { %v4991_v54 = vpop.permute.xlu1 %4990 }
 0xefe   :  { %6409 = vmatmul.mubr.msk.f32.gmra.mxu1 %vm246_vm4, %v4991_v54 }
 0xeff   :  { %6468 = vmatprep.mubr.msk.f32.mxu1 %vm6816_vm1, %v9922_v12 }
 0xfb2   :  { %v5064_v50 = vpop.f32.mrf.mxu1 }
 0xfb3   :  { %v5145_v7 = vadd.f32 %v9421_v30, %v5064_v50 }
 0xfb4   :  { %v6404_v23 = vpop.f32.mrf.mxu1 }
 0xfb5   :  { %v9519_v53 = vadd.f32 %v5161_v60, %v5145_v7 }
 0xfb7   :  { %5165 = vadd.xlane.f32.xlu0 %v9519_v53  ;;  %v5175_v11 = vmul.f32 %v9519_v53, %v9519_v53 }
 0xfb9   :  { %5178 = vadd.xlane.f32.xlu1 %v5175_v11 }
 0xfba   :  { %v5069_v15 = vpop.f32.mrf.mxu1 }
 0xfbb   :  { %v5150_v17 = vadd.f32 %v9424_v63, %v5069_v15  ;;  %v5318_v63 = vld [vmem:[%s9725_s14 + $0x78] sm:$0xff] }
 0xfbc   :  { %v6407_v38 = vpop.f32.mrf.mxu1  ;;  %6437 = vmatpush3.msra.mxu1 %v5318_v63 }
 0xfbd   :  { %v9525_v57 = vadd.f32 %v5161_v60, %v5150_v17  ;;  %6438 = vmatprep.subr.mxu1 %v9922_v12 }
 0xfbe   :  { %v5074_v14 = vpop.f32.mrf.mxu1 }
 0xfbf   :  { %v5155_v39 = vadd.f32 %v9426_v0, %v5074_v14  ;;  %5167 = vadd.xlane.f32.xlu0 %v9525_v57  ;;  %v5176_v27 = vmul.f32 %v9525_v57, %v9525_v57  ;;  %v5317_v0 = vld [vmem:[%s9725_s14 + $0x70] sm:$0xff]  ;;  %s6821_s14 = smov 3  }
 0xfc0   :  { %v6410_v30 = vpop.f32.mrf.mxu1  ;;  %6439 = vmatpush3.msra.mxu1 %v5317_v0 }
 0xfc1   :  { %v9529_v37 = vadd.f32 %v5161_v60, %v5155_v39  ;;  %6440 = vmatprep.subr.mxu1 %v9922_v12  ;;  %v5218_v60 = vrot.slane %v9514_v61, %v9930_v22 }
 0xfc2   :  { %6441 = vmatpush3.msra.mxu1 %v5316_v21 }
 0xfc3   :  { %5180 = vadd.xlane.f32.xlu0 %v5176_v27  ;;  %v5177_v20 = vmul.f32 %v9529_v37, %v9529_v37  ;;  %6442 = vmatprep.subr.mxu1 %v9922_v12 }
 0xfc4   :  { %6443 = vmatpush3.msra.mxu1 %v5315_v18 }
 0xfc5   :  { %5182 = vadd.xlane.f32.xlu1 %v5177_v20  ;;  %6444 = vmatprep.subr.mxu1 %v9922_v12 }
 0xfc6   :  { %6445 = vmatpush3.msra.mxu1 %v5314_v32 }
 0xfc7   :  { %5169 = vadd.xlane.f32.xlu0 %v9529_v37  ;;  %6446 = vmatprep.subr.mxu1 %v9922_v12 }
 0xfc8   :  { %6447 = vmatpush3.msra.mxu1 %v5313_v25 }
 0xfc9   :  { %6448 = vmatprep.subr.mxu1 %v9922_v12 }
 0xfca   :  { %6449 = vmatpush3.msra.mxu1 %v5312_v26 }
 0xfcb   :  { %6450 = vmatprep.subr.mxu1 %v9922_v12 }
 0xfcc   :  { %6451 = vmatpush3.msra.mxu1 %v5311_v1 }
 0xfcd   :  { %6452 = vmatprep.subr.mxu1 %v9922_v12 }
 0xfce   :  { %6453 = vmatpush3.msra.mxu1 %v5310_v46 }
 0xfcf   :  { %6454 = vmatprep.subr.mxu1 %v9922_v12 }
 0xfd0   :  { %6455 = vmatpush3.msra.mxu1 %v5309_v58 }
 0xfd1   :  { %6456 = vmatprep.subr.mxu1 %v9922_v12 }
 0xfd2   :  { %6457 = vmatpush3.msra.mxu1 %v5308_v33 }
 0xfd3   :  { %6458 = vmatprep.subr.mxu1 %v9922_v12 }
 0xfd4   :  { %6459 = vmatpush3.msra.mxu1 %v5307_v41 }
 0xfd5   :  { %6460 = vmatprep.subr.mxu1 %v9922_v12 }
 0xfd6   :  { %6461 = vmatpush3.msra.mxu1 %v5306_v56 }
 0xfd7   :  { %6462 = vmatprep.subr.mxu1 %v9922_v12 }
 0xfd8   :  { %6463 = vmatpush3.msra.mxu1 %v5305_v5 }
 0xfd9   :  { %6464 = vmatprep.subr.mxu1 %v9922_v12 }
 0xfda   :  { %6465 = vmatpush3.msra.mxu1 %v5304_v3 }
 0xfdb   :  { %6466 = vmatprep.subr.mxu1 %v9922_v12 }
 0xfdc   :  { %6467 = vmatpush3.msra.mxu1 %v5303_v24 }
0x1040   :  { %v5166_v29 = vpop.xlane.xlu0 %5165 }
0x1041   :  { %v5172_v19 = vmul.f32 0.0078125, %v5166_v29 }
0x1042   :  { %v5179_v2 = vpop.xlane.xlu1 %5178 }
0x1043   :  { %v5187_v8 = vmul.f32 %v5172_v19, %v5172_v19  ;;  %v5184_v52 = vmul.f32 0.0078125, %v5179_v2  ;;  %v5196_v31 = vsub.f32 %v9519_v53, %v5172_v19 }
0x1045   :  { %v5190_v48 = vsub.f32 %v5184_v52, %v5187_v8 }
0x1047   :  { %v5193_v6 = vmax.f32 %v5190_v48, 0.0 }
0x1048   :  { %v5168_v9 = vpop.xlane.xlu0 %5167 }
0x1049   :  { %v5199_v43 = vadd.f32 1e-05, %v5193_v6  ;;  %v5173_v45 = vmul.f32 0.0078125, %v5168_v9 }
0x104b   :  { %6745 = vrsqrt.f32 %v5199_v43  ;;  %v5188_v47 = vmul.f32 %v5173_v45, %v5173_v45  ;;  %v5197_v17 = vsub.f32 %v9525_v57, %v5173_v45 }
0x104c   :  { %v5181_v16 = vpop.xlane.xlu0 %5180 }
0x104d   :  { %v5185_v51 = vmul.f32 0.0078125, %v5181_v16 }
0x104e   :  { %v5183_v40 = vpop.xlane.xlu1 %5182 }
0x104f   :  { %v5191_v42 = vsub.f32 %v5185_v51, %v5188_v47  ;;  %v5186_v36 = vmul.f32 0.0078125, %v5183_v40 }
0x1050   :  { %v5170_v59 = vpop.xlane.xlu0 %5169 }
0x1051   :  { %v5194_v28 = vmax.f32 %v5191_v42, 0.0  ;;  %v5174_v62 = vmul.f32 0.0078125, %v5170_v59 }
0x1053   :  { %v5200_v49 = vadd.f32 1e-05, %v5194_v28  ;;  %v5189_v10 = vmul.f32 %v5174_v62, %v5174_v62  ;;  %v5198_v22 = vsub.f32 %v9529_v37, %v5174_v62 }
0x1055   :  { %6747 = vrsqrt.f32 %v5200_v49  ;;  %v5192_v44 = vsub.f32 %v5186_v36, %v5189_v10 }
0x1057   :  { %v5195_v4 = vmax.f32 %v5192_v44, 0.0 }
0x1058   :  { %v6746_v54 = vpop.eup %6745 }
0x1059   :  { %v5201_v50 = vadd.f32 1e-05, %v5195_v4  ;;  %v5205_v7 = vmul.f32 %v6746_v54, %v5196_v31 }
0x105b   :  { %6749 = vrsqrt.f32 %v5201_v50  ;;  %v5212_v23 = vmul.f32 %v5211_v34, %v5205_v7 }
0x105d   :  { %v9604_v11 = vadd.f32 %v5218_v60, %v5212_v23 }
0x105f   :  { %v9607_v15 = vmul.f32 0.70710677, %v9604_v11 }
0x1061   :  { %v5228_v53 = vand.u32 2147483647, %v9607_v15  ;;  %vm5288_vm0 = vcmp.ge.f32.partialorder %v9607_v15, 0.0 }
0x1062   :  { %v6748_v38 = vpop.eup %6747 }
0x1063   :  { %v5231_v55 = vmul.f32 0.3275911, %v5228_v53  ;;  %v5206_v14 = vmul.f32 %v6748_v38, %v5197_v17  ;;  %v5270_v21 = vsub.f32 0.0, %v5228_v53 }
0x1065   :  { %v5234_v39 = vadd.f32 1.0, %v5231_v55  ;;  %v5213_v30 = vmul.f32 %v5211_v34, %v5206_v14  ;;  %v5273_v37 = vmul.f32 %v5270_v21, %v5228_v53  ;;  %v5222_v53 = vmul.f32 0.5, %v9604_v11 }
0x1067   :  { %6751 = vrcp.f32 %v5234_v39  ;;  %v9612_v61 = vadd.f32 %v5218_v60, %v5213_v30  ;;  %v5276_v41 = vmul.f32 1.442695, %v5273_v37 }
0x1068   :  { %v6750_v27 = vpop.eup %6749 }
0x1069   :  { %v5207_v20 = vmul.f32 %v6750_v27, %v5198_v22  ;;  %v9615_v63 = vmul.f32 0.70710677, %v9612_v61 }
0x106b   :  { %v5214_v0 = vmul.f32 %v5211_v34, %v5207_v20  ;;  %v5229_v57 = vand.u32 2147483647, %v9615_v63  ;;  %vm5289_vm2 = vcmp.ge.f32.partialorder %v9615_v63, 0.0  ;;  %v9931_v63 = vld [vmem:[#allocation14_spill] sm:$0xff] }
0x106d   :  { %v5232_v18 = vmul.f32 0.3275911, %v5229_v57  ;;  %v9618_v32 = vadd.f32 %v5218_v60, %v5214_v0  ;;  %v5271_v3 = vsub.f32 0.0, %v5229_v57 }
0x106f   :  { %v5235_v25 = vadd.f32 1.0, %v5232_v18  ;;  %v9621_v26 = vmul.f32 0.70710677, %v9618_v32  ;;  %v5274_v19 = vmul.f32 %v5271_v3, %v5229_v57  ;;  %v5322_v3 = vrot.slane %v9415_v35, %v9931_v63 }
0x1071   :  { %6753 = vrcp.f32 %v5235_v25  ;;  %v5230_v1 = vand.u32 2147483647, %v9621_v26  ;;  %v5278_v9 = vmul.f32 1.442695, %v5274_v19  ;;  %v5223_v25 = vmul.f32 0.5, %v9612_v61 }
0x1072   :  { %vm5290_vm3 = vcmp.ge.f32.partialorder %v9621_v26, 0.0 }
0x1073   :  { %v5233_v46 = vmul.f32 0.3275911, %v5230_v1  ;;  %v5272_v8 = vsub.f32 0.0, %v5230_v1 }
0x1074   :  { %v6752_v58 = vpop.eup %6751 }
0x1075   :  { %v5243_v33 = vmul.f32 1.0614054, %v6752_v58  ;;  %v5236_v56 = vadd.f32 1.0, %v5233_v46  ;;  %v5275_v16 = vmul.f32 %v5272_v8, %v5230_v1 }
0x1077   :  { %v5246_v5 = vadd.f32 -1.4531521, %v5243_v33  ;;  %6755 = vrcp.f32 %v5236_v56  ;;  %v5280_v62 = vmul.f32 1.442695, %v5275_v16 }
0x1078   :  { %6757 = vpow2.f32 %v5276_v41  ;;  %v5224_v41 = vmul.f32 0.5, %v9618_v32 }
0x1079   :  { %v5249_v24 = vmul.f32 %v6752_v58, %v5246_v5  ;;  %6759 = vpow2.f32 %v5278_v9 }
0x107a   :  { %6761 = vpow2.f32 %v5280_v62 }
0x107b   :  { %v5252_v29 = vadd.f32 1.4214138, %v5249_v24 }
0x107d   :  { %v5255_v2 = vmul.f32 %v6752_v58, %v5252_v29 }
0x107e   :  { %v6754_v52 = vpop.eup %6753 }
0x107f   :  { %v5258_v48 = vadd.f32 -0.28449672, %v5255_v2  ;;  %v5244_v6 = vmul.f32 1.0614054, %v6754_v52 }
0x1081   :  { %v5261_v43 = vmul.f32 %v6752_v58, %v5258_v48  ;;  %v5247_v45 = vadd.f32 -1.4531521, %v5244_v6 }
0x1083   :  { %v5264_v47 = vadd.f32 0.2548296, %v5261_v43  ;;  %v5250_v51 = vmul.f32 %v6754_v52, %v5247_v45 }
0x1084   :  { %v6756_v42 = vpop.eup %6755 }
0x1085   :  { %v5267_v40 = vmul.f32 %v6752_v58, %v5264_v47  ;;  %v5253_v59 = vadd.f32 1.4214138, %v5250_v51  ;;  %v5245_v28 = vmul.f32 1.0614054, %v6756_v42  ;;  %v6758_v49 = vpop.eup %6757 }
0x1086   :  { %v6760_v39 = vpop.eup %6759 }
0x1087   :  { %v5282_v36 = vmul.f32 %v6758_v49, %v5267_v40  ;;  %v5256_v10 = vmul.f32 %v6754_v52, %v5253_v59  ;;  %v5248_v44 = vadd.f32 -1.4531521, %v5245_v28  ;;  %v6762_v21 = vpop.eup %6761 }
0x1089   :  { %v5285_v31 = vsub.f32 1.0, %v5282_v36  ;;  %v5259_v34 = vadd.f32 -0.28449672, %v5256_v10  ;;  %v5251_v4 = vmul.f32 %v6756_v42, %v5248_v44 }
0x108b   :  { %v5291_v54 = vsub.f32 0.0, %v5285_v31  ;;  %v5262_v60 = vmul.f32 %v6754_v52, %v5259_v34  ;;  %v5254_v50 = vadd.f32 1.4214138, %v5251_v4 }
0x108d   :  { %v5294_v7 = vsel %vm5288_vm0, %v5285_v31, %v5291_v54  ;;  %v5265_v23 = vadd.f32 0.2548296, %v5262_v60  ;;  %v5257_v17 = vmul.f32 %v6756_v42, %v5254_v50  ;;  %vm5662_vm0 = vcmask 416768  }
0x108e   :  { %v5297_v38 = vadd.f32 1.0, %v5294_v7 }
0x108f   :  { %v5268_v55 = vmul.f32 %v6754_v52, %v5265_v23  ;;  %v5260_v14 = vadd.f32 -0.28449672, %v5257_v17 }
0x1090   :  { %v5300_v30 = vmul.f32 %v5297_v38, %v5222_v53 }
0x1091   :  { %v5283_v22 = vmul.f32 %v6760_v39, %v5268_v55  ;;  %v5263_v27 = vmul.f32 %v6756_v42, %v5260_v14  ;;  %v9932_v39 = vld [vmem:[#allocation13_spill] sm:$0xff] }
0x1092   :  { %6469 = vmatmul.mubr.f32.vlgmr.msra.gmra.mxu1 %v5300_v30  ;;  %v5454_v30 = vrot.slane %v9415_v35, %v9932_v39 }
0x1093   :  { %6471 = vmatprep.mubr.msk.f32.mxu1 %vm6816_vm1, %v9922_v12  ;;  %v5286_v20 = vsub.f32 1.0, %v5283_v22  ;;  %v5266_v0 = vadd.f32 0.2548296, %v5263_v27 }
0x1095   :  { %v5292_v57 = vsub.f32 0.0, %v5286_v20  ;;  %v5269_v15 = vmul.f32 %v6756_v42, %v5266_v0 }
0x1097   :  { %v5295_v18 = vsel %vm5289_vm2, %v5286_v20, %v5292_v57  ;;  %v5284_v11 = vmul.f32 %v6762_v21, %v5269_v15  ;;  %v5461_v57 = vrot.slane %v9415_v35, %v7454_v13  ;;  %vm5664_vm2 = vcmask 449536  }
0x1098   :  { %v5298_v37 = vadd.f32 1.0, %v5295_v18 }
0x1099   :  { %v5287_v1 = vsub.f32 1.0, %v5284_v11 }
0x109a   :  { %v5301_v46 = vmul.f32 %v5298_v37, %v5223_v25 }
0x109b   :  { %v5293_v58 = vsub.f32 0.0, %v5287_v1 }
0x109c   :  { %6472 = vmatmul.mubr.f32.gmra.mxu1 %v5301_v46 }
0x109d   :  { %6474 = vmatprep.mubr.msk.f32.mxu1 %vm6816_vm1, %v9922_v12  ;;  %v5296_v33 = vsel %vm5290_vm3, %v5287_v1, %v5293_v58  ;;  %vm5666_vm3 = vcmask 482304  }
0x109e   :  { %v5299_v56 = vadd.f32 1.0, %v5296_v33 }
0x10a0   :  { %v5302_v5 = vmul.f32 %v5299_v56, %v5224_v41 }
0x10a2   :  { %6475 = vmatmul.mubr.f32.gmra.mxu1 %v5302_v5 }
0x1152   :  { %v5389_v61 = vpop.f32.mrf.mxu1 }
0x1153   :  { %v5390_v24 = vadd.f32 %v5389_v61, %v5322_v3 }
0x1154   :  { %v6470_v29 = vpop.f32.mrf.mxu1 }
0x1155   :  { %v5403_v19 = vsel %vm246_vm4, %v5390_v24, 0.0  ;;  %v5415_v2 = vmul.f32 %v5390_v24, %v5390_v24 }
0x1156   :  { %5404 = vadd.xlane.f32.xlu0 %v5403_v19 }
0x1157   :  { %v5418_v26 = vsel %vm246_vm4, %v5415_v2, 0.0 }
0x1158   :  { %5419 = vadd.xlane.f32.xlu1 %v5418_v26 }
0x115c   :  { %v5394_v12 = vpop.f32.mrf.mxu1 }
0x115d   :  { %v5395_v8 = vadd.f32 %v5394_v12, %v5322_v3 }
0x115e   :  { %v6473_v52 = vpop.f32.mrf.mxu1 }
0x115f   :  { %v5406_v32 = vsel %vm246_vm4, %v5395_v8, 0.0  ;;  %v5416_v16 = vmul.f32 %v5395_v8, %v5395_v8 }
0x1160   :  { %5407 = vadd.xlane.f32.xlu1 %v5406_v32 }
0x1161   :  { %v5421_v51 = vsel %vm246_vm4, %v5416_v16, 0.0 }
0x1162   :  { %v5399_v48 = vpop.f32.mrf.mxu1 }
0x1163   :  { %v5400_v6 = vadd.f32 %v5399_v48, %v5322_v3 }
0x1164   :  { %v6476_v9 = vpop.f32.mrf.mxu1 }
0x1165   :  { %v5409_v43 = vsel %vm246_vm4, %v5400_v6, 0.0  ;;  %v5417_v45 = vmul.f32 %v5400_v6, %v5400_v6 }
0x1166   :  { %5410 = vadd.xlane.f32.xlu0 %v5409_v43 }
0x1167   :  { %v5424_v47 = vsel %vm246_vm4, %v5417_v45, 0.0 }
0x1168   :  { %5425 = vadd.xlane.f32.xlu1 %v5424_v47 }
0x116a   :  { %5422 = vadd.xlane.f32.xlu0 %v5421_v51 }
0x11df   :  { %v5405_v42 = vpop.xlane.xlu0 %5404 }
0x11e0   :  { %v5412_v40 = vmul.f32 0.015625, %v5405_v42 }
0x11e1   :  { %v5420_v59 = vpop.xlane.xlu1 %5419 }
0x11e2   :  { %v5430_v28 = vmul.f32 %v5412_v40, %v5412_v40  ;;  %v5427_v62 = vmul.f32 0.015625, %v5420_v59  ;;  %v5439_v38 = vsub.f32 %v5390_v24, %v5412_v40 }
0x11e4   :  { %v5433_v49 = vsub.f32 %v5427_v62, %v5430_v28 }
0x11e6   :  { %v5436_v36 = vmax.f32 %v5433_v49, 0.0 }
0x11e8   :  { %v5442_v10 = vadd.f32 1e-05, %v5436_v36 }
0x11e9   :  { %v5408_v44 = vpop.xlane.xlu1 %5407 }
0x11ea   :  { %6763 = vrsqrt.f32 %v5442_v10  ;;  %v5413_v34 = vmul.f32 0.015625, %v5408_v44 }
0x11ec   :  { %v5431_v23 = vmul.f32 %v5413_v34, %v5413_v34  ;;  %v5440_v33 = vsub.f32 %v5395_v8, %v5413_v34 }
0x11ef   :  { %v5411_v31 = vpop.xlane.xlu0 %5410 }
0x11f0   :  { %v5414_v4 = vmul.f32 0.015625, %v5411_v31 }
0x11f1   :  { %v5426_v54 = vpop.xlane.xlu1 %5425 }
0x11f2   :  { %v5432_v60 = vmul.f32 %v5414_v4, %v5414_v4  ;;  %v5429_v50 = vmul.f32 0.015625, %v5426_v54  ;;  %v5441_v46 = vsub.f32 %v5400_v6, %v5414_v4 }
0x11f3   :  { %v5423_v7 = vpop.xlane.xlu0 %5422 }
0x11f4   :  { %v5435_v17 = vsub.f32 %v5429_v50, %v5432_v60  ;;  %v5428_v53 = vmul.f32 0.015625, %v5423_v7 }
0x11f6   :  { %v5438_v55 = vmax.f32 %v5435_v17, 0.0  ;;  %v5434_v14 = vsub.f32 %v5428_v53, %v5431_v23 }
0x11f7   :  { %v6764_v22 = vpop.eup %6763 }
0x11f8   :  { %v5444_v27 = vadd.f32 1e-05, %v5438_v55  ;;  %v5437_v20 = vmax.f32 %v5434_v14, 0.0  ;;  %v5448_v0 = vmul.f32 %v6764_v22, %v5439_v38 }
0x11fa   :  { %6765 = vrsqrt.f32 %v5444_v27  ;;  %v5443_v15 = vadd.f32 1e-05, %v5437_v20  ;;  %v5455_v21 = vmul.f32 %v5454_v30, %v5448_v0 }
0x11fc   :  { %6767 = vrsqrt.f32 %v5443_v15  ;;  %v9646_v18 = vadd.f32 %v5461_v57, %v5455_v21 }
0x11fe   :  { %v9649_v11 = vmul.f32 0.70710677, %v9646_v18  ;;  %v5465_v22 = vmul.f32 0.5, %v9646_v18 }
0x1200   :  { %v5471_v25 = vand.u32 2147483647, %v9649_v11  ;;  %vm5531_vm1 = vcmp.ge.f32.partialorder %v9649_v11, 0.0 }
0x1202   :  { %v5474_v37 = vmul.f32 0.3275911, %v5471_v25  ;;  %v5513_v5 = vsub.f32 0.0, %v5471_v25 }
0x1204   :  { %v5477_v1 = vadd.f32 1.0, %v5474_v37  ;;  %v5516_v29 = vmul.f32 %v5513_v5, %v5471_v25 }
0x1206   :  { %6769 = vrcp.f32 %v5477_v1  ;;  %v5519_v52 = vmul.f32 1.442695, %v5516_v29 }
0x1207   :  { %v6766_v58 = vpop.eup %6765 }
0x1208   :  { %v5450_v41 = vmul.f32 %v6766_v58, %v5441_v46 }
0x1209   :  { %v6768_v56 = vpop.eup %6767 }
0x120a   :  { %v5457_v13 = vmul.f32 %v5454_v30, %v5450_v41  ;;  %v5449_v35 = vmul.f32 %v6768_v56, %v5440_v33 }
0x120c   :  { %v9652_v63 = vadd.f32 %v5461_v57, %v5457_v13  ;;  %v5456_v3 = vmul.f32 %v5454_v30, %v5449_v35 }
0x120e   :  { %v9655_v61 = vmul.f32 0.70710677, %v9652_v63  ;;  %v9657_v24 = vadd.f32 %v5461_v57, %v5456_v3 }
0x1210   :  { %v5473_v19 = vand.u32 2147483647, %v9655_v61  ;;  %v9661_v2 = vmul.f32 0.70710677, %v9657_v24  ;;  %vm5533_vm5 = vcmp.ge.f32.partialorder %v9655_v61, 0.0 }
0x1212   :  { %v5476_v26 = vmul.f32 0.3275911, %v5473_v19  ;;  %v5472_v12 = vand.u32 2147483647, %v9661_v2  ;;  %v5515_v51 = vsub.f32 0.0, %v5473_v19  ;;  %vm5532_vm6 = vcmp.ge.f32.partialorder %v9661_v2, 0.0 }
0x1213   :  { %v6770_v8 = vpop.eup %6769 }
0x1214   :  { %v5486_v32 = vmul.f32 1.0614054, %v6770_v8  ;;  %v5479_v48 = vadd.f32 1.0, %v5476_v26  ;;  %v5475_v6 = vmul.f32 0.3275911, %v5472_v12  ;;  %v5514_v40 = vsub.f32 0.0, %v5472_v12 }
0x1215   :  { %v5518_v28 = vmul.f32 %v5515_v51, %v5473_v19 }
0x1216   :  { %v5489_v9 = vadd.f32 -1.4531521, %v5486_v32  ;;  %6771 = vrcp.f32 %v5479_v48  ;;  %v5478_v43 = vadd.f32 1.0, %v5475_v6  ;;  %v5517_v36 = vmul.f32 %v5514_v40, %v5472_v12 }
0x1217   :  { %6773 = vpow2.f32 %v5519_v52  ;;  %v5523_v31 = vmul.f32 1.442695, %v5518_v28  ;;  %v5467_v12 = vmul.f32 0.5, %v9652_v63  ;;  %v5466_v6 = vmul.f32 0.5, %v9657_v24  ;;  %v9933_v24 = vld [vmem:[#allocation15_spill] sm:$0xff] }
0x1218   :  { %v5492_v45 = vmul.f32 %v6770_v8, %v5489_v9  ;;  %6775 = vrcp.f32 %v5478_v43  ;;  %v5521_v7 = vmul.f32 1.442695, %v5517_v36 }
0x1219   :  { %6777 = vpow2.f32 %v5523_v31 }
0x121a   :  { %v5495_v16 = vadd.f32 1.4214138, %v5492_v45  ;;  %6779 = vpow2.f32 %v5521_v7  ;;  %v9934_v7 = vld [vmem:[#allocation5_spill] sm:$0xff] }
0x121c   :  { %v5498_v47 = vmul.f32 %v6770_v8, %v5495_v16 }
0x121e   :  { %v5501_v42 = vadd.f32 -0.28449672, %v5498_v47 }
0x1220   :  { %v5504_v59 = vmul.f32 %v6770_v8, %v5501_v42 }
0x1222   :  { %v5507_v62 = vadd.f32 0.2548296, %v5504_v59 }
0x1223   :  { %v6772_v49 = vpop.eup %6771 }
0x1224   :  { %v5510_v10 = vmul.f32 %v6770_v8, %v5507_v62  ;;  %v5488_v44 = vmul.f32 1.0614054, %v6772_v49  ;;  %v6774_v34 = vpop.eup %6773 }
0x1225   :  { %v6776_v4 = vpop.eup %6775 }
0x1226   :  { %v5525_v54 = vmul.f32 %v6774_v34, %v5510_v10  ;;  %v5491_v60 = vadd.f32 -1.4531521, %v5488_v44  ;;  %v5487_v50 = vmul.f32 1.0614054, %v6776_v4  ;;  %v6778_v33 = vpop.eup %6777 }
0x1227   :  { %v6780_v35 = vpop.eup %6779 }
0x1228   :  { %v5528_v23 = vsub.f32 1.0, %v5525_v54  ;;  %v5494_v17 = vmul.f32 %v6772_v49, %v5491_v60  ;;  %v5490_v53 = vadd.f32 -1.4531521, %v5487_v50  ;;  %v6792_v50 = vld [vmem:[%s9714_s3 + $0x8] sm:$0xff] }
0x122a   :  { %v5534_v38 = vsub.f32 0.0, %v5528_v23  ;;  %v5497_v55 = vadd.f32 1.4214138, %v5494_v17  ;;  %v5493_v14 = vmul.f32 %v6776_v4, %v5490_v53 }
0x122c   :  { %v5537_v39 = vsel %vm5531_vm1, %v5528_v23, %v5534_v38  ;;  %v5500_v30 = vmul.f32 %v6772_v49, %v5497_v55  ;;  %v5496_v20 = vadd.f32 1.4214138, %v5493_v14  ;;  %v9935_v23 = vsub.s32 7, %v9934_v7 }
0x122d   :  { %v5540_v27 = vadd.f32 1.0, %v5537_v39  ;;  %vm5668_vm1 = vcmask 515072  }
0x122e   :  { %v5503_v0 = vadd.f32 -0.28449672, %v5500_v30  ;;  %v5499_v15 = vmul.f32 %v6776_v4, %v5496_v20  ;;  %v5597_v17 = vrot.slane %v6792_v50, %v9935_v23 }
0x122f   :  { %v9666_v57 = vmul.f32 %v5540_v27, %v5465_v22 }
0x1230   :  { %v5506_v21 = vmul.f32 %v6772_v49, %v5503_v0  ;;  %v5502_v11 = vadd.f32 -0.28449672, %v5499_v15  ;;  %v5914_v0 = vld [vmem:[%s9714_s3 + $0x10] ss:$0 sm:$0xff]  ;;  %s6822_s3 = smov 31  }
0x1231   :  { %v5546_v25 = vsel %vm246_vm4, %v9666_v57, 0.0  ;;  %v5558_v37 = vmul.f32 %v9666_v57, %v9666_v57 }
0x1232   :  { %5547 = vadd.xlane.f32.xlu0 %v5546_v25  ;;  %v5509_v1 = vadd.f32 0.2548296, %v5506_v21  ;;  %v5505_v58 = vmul.f32 %v6776_v4, %v5502_v11 }
0x1233   :  { %v5561_v46 = vsel %vm246_vm4, %v5558_v37, 0.0  ;;  %v5915_v37 = vld [vmem:[%s9726_s15] ss:$0 sm:$0xff]  ;;  %s6823_s15 = smov 35  }
0x1234   :  { %5562 = vadd.xlane.f32.xlu1 %v5561_v46  ;;  %v5512_v18 = vmul.f32 %v6772_v49, %v5509_v1  ;;  %v5508_v41 = vadd.f32 0.2548296, %v5505_v58 }
0x1236   :  { %v5527_v56 = vmul.f32 %v6778_v33, %v5512_v18  ;;  %v5511_v13 = vmul.f32 %v6776_v4, %v5508_v41 }
0x1238   :  { %v5530_v5 = vsub.f32 1.0, %v5527_v56  ;;  %v5526_v3 = vmul.f32 %v6780_v35, %v5511_v13 }
0x123a   :  { %v5536_v29 = vsub.f32 0.0, %v5530_v5  ;;  %v5529_v19 = vsub.f32 1.0, %v5526_v3 }
0x123c   :  { %v5539_v26 = vsel %vm5533_vm5, %v5530_v5, %v5536_v29  ;;  %v5535_v52 = vsub.f32 0.0, %v5529_v19 }
0x123d   :  { %v5542_v8 = vadd.f32 1.0, %v5539_v26 }
0x123e   :  { %v5538_v48 = vsel %vm5532_vm6, %v5529_v19, %v5535_v52  ;;  %v9936_v52 = vld [vmem:[#allocation17_spill] sm:$0xff] }
0x123f   :  { %v9676_v32 = vmul.f32 %v5542_v8, %v5467_v12  ;;  %v5541_v9 = vadd.f32 1.0, %v5538_v48 }
0x1241   :  { %v5552_v43 = vsel %vm246_vm4, %v9676_v32, 0.0  ;;  %v5544_v45 = vmul.f32 %v5541_v9, %v5466_v6  ;;  %v5560_v63 = vmul.f32 %v9676_v32, %v9676_v32 }
0x1242   :  { %5553 = vadd.xlane.f32.xlu0 %v5552_v43 }
0x1243   :  { %v5549_v61 = vsel %vm246_vm4, %v5544_v45, 0.0  ;;  %v5559_v16 = vmul.f32 %v5544_v45, %v5544_v45  ;;  %v5567_v47 = vsel %vm246_vm4, %v5560_v63, 0.0 }
0x1244   :  { %5550 = vadd.xlane.f32.xlu1 %v5549_v61 }
0x1245   :  { %v5564_v2 = vsel %vm246_vm4, %v5559_v16, 0.0 }
0x1246   :  { %5565 = vadd.xlane.f32.xlu0 %v5564_v2 }
0x1248   :  { %5568 = vadd.xlane.f32.xlu1 %v5567_v47 }
0x1259   :  { %5631 = vrot.lane.b32.xlu1 %v9933_v24, %s6821_s14 }
0x12bb   :  { %v5548_v51 = vpop.xlane.xlu0 %5547 }
0x12bc   :  { %v5555_v42 = vmul.f32 0.015625, %v5548_v51 }
0x12bd   :  { %v5563_v40 = vpop.xlane.xlu1 %5562 }
0x12be   :  { %v5573_v59 = vmul.f32 %v5555_v42, %v5555_v42  ;;  %v5570_v28 = vmul.f32 0.015625, %v5563_v40  ;;  %v5582_v53 = vsub.f32 %v9666_v57, %v5555_v42 }
0x12c0   :  { %v5576_v62 = vsub.f32 %v5570_v28, %v5573_v59 }
0x12c2   :  { %v5579_v49 = vmax.f32 %v5576_v62, 0.0 }
0x12c4   :  { %v5585_v36 = vadd.f32 1e-05, %v5579_v49 }
0x12c6   :  { %6781 = vrsqrt.f32 %v5585_v36 }
0x12cb   :  { %v5554_v10 = vpop.xlane.xlu0 %5553 }
0x12cc   :  { %v5557_v31 = vmul.f32 0.015625, %v5554_v10 }
0x12cd   :  { %v5551_v44 = vpop.xlane.xlu1 %5550 }
0x12ce   :  { %v5556_v34 = vmul.f32 0.015625, %v5551_v44  ;;  %v5575_v14 = vmul.f32 %v5557_v31, %v5557_v31  ;;  %v5584_v33 = vsub.f32 %v9676_v32, %v5557_v31  ;;  %v9937_v32 = vld [vmem:[#allocation16_spill] sm:$0xff] }
0x12cf   :  { %v5566_v4 = vpop.xlane.xlu0 %5565 }
0x12d0   :  { %v5574_v54 = vmul.f32 %v5556_v34, %v5556_v34  ;;  %v5571_v60 = vmul.f32 0.015625, %v5566_v4  ;;  %v5583_v58 = vsub.f32 %v5544_v45, %v5556_v34 }
0x12d1   :  { %v5569_v38 = vpop.xlane.xlu1 %5568 }
0x12d2   :  { %v5577_v39 = vsub.f32 %v5571_v60, %v5574_v54  ;;  %v5572_v30 = vmul.f32 0.015625, %v5569_v38 }
0x12d3   :  { %v6782_v55 = vpop.eup %6781 }
0x12d4   :  { %v5591_v22 = vmul.f32 %v6782_v55, %v5582_v53  ;;  %v5580_v27 = vmax.f32 %v5577_v39, 0.0  ;;  %v5578_v20 = vsub.f32 %v5572_v30, %v5575_v14 }
0x12d5   :  { %v5632_v48 = vpop.permute.xlu1 %5631 }
0x12d6   :  { %v5598_v15 = vmul.f32 %v5597_v17, %v5591_v22  ;;  %v5586_v21 = vadd.f32 1e-05, %v5580_v27  ;;  %v5581_v25 = vmax.f32 %v5578_v20, 0.0 }
0x12d8   :  { %v5605_v57 = vadd.f32 %v5914_v0, %v5598_v15  ;;  %6783 = vrsqrt.f32 %v5586_v21  ;;  %v5587_v11 = vadd.f32 1e-05, %v5581_v25 }
0x12da   :  { %v5615_v1 = vmul.f32 %v5915_v37, %v5605_v57  ;;  %6785 = vrsqrt.f32 %v5587_v11 }
0x12dc   :  { %v5616_v46 = vsel %vm246_vm4, %v5615_v1, 0.0 }
0x12dd   :  { %5617 = vadd.xlane.f32.xlu0 %v5616_v46 }
0x12e5   :  { %v6784_v18 = vpop.eup %6783 }
0x12e6   :  { %v5592_v41 = vmul.f32 %v6784_v18, %v5583_v58 }
0x12e7   :  { %v6786_v56 = vpop.eup %6785 }
0x12e8   :  { %v5599_v13 = vmul.f32 %v5597_v17, %v5592_v41  ;;  %v5593_v35 = vmul.f32 %v6786_v56, %v5584_v33 }
0x12ea   :  { %v5606_v5 = vadd.f32 %v5914_v0, %v5599_v13  ;;  %v5600_v3 = vmul.f32 %v5597_v17, %v5593_v35 }
0x12ec   :  { %v5619_v29 = vmul.f32 %v5915_v37, %v5606_v5  ;;  %v5607_v19 = vadd.f32 %v5914_v0, %v5600_v3 }
0x12ee   :  { %v5620_v26 = vsel %vm246_vm4, %v5619_v29, 0.0  ;;  %v5623_v12 = vmul.f32 %v5915_v37, %v5607_v19 }
0x12ef   :  { %5621 = vadd.xlane.f32.xlu1 %v5620_v26 }
0x12f0   :  { %v5624_v8 = vsel %vm246_vm4, %v5623_v12, 0.0 }
0x12f1   :  { %5625 = vadd.xlane.f32.xlu0 %v5624_v8 }
0x1300   :  { %5639 = vrot.lane.b32.xlu1 %v9936_v52, %s6822_s3 }
0x1304   :  { %5642 = vrot.lane.b32.xlu1 %v9936_v52, %s6823_s15 }
0x1307   :  { %5635 = vrot.lane.b32.xlu0 %v9937_v32, %s6822_s3 }
0x1308   :  { %5645 = vrot.lane.b32.xlu1 %v9937_v32, %s6823_s15 }
0x1366   :  { %v5618_v6 = vpop.xlane.xlu0 %5617 }
0x1378   :  { %v5622_v9 = vpop.xlane.xlu1 %5621 }
0x1379   :  { %v5628_v43 = vsel %vm5627_vm7, %v5618_v6, %v5622_v9 }
0x137a   :  { %v5626_v45 = vpop.xlane.xlu0 %5625 }
0x137b   :  { %v5630_v61 = vsel %vm5629_vm8, %v5628_v43, %v5626_v45 }
0x137c   :  { %v5649_v16 = vsel %vm5648_vm9, %v5630_v61, %v5632_v48  ;;  %v5640_v63 = vpop.permute.xlu1 %5639 }
0x137d   :  { %v5651_v2 = vsel %vm5650_vm10, %v5649_v16, 1.0 }
0x137e   :  { %v5636_v47 = vpop.permute.xlu0 %5635 }
0x137f   :  { %v5653_v24 = vsel %vm5652_vm11, %v5651_v2, %v5636_v47 }
0x1380   :  { %v5655_v51 = vsel %vm5654_vm12, %v5653_v24, %v5640_v63  ;;  %v5643_v42 = vpop.permute.xlu1 %5642 }
0x1381   :  { %v5657_v40 = vsel %vm5656_vm13, %v5655_v51, %v5636_v47 }
0x1382   :  { %v5659_v59 = vsel %vm5658_vm14, %v5657_v40, 1.0 }
0x1383   :  { %v5661_v28 = vsel %vm5660_vm15, %v5659_v59, %v5643_v42 }
0x1384   :  { %v5646_v62 = vpop.permute.xlu1 %5645 }
0x1385   :  { %v5663_v49 = vsel %vm5662_vm0, %v5661_v28, %v5646_v62 }
0x1386   :  { %v5665_v36 = vsel %vm5664_vm2, %v5663_v49, %v5643_v42 }
0x1387   :  { %v5667_v10 = vsel %vm5666_vm3, %v5665_v36, 1.0 }
0x1388   :  { %v5669_v44 = vsel %vm5668_vm1, %v5667_v10, 0.0 }
0x1389   :  { %5670 = vst.msk [vmem:[#allocation2] sm:$0xff] %vm246_vm4, %v5669_v44 }
0x138a   :  { %6804 = shalt.err (!%p6801_p4)
}
0x138b   :  { %5680 = dma.vmem_to_hbm [thread:$0]  %s5678_s7, 128, %s9729_s18, [#allocation3]  }
0x138c   :  { %6813 = dma.done.wait [#allocation3], 128  }
0x138d   :  { %6814 = vsyncadd [#allocation3], 4294967168 }
0x138e   :  { %5684 = vsyncpa [#allocation3], 1 }

</bundles_post_ra>
